<compile_context>
chip_gen: v6e
topology: v6e:2x2x1
jax: 0.10.0
libtpu: 0.0.40
codegen_flags: <defaults>
</compile_context>

<pallas_src>
import functools

import jax
import jax.numpy as jnp
from jax.experimental import pallas as pl
from jax.experimental.pallas import tpu as pltpu


def _round_up(x, m):
    return ((x + m - 1) // m) * m


# ---------------------------------------------------------------------------
# Pallas kernels
# ---------------------------------------------------------------------------
def _conv_pool_kernel(cols_ref, w_ref, b_ref, o_ref):
    """Fused conv3x3 + ReLU + 2x2 maxpool for one tile of pooled positions.

    cols: [TM, K]   bf16   4x4 input window per pooled position (K = 16*Cin)
    w:    [4, K, N] bf16   phase-embedded filters (one per 2x2 pool phase)
    b:    [1, N]    f32
    o:    [TM, N]   bf16   pooled activation, relu(max_p(cols @ w_p) + b)
    """
    x = cols_ref[...]
    acc = jnp.dot(x, w_ref[0], preferred_element_type=jnp.float32)
    for p in range(1, 4):
        acc = jnp.maximum(
            acc, jnp.dot(x, w_ref[p], preferred_element_type=jnp.float32))
    acc = jnp.maximum(acc + b_ref[...], 0.0)
    o_ref[...] = acc.astype(o_ref.dtype)


def _mlp_kernel(x_ref, w1_ref, b1_ref, w2_ref, b2_ref, o_ref):
    """Fused Linear(1568,128)+ReLU+Linear(128,NCP); hidden stays on-chip."""
    h = jnp.dot(x_ref[...], w1_ref[...], preferred_element_type=jnp.float32)
    h = jnp.maximum(h + b1_ref[...], 0.0).astype(jnp.bfloat16)
    o = jnp.dot(h, w2_ref[...], preferred_element_type=jnp.float32)
    o_ref[...] = o + b2_ref[...]


# ---------------------------------------------------------------------------
# Pallas wrappers (grid over rows, parallel semantics, padded ragged edges)
# ---------------------------------------------------------------------------
def _pad_rows(x, rows):
    return x if x.shape[0] == rows else jnp.pad(x, ((0, rows - x.shape[0]), (0, 0)))


def conv_pool(cols, w_emb, bias, *, max_tile=512):
    M, K = cols.shape
    _, _, N = w_emb.shape
    TM = min(max_tile, _round_up(M, 16))
    Mp = _round_up(M, TM)
    cols = _pad_rows(cols, Mp)
    out = pl.pallas_call(
        _conv_pool_kernel,
        out_shape=jax.ShapeDtypeStruct((Mp, N), jnp.bfloat16),
        grid=(Mp // TM,),
        in_specs=[
            pl.BlockSpec((TM, K), lambda i: (i, 0)),
            pl.BlockSpec((4, K, N), lambda i: (0, 0, 0)),
            pl.BlockSpec((1, N), lambda i: (0, 0)),
        ],
        out_specs=pl.BlockSpec((TM, N), lambda i: (i, 0)),
        compiler_params=pltpu.CompilerParams(
            dimension_semantics=("parallel",)),
    )(cols, w_emb, bias)
    return out[:M]


def mlp(x, w1, b1, w2, b2, *, max_tile=256):
    M, K = x.shape
    N1 = w1.shape[1]
    N2 = w2.shape[1]
    TM = min(max_tile, _round_up(M, 16))
    Mp = _round_up(M, TM)
    x = _pad_rows(x, Mp)
    out = pl.pallas_call(
        _mlp_kernel,
        out_shape=jax.ShapeDtypeStruct((Mp, N2), jnp.float32),
        grid=(Mp // TM,),
        in_specs=[
            pl.BlockSpec((TM, K), lambda i: (i, 0)),
            pl.BlockSpec((K, N1), lambda i: (0, 0)),
            pl.BlockSpec((1, N1), lambda i: (0, 0)),
            pl.BlockSpec((N1, N2), lambda i: (0, 0)),
            pl.BlockSpec((1, N2), lambda i: (0, 0)),
        ],
        out_specs=pl.BlockSpec((TM, N2), lambda i: (i, 0)),
        compiler_params=pltpu.CompilerParams(
            dimension_semantics=("parallel",)),
    )(x, w1, b1, w2, b2)
    return out[:M]


# ---------------------------------------------------------------------------
# Glue: 4x4 stride-2 patch extraction (one patch per POOLED output position)
# ---------------------------------------------------------------------------
def patches_4x4_stride2(x):
    """x: [B, H, W, C] (H, W even) -> [B*(H/2)*(W/2), 16*C], order (r, c, cin)."""
    B, H, W, C = x.shape
    xp = jnp.pad(x, ((0, 0), (1, 1), (1, 1), (0, 0)))
    taps = [xp[:, r:r + H - 1:2, c:c + W - 1:2, :]
            for r in range(4) for c in range(4)]           # each [B, H/2, W/2, C]
    p = jnp.stack(taps, axis=3)                             # [B, H/2, W/2, 16, C]
    return p.reshape(B * (H // 2) * (W // 2), 16 * C)


# ---------------------------------------------------------------------------
# Parameters (deterministic synthetic init, PyTorch-shaped then repacked)
# ---------------------------------------------------------------------------
def _embed_pool_weights(w_hwio):
    """[3,3,Cin,Cout] -> [4, 16*Cin, Cout]: 3x3 filter zero-embedded in a 4x4
    window at offset (dh, dw) for each of the 4 maxpool phases."""
    cin, cout = w_hwio.shape[2], w_hwio.shape[3]
    phases = []
    for dh in range(2):
        for dw in range(2):
            emb = jnp.zeros((4, 4, cin, cout), w_hwio.dtype)
            emb = emb.at[dh:dh + 3, dw:dw + 3].set(w_hwio)
            phases.append(emb.reshape(16 * cin, cout))
    return jnp.stack(phases, axis=0)


def init_params(key, num_classes):
    ks = jax.random.split(key, 8)
    conv1_w = jax.random.normal(ks[0], (16, 1, 3, 3), jnp.float32) * 0.10   # [Cout,Cin,kh,kw]
    conv1_b = jax.random.normal(ks[1], (16,), jnp.float32) * 0.10
    conv2_w = jax.random.normal(ks[2], (32, 16, 3, 3), jnp.float32) * 0.05
    conv2_b = jax.random.normal(ks[3], (32,), jnp.float32) * 0.05
    fc1_w = jax.random.normal(ks[4], (128, 32 * 7 * 7), jnp.float32) * 0.02  # [out,in]
    fc1_b = jax.random.normal(ks[5], (128,), jnp.float32) * 0.02
    fc2_w = jax.random.normal(ks[6], (num_classes, 128), jnp.float32) * 0.05
    fc2_b = jax.random.normal(ks[7], (num_classes,), jnp.float32) * 0.05

    # conv weights: [Cout,Cin,kh,kw] -> HWIO -> phase-embedded [4, 16*Cin, Cout]
    w1e = _embed_pool_weights(jnp.transpose(conv1_w, (2, 3, 1, 0)))
    w2e = _embed_pool_weights(jnp.transpose(conv2_w, (2, 3, 1, 0)))

    # fc1: permute input columns from PyTorch (c,h,w) flatten order to our
    # (h,w,c) pooled layout -> no runtime transpose needed.
    wfc1 = fc1_w.reshape(128, 32, 7, 7).transpose(2, 3, 1, 0).reshape(7 * 7 * 32, 128)

    # fc2: [out,in] -> [in,out], pad out-dim to a multiple of 128 (lane-dense store)
    ncp = _round_up(num_classes, 128)
    wfc2 = jnp.pad(fc2_w.T, ((0, 0), (0, ncp - num_classes)))
    bfc2 = jnp.pad(fc2_b, (0, ncp - num_classes))

    return {
        "w1e": w1e.astype(jnp.bfloat16), "b1": conv1_b.reshape(1, 16),
        "w2e": w2e.astype(jnp.bfloat16), "b2": conv2_b.reshape(1, 32),
        "wfc1": wfc1.astype(jnp.bfloat16), "bfc1": fc1_b.reshape(1, 128),
        "wfc2": wfc2.astype(jnp.bfloat16), "bfc2": bfc2.reshape(1, ncp),
    }


# ---------------------------------------------------------------------------
# Forward pass (mirrors SimpleCharCNN.forward)
# ---------------------------------------------------------------------------
def simple_char_cnn_forward(x_nchw, params, *, num_classes):
    B, Cin, H, W = x_nchw.shape
    assert Cin == 1 and H == 28 and W == 28
    x = x_nchw.reshape(B, 28, 28, 1).astype(jnp.bfloat16)      # NCHW, C=1 -> NHWC

    # Conv2d(1,16,3,p=1) + ReLU + MaxPool2d(2), fused
    p1 = patches_4x4_stride2(x)                                # [B*196, 16]
    a1 = conv_pool(p1, params["w1e"], params["b1"])            # [B*196, 16] bf16

    # Conv2d(16,32,3,p=1) + ReLU + MaxPool2d(2), fused (K = 256, lane-dense)
    p2 = patches_4x4_stride2(a1.reshape(B, 14, 14, 16))        # [B*49, 256]
    a2 = conv_pool(p2, params["w2e"], params["b2"])            # [B*49, 32] bf16

    # Flatten (h,w,c) -- free view; fc1 columns were permuted at init to match.
    flat = a2.reshape(B, 7 * 7 * 32)                           # [B, 1568]

    # Linear(1568,128)+ReLU+Linear(128,num_classes), fused; slice off padding.
    logits = mlp(flat, params["wfc1"], params["bfc1"],
                 params["wfc2"], params["bfc2"])               # [B, 128] f32
    return logits[:, :num_classes]


if __name__ == "__main__":
    num_classes = 10
    batch = 2

    key = jax.random.PRNGKey(0)
    k_params, k_x = jax.random.split(key)
    params = init_params(k_params, num_classes)
    x = jax.random.normal(k_x, (batch, 1, 28, 28), jnp.float32)

    fwd = jax.jit(functools.partial(simple_char_cnn_forward, num_classes=num_classes))
    logits = fwd(x, params)
    jax.block_until_ready(logits)

    assert logits.shape == (batch, num_classes), logits.shape
    assert logits.dtype == jnp.float32
    print("KERNEL_OK")
</pallas_src>

<mosaic_0001>
module attributes {stable_mosaic.version = 11 : i64} {
  func.func @_conv_pool_kernel(%arg0: i32, %arg1: memref<400x16xbf16, #tpu.memory_space<vmem>>, %arg2: memref<4x16x16xbf16, #tpu.memory_space<vmem>>, %arg3: memref<1x16xf32, #tpu.memory_space<vmem>>, %arg4: memref<400x16xbf16, #tpu.memory_space<vmem>>) attributes {dimension_semantics = [#tpu.dimension_semantics<parallel>], iteration_bounds = array<i64: 1>, scalar_prefetch = 0 : i64, scratch_operands = 0 : i64, tpu.core_type = #tpu.core_type<tc>, window_params = [{transform_indices = @transform_0, window_bounds = array<i64: 400, 16>}, {pipeline_mode = #tpu.pipeline_mode<synchronous>, transform_indices = @transform_1, window_bounds = array<i64: 4, 16, 16>}, {pipeline_mode = #tpu.pipeline_mode<synchronous>, transform_indices = @transform_2, window_bounds = array<i64: 1, 16>}, {transform_indices = @transform_3, window_bounds = array<i64: 400, 16>}]} {
    %c0 = arith.constant 0 : index
    %c0_0 = arith.constant 0 : index
    %0 = vector.load %arg1[%c0, %c0_0] : memref<400x16xbf16, #tpu.memory_space<vmem>>, vector<400x16xbf16>
    %c0_1 = arith.constant 0 : index
    %c0_2 = arith.constant 0 : index
    %c0_3 = arith.constant 0 : index
    %1 = vector.load %arg2[%c0_1, %c0_2, %c0_3] : memref<4x16x16xbf16, #tpu.memory_space<vmem>>, vector<1x16x16xbf16>
    %2 = vector.shape_cast %1 : vector<1x16x16xbf16> to vector<16x16xbf16>
    %cst = arith.constant dense<0.000000e+00> : vector<400x16xf32>
    %3 = tpu.matmul %0, %2, %cst {dimension_numbers = #tpu.dot_dimension_numbers<[1], [0], [0], [1], [0, 0, 1, 1], [], []>} : vector<400x16xbf16>, vector<16x16xbf16>, vector<400x16xf32> -> vector<400x16xf32>
    %c1 = arith.constant 1 : index
    %c0_4 = arith.constant 0 : index
    %c0_5 = arith.constant 0 : index
    %4 = vector.load %arg2[%c1, %c0_4, %c0_5] : memref<4x16x16xbf16, #tpu.memory_space<vmem>>, vector<1x16x16xbf16>
    %5 = vector.shape_cast %4 : vector<1x16x16xbf16> to vector<16x16xbf16>
    %cst_6 = arith.constant dense<0.000000e+00> : vector<400x16xf32>
    %6 = tpu.matmul %0, %5, %cst_6 {dimension_numbers = #tpu.dot_dimension_numbers<[1], [0], [0], [1], [0, 0, 1, 1], [], []>} : vector<400x16xbf16>, vector<16x16xbf16>, vector<400x16xf32> -> vector<400x16xf32>
    %7 = arith.maximumf %3, %6 : vector<400x16xf32>
    %c2 = arith.constant 2 : index
    %c0_7 = arith.constant 0 : index
    %c0_8 = arith.constant 0 : index
    %8 = vector.load %arg2[%c2, %c0_7, %c0_8] : memref<4x16x16xbf16, #tpu.memory_space<vmem>>, vector<1x16x16xbf16>
    %9 = vector.shape_cast %8 : vector<1x16x16xbf16> to vector<16x16xbf16>
    %cst_9 = arith.constant dense<0.000000e+00> : vector<400x16xf32>
    %10 = tpu.matmul %0, %9, %cst_9 {dimension_numbers = #tpu.dot_dimension_numbers<[1], [0], [0], [1], [0, 0, 1, 1], [], []>} : vector<400x16xbf16>, vector<16x16xbf16>, vector<400x16xf32> -> vector<400x16xf32>
    %11 = arith.maximumf %7, %10 : vector<400x16xf32>
    %c3 = arith.constant 3 : index
    %c0_10 = arith.constant 0 : index
    %c0_11 = arith.constant 0 : index
    %12 = vector.load %arg2[%c3, %c0_10, %c0_11] : memref<4x16x16xbf16, #tpu.memory_space<vmem>>, vector<1x16x16xbf16>
    %13 = vector.shape_cast %12 : vector<1x16x16xbf16> to vector<16x16xbf16>
    %cst_12 = arith.constant dense<0.000000e+00> : vector<400x16xf32>
    %14 = tpu.matmul %0, %13, %cst_12 {dimension_numbers = #tpu.dot_dimension_numbers<[1], [0], [0], [1], [0, 0, 1, 1], [], []>} : vector<400x16xbf16>, vector<16x16xbf16>, vector<400x16xf32> -> vector<400x16xf32>
    %15 = arith.maximumf %11, %14 : vector<400x16xf32>
    %c0_13 = arith.constant 0 : index
    %c0_14 = arith.constant 0 : index
    %16 = vector.load %arg3[%c0_13, %c0_14] : memref<1x16xf32, #tpu.memory_space<vmem>>, vector<1x16xf32>
    %17 = vector.broadcast %16 : vector<1x16xf32> to vector<400x16xf32>
    %18 = arith.addf %15, %17 : vector<400x16xf32>
    %cst_15 = arith.constant 0.000000e+00 : f32
    %19 = vector.broadcast %cst_15 : f32 to vector<400x16xf32>
    %20 = arith.maximumf %18, %19 : vector<400x16xf32>
    %21 = arith.truncf %20 : vector<400x16xf32> to vector<400x16xbf16>
    %c0_16 = arith.constant 0 : index
    %c0_17 = arith.constant 0 : index
    %22 = vector.load %arg4[%c0_16, %c0_17] : memref<400x16xbf16, #tpu.memory_space<vmem>>, vector<400x16xbf16>
    tpu.vector_store %arg4[%c0_16, %c0_17], %21 {strides = array<i32>} : memref<400x16xbf16, #tpu.memory_space<vmem>>, vector<400x16xbf16>,
    return
  }
  func.func @transform_0(%arg0: i32) -> (i32, i32) {
    %c0_i32 = arith.constant 0 : i32
    %c0_i32_0 = arith.constant 0 : i32
    return %arg0, %c0_i32 : i32, i32
  }
  func.func @transform_1(%arg0: i32) -> (i32, i32, i32) {
    %c0_i32 = arith.constant 0 : i32
    %c0_i32_0 = arith.constant 0 : i32
    %c0_i32_1 = arith.constant 0 : i32
    %c0_i32_2 = arith.constant 0 : i32
    return %c0_i32, %c0_i32_0, %c0_i32_1 : i32, i32, i32
  }
  func.func @transform_2(%arg0: i32) -> (i32, i32) {
    %c0_i32 = arith.constant 0 : i32
    %c0_i32_0 = arith.constant 0 : i32
    %c0_i32_1 = arith.constant 0 : i32
    return %c0_i32, %c0_i32_0 : i32, i32
  }
  func.func @transform_3(%arg0: i32) -> (i32, i32) {
    %c0_i32 = arith.constant 0 : i32
    %c0_i32_0 = arith.constant 0 : i32
    return %arg0, %c0_i32 : i32, i32
  }
}

module attributes {stable_mosaic.version = 11 : i64} {
  func.func @_conv_pool_kernel(%arg0: i32, %arg1: memref<112x256xbf16, #tpu.memory_space<vmem>>, %arg2: memref<4x256x32xbf16, #tpu.memory_space<vmem>>, %arg3: memref<1x32xf32, #tpu.memory_space<vmem>>, %arg4: memref<112x32xbf16, #tpu.memory_space<vmem>>) attributes {dimension_semantics = [#tpu.dimension_semantics<parallel>], iteration_bounds = array<i64: 1>, scalar_prefetch = 0 : i64, scratch_operands = 0 : i64, tpu.core_type = #tpu.core_type<tc>, window_params = [{transform_indices = @transform_0, window_bounds = array<i64: 112, 256>}, {pipeline_mode = #tpu.pipeline_mode<synchronous>, transform_indices = @transform_1, window_bounds = array<i64: 4, 256, 32>}, {pipeline_mode = #tpu.pipeline_mode<synchronous>, transform_indices = @transform_2, window_bounds = array<i64: 1, 32>}, {transform_indices = @transform_3, window_bounds = array<i64: 112, 32>}]} {
    %c0 = arith.constant 0 : index
    %c0_0 = arith.constant 0 : index
    %0 = vector.load %arg1[%c0, %c0_0] : memref<112x256xbf16, #tpu.memory_space<vmem>>, vector<112x256xbf16>
    %c0_1 = arith.constant 0 : index
    %c0_2 = arith.constant 0 : index
    %c0_3 = arith.constant 0 : index
    %1 = vector.load %arg2[%c0_1, %c0_2, %c0_3] : memref<4x256x32xbf16, #tpu.memory_space<vmem>>, vector<1x256x32xbf16>
    %2 = vector.shape_cast %1 : vector<1x256x32xbf16> to vector<256x32xbf16>
    %cst = arith.constant dense<0.000000e+00> : vector<112x32xf32>
    %3 = tpu.matmul %0, %2, %cst {dimension_numbers = #tpu.dot_dimension_numbers<[1], [0], [0], [1], [0, 0, 1, 1], [], []>} : vector<112x256xbf16>, vector<256x32xbf16>, vector<112x32xf32> -> vector<112x32xf32>
    %c1 = arith.constant 1 : index
    %c0_4 = arith.constant 0 : index
    %c0_5 = arith.constant 0 : index
    %4 = vector.load %arg2[%c1, %c0_4, %c0_5] : memref<4x256x32xbf16, #tpu.memory_space<vmem>>, vector<1x256x32xbf16>
    %5 = vector.shape_cast %4 : vector<1x256x32xbf16> to vector<256x32xbf16>
    %cst_6 = arith.constant dense<0.000000e+00> : vector<112x32xf32>
    %6 = tpu.matmul %0, %5, %cst_6 {dimension_numbers = #tpu.dot_dimension_numbers<[1], [0], [0], [1], [0, 0, 1, 1], [], []>} : vector<112x256xbf16>, vector<256x32xbf16>, vector<112x32xf32> -> vector<112x32xf32>
    %7 = arith.maximumf %3, %6 : vector<112x32xf32>
    %c2 = arith.constant 2 : index
    %c0_7 = arith.constant 0 : index
    %c0_8 = arith.constant 0 : index
    %8 = vector.load %arg2[%c2, %c0_7, %c0_8] : memref<4x256x32xbf16, #tpu.memory_space<vmem>>, vector<1x256x32xbf16>
    %9 = vector.shape_cast %8 : vector<1x256x32xbf16> to vector<256x32xbf16>
    %cst_9 = arith.constant dense<0.000000e+00> : vector<112x32xf32>
    %10 = tpu.matmul %0, %9, %cst_9 {dimension_numbers = #tpu.dot_dimension_numbers<[1], [0], [0], [1], [0, 0, 1, 1], [], []>} : vector<112x256xbf16>, vector<256x32xbf16>, vector<112x32xf32> -> vector<112x32xf32>
    %11 = arith.maximumf %7, %10 : vector<112x32xf32>
    %c3 = arith.constant 3 : index
    %c0_10 = arith.constant 0 : index
    %c0_11 = arith.constant 0 : index
    %12 = vector.load %arg2[%c3, %c0_10, %c0_11] : memref<4x256x32xbf16, #tpu.memory_space<vmem>>, vector<1x256x32xbf16>
    %13 = vector.shape_cast %12 : vector<1x256x32xbf16> to vector<256x32xbf16>
    %cst_12 = arith.constant dense<0.000000e+00> : vector<112x32xf32>
    %14 = tpu.matmul %0, %13, %cst_12 {dimension_numbers = #tpu.dot_dimension_numbers<[1], [0], [0], [1], [0, 0, 1, 1], [], []>} : vector<112x256xbf16>, vector<256x32xbf16>, vector<112x32xf32> -> vector<112x32xf32>
    %15 = arith.maximumf %11, %14 : vector<112x32xf32>
    %c0_13 = arith.constant 0 : index
    %c0_14 = arith.constant 0 : index
    %16 = vector.load %arg3[%c0_13, %c0_14] : memref<1x32xf32, #tpu.memory_space<vmem>>, vector<1x32xf32>
    %17 = vector.broadcast %16 : vector<1x32xf32> to vector<112x32xf32>
    %18 = arith.addf %15, %17 : vector<112x32xf32>
    %cst_15 = arith.constant 0.000000e+00 : f32
    %19 = vector.broadcast %cst_15 : f32 to vector<112x32xf32>
    %20 = arith.maximumf %18, %19 : vector<112x32xf32>
    %21 = arith.truncf %20 : vector<112x32xf32> to vector<112x32xbf16>
    %c0_16 = arith.constant 0 : index
    %c0_17 = arith.constant 0 : index
    %22 = vector.load %arg4[%c0_16, %c0_17] : memref<112x32xbf16, #tpu.memory_space<vmem>>, vector<112x32xbf16>
    tpu.vector_store %arg4[%c0_16, %c0_17], %21 {strides = array<i32>} : memref<112x32xbf16, #tpu.memory_space<vmem>>, vector<112x32xbf16>,
    return
  }
  func.func @transform_0(%arg0: i32) -> (i32, i32) {
    %c0_i32 = arith.constant 0 : i32
    %c0_i32_0 = arith.constant 0 : i32
    return %arg0, %c0_i32 : i32, i32
  }
  func.func @transform_1(%arg0: i32) -> (i32, i32, i32) {
    %c0_i32 = arith.constant 0 : i32
    %c0_i32_0 = arith.constant 0 : i32
    %c0_i32_1 = arith.constant 0 : i32
    %c0_i32_2 = arith.constant 0 : i32
    return %c0_i32, %c0_i32_0, %c0_i32_1 : i32, i32, i32
  }
  func.func @transform_2(%arg0: i32) -> (i32, i32) {
    %c0_i32 = arith.constant 0 : i32
    %c0_i32_0 = arith.constant 0 : i32
    %c0_i32_1 = arith.constant 0 : i32
    return %c0_i32, %c0_i32_0 : i32, i32
  }
  func.func @transform_3(%arg0: i32) -> (i32, i32) {
    %c0_i32 = arith.constant 0 : i32
    %c0_i32_0 = arith.constant 0 : i32
    return %arg0, %c0_i32 : i32, i32
  }
}

module attributes {stable_mosaic.version = 11 : i64} {
  func.func @_mlp_kernel(%arg0: i32, %arg1: memref<16x1568xbf16, #tpu.memory_space<vmem>>, %arg2: memref<1568x128xbf16, #tpu.memory_space<vmem>>, %arg3: memref<1x128xf32, #tpu.memory_space<vmem>>, %arg4: memref<128x128xbf16, #tpu.memory_space<vmem>>, %arg5: memref<1x128xf32, #tpu.memory_space<vmem>>, %arg6: memref<16x128xf32, #tpu.memory_space<vmem>>) attributes {dimension_semantics = [#tpu.dimension_semantics<parallel>], iteration_bounds = array<i64: 1>, scalar_prefetch = 0 : i64, scratch_operands = 0 : i64, tpu.core_type = #tpu.core_type<tc>, window_params = [{transform_indices = @transform_0, window_bounds = array<i64: 16, 1568>}, {pipeline_mode = #tpu.pipeline_mode<synchronous>, transform_indices = @transform_1, window_bounds = array<i64: 1568, 128>}, {pipeline_mode = #tpu.pipeline_mode<synchronous>, transform_indices = @transform_2, window_bounds = array<i64: 1, 128>}, {pipeline_mode = #tpu.pipeline_mode<synchronous>, transform_indices = @transform_3, window_bounds = array<i64: 128, 128>}, {pipeline_mode = #tpu.pipeline_mode<synchronous>, transform_indices = @transform_4, window_bounds = array<i64: 1, 128>}, {transform_indices = @transform_5, window_bounds = array<i64: 16, 128>}]} {
    %c0 = arith.constant 0 : index
    %c0_0 = arith.constant 0 : index
    %0 = vector.load %arg1[%c0, %c0_0] : memref<16x1568xbf16, #tpu.memory_space<vmem>>, vector<16x1568xbf16>
    %c0_1 = arith.constant 0 : index
    %c0_2 = arith.constant 0 : index
    %1 = vector.load %arg2[%c0_1, %c0_2] : memref<1568x128xbf16, #tpu.memory_space<vmem>>, vector<1568x128xbf16>
    %cst = arith.constant dense<0.000000e+00> : vector<16x128xf32>
    %2 = tpu.matmul %0, %1, %cst {dimension_numbers = #tpu.dot_dimension_numbers<[1], [0], [0], [1], [0, 0, 1, 1], [], []>} : vector<16x1568xbf16>, vector<1568x128xbf16>, vector<16x128xf32> -> vector<16x128xf32>
    %c0_3 = arith.constant 0 : index
    %c0_4 = arith.constant 0 : index
    %3 = vector.load %arg3[%c0_3, %c0_4] : memref<1x128xf32, #tpu.memory_space<vmem>>, vector<1x128xf32>
    %4 = vector.broadcast %3 : vector<1x128xf32> to vector<16x128xf32>
    %5 = arith.addf %2, %4 : vector<16x128xf32>
    %cst_5 = arith.constant 0.000000e+00 : f32
    %6 = vector.broadcast %cst_5 : f32 to vector<16x128xf32>
    %7 = arith.maximumf %5, %6 : vector<16x128xf32>
    %8 = arith.truncf %7 : vector<16x128xf32> to vector<16x128xbf16>
    %c0_6 = arith.constant 0 : index
    %c0_7 = arith.constant 0 : index
    %9 = vector.load %arg4[%c0_6, %c0_7] : memref<128x128xbf16, #tpu.memory_space<vmem>>, vector<128x128xbf16>
    %cst_8 = arith.constant dense<0.000000e+00> : vector<16x128xf32>
    %10 = tpu.matmul %8, %9, %cst_8 {dimension_numbers = #tpu.dot_dimension_numbers<[1], [0], [0], [1], [0, 0, 1, 1], [], []>} : vector<16x128xbf16>, vector<128x128xbf16>, vector<16x128xf32> -> vector<16x128xf32>
    %c0_9 = arith.constant 0 : index
    %c0_10 = arith.constant 0 : index
    %11 = vector.load %arg5[%c0_9, %c0_10] : memref<1x128xf32, #tpu.memory_space<vmem>>, vector<1x128xf32>
    %12 = vector.broadcast %11 : vector<1x128xf32> to vector<16x128xf32>
    %13 = arith.addf %10, %12 : vector<16x128xf32>
    %c0_11 = arith.constant 0 : index
    %c0_12 = arith.constant 0 : index
    %14 = vector.load %arg6[%c0_11, %c0_12] : memref<16x128xf32, #tpu.memory_space<vmem>>, vector<16x128xf32>
    tpu.vector_store %arg6[%c0_11, %c0_12], %13 {strides = array<i32>} : memref<16x128xf32, #tpu.memory_space<vmem>>, vector<16x128xf32>,
    return
  }
  func.func @transform_0(%arg0: i32) -> (i32, i32) {
    %c0_i32 = arith.constant 0 : i32
    %c0_i32_0 = arith.constant 0 : i32
    return %arg0, %c0_i32 : i32, i32
  }
  func.func @transform_1(%arg0: i32) -> (i32, i32) {
    %c0_i32 = arith.constant 0 : i32
    %c0_i32_0 = arith.constant 0 : i32
    %c0_i32_1 = arith.constant 0 : i32
    return %c0_i32, %c0_i32_0 : i32, i32
  }
  func.func @transform_2(%arg0: i32) -> (i32, i32) {
    %c0_i32 = arith.constant 0 : i32
    %c0_i32_0 = arith.constant 0 : i32
    %c0_i32_1 = arith.constant 0 : i32
    return %c0_i32, %c0_i32_0 : i32, i32
  }
  func.func @transform_3(%arg0: i32) -> (i32, i32) {
    %c0_i32 = arith.constant 0 : i32
    %c0_i32_0 = arith.constant 0 : i32
    %c0_i32_1 = arith.constant 0 : i32
    return %c0_i32, %c0_i32_0 : i32, i32
  }
  func.func @transform_4(%arg0: i32) -> (i32, i32) {
    %c0_i32 = arith.constant 0 : i32
    %c0_i32_0 = arith.constant 0 : i32
    %c0_i32_1 = arith.constant 0 : i32
    return %c0_i32, %c0_i32_0 : i32, i32
  }
  func.func @transform_5(%arg0: i32) -> (i32, i32) {
    %c0_i32 = arith.constant 0 : i32
    %c0_i32_0 = arith.constant 0 : i32
    return %arg0, %c0_i32 : i32, i32
  }
}

</mosaic_0001>

<bundles_post_ra>
// kernel: simple_char_cnn_forward.3
= control target key start
LH: loop header
LB: loop body
LE: loop exit
PB: predicated region body
PF: predicated region fallthrough
CT: control target
= control target key end

     0   :  { %v2524_v0 = vmov 0.0   ;;  %vm2525_vm0 = vmmov 0   ;;  %vm198_vm1 = vcmask 130048   ;;  %vm1690_vm2 = vcmask 125952   ;;  %s3792_s1 = inlined_call_operand.vmem [shape: bf16[4,16,16], index: 1, kind: input, shape index: {}]   ;;  %s3793_s0 = inlined_call_operand.vmem [shape: bf16[400,16], index: 0, kind: input, shape index: {}]   ;;  %s3794_s2 = inlined_call_operand.vmem [shape: f32[1,16], index: 2, kind: input, shape index: {}]   ;;  %s3795_s3 = inlined_call_operand.vmem [shape: bf16[400,16], index: 3, kind: output, shape index: {}]  }
   0x1   :  { %2085 = vmatprep.subr.bf16.mxu0 %v2524_v0  ;;  %2187 = vmatprep.subr.bf16.mxu1 %v2524_v0  ;;  %v2495_v1 = vld [vmem:[%s3792_s1] sm:$0xff]   ;;  %v2496_v2 = vld [vmem:[%s3792_s1 + $0x8] sm:$0xff]   ;;  %v2498_v4 = vld [vmem:[%s3792_s1 + $0x10] sm:$0xff]  }
   0x2   :  { %2087 = vmatprep.mubr.msk.bf16.mxu0 %vm2525_vm0, %v2524_v0  ;;  %2189 = vmatprep.mubr.msk.bf16.mxu1 %vm2525_vm0, %v2524_v0  ;;  %v2561_v3 = vld [vmem:[%s3793_s0] sm:$0xff]   ;;  %v2499_v5 = vld [vmem:[%s3792_s1 + $0x18] sm:$0xff]   ;;  %v2582_v6 = vld [vmem:[%s3793_s0 + $0x8] sm:$0xff]  }
   0x3   :  { %2086 = vmatpush3.bf16.msra.mxu0 %v2495_v1  ;;  %2188 = vmatpush3.bf16.msra.mxu1 %v2496_v2  ;;  %v2595_v7 = vld [vmem:[%s3793_s0 + $0x10] sm:$0xff]   ;;  %v2608_v8 = vld [vmem:[%s3793_s0 + $0x18] sm:$0xff]   ;;  %v2621_v9 = vld [vmem:[%s3793_s0 + $0x20] sm:$0xff]  }
   0x4   :  { %2289 = vmatprep.subr.bf16.mxu0 %v2524_v0  ;;  %2391 = vmatprep.subr.bf16.mxu1 %v2524_v0  ;;  %v2634_v10 = vld [vmem:[%s3793_s0 + $0x28] sm:$0xff]   ;;  %v2647_v11 = vld [vmem:[%s3793_s0 + $0x30] sm:$0xff]   ;;  %v2660_v12 = vld [vmem:[%s3793_s0 + $0x38] sm:$0xff]  }
   0x5   :  { %v2673_v13 = vld [vmem:[%s3793_s0 + $0x40] sm:$0xff]   ;;  %v2686_v14 = vld [vmem:[%s3793_s0 + $0x48] sm:$0xff]   ;;  %v2699_v15 = vld [vmem:[%s3793_s0 + $0x50] sm:$0xff]  }
   0x6   :  { %2088 = vmatmul.mubr.msk.bf16.vlgmr.msra.gmra.mxu0 %vm198_vm1, %v2561_v3  ;;  %2190 = vmatmul.mubr.msk.bf16.vlgmr.msra.gmra.mxu1 %vm198_vm1, %v2561_v3  ;;  %v2712_v16 = vld [vmem:[%s3793_s0 + $0x58] sm:$0xff]   ;;  %v2725_v17 = vld [vmem:[%s3793_s0 + $0x60] sm:$0xff]   ;;  %v2738_v18 = vld [vmem:[%s3793_s0 + $0x68] sm:$0xff]  }
   0x7   :  { %2290 = vmatpush3.bf16.msra.mxu0 %v2498_v4  ;;  %2392 = vmatpush3.bf16.msra.mxu1 %v2499_v5  ;;  %v2751_v19 = vld [vmem:[%s3793_s0 + $0x70] sm:$0xff]   ;;  %v2764_v20 = vld [vmem:[%s3793_s0 + $0x78] sm:$0xff]   ;;  %v2777_v21 = vld [vmem:[%s3793_s0 + $0x80] sm:$0xff]  }
   0x8   :  { %2091 = vmatprep.mubr.msk.bf16.mxu0 %vm2525_vm0, %v2524_v0  ;;  %2193 = vmatprep.mubr.msk.bf16.mxu1 %vm2525_vm0, %v2524_v0  ;;  %v2790_v22 = vld [vmem:[%s3793_s0 + $0x88] sm:$0xff]   ;;  %v2803_v23 = vld [vmem:[%s3793_s0 + $0x90] sm:$0xff]   ;;  %v2816_v24 = vld [vmem:[%s3793_s0 + $0x98] sm:$0xff]  }
   0x9   :  { %v2829_v25 = vld [vmem:[%s3793_s0 + $0xa0] sm:$0xff]   ;;  %v2842_v26 = vld [vmem:[%s3793_s0 + $0xa8] sm:$0xff]   ;;  %v2855_v27 = vld [vmem:[%s3793_s0 + $0xb0] sm:$0xff]  }
   0xa   :  { %v2868_v28 = vld [vmem:[%s3793_s0 + $0xb8] sm:$0xff]   ;;  %v2881_v29 = vld [vmem:[%s3793_s0 + $0xc0] sm:$0xff]  }
   0xe   :  { %2092 = vmatmul.mubr.msk.bf16.gmra.mxu0 %vm198_vm1, %v2582_v6  ;;  %2194 = vmatmul.mubr.msk.bf16.gmra.mxu1 %vm198_vm1, %v2582_v6 }
   0xf   :  { %2095 = vmatprep.mubr.msk.bf16.mxu0 %vm2525_vm0, %v2524_v0  ;;  %2197 = vmatprep.mubr.msk.bf16.mxu1 %vm2525_vm0, %v2524_v0 }
  0x16   :  { %2096 = vmatmul.mubr.msk.bf16.gmra.mxu0 %vm198_vm1, %v2595_v7  ;;  %2198 = vmatmul.mubr.msk.bf16.gmra.mxu1 %vm198_vm1, %v2595_v7 }
  0x17   :  { %2099 = vmatprep.mubr.msk.bf16.mxu0 %vm2525_vm0, %v2524_v0  ;;  %2201 = vmatprep.mubr.msk.bf16.mxu1 %vm2525_vm0, %v2524_v0 }
  0x1e   :  { %2100 = vmatmul.mubr.msk.bf16.gmra.mxu0 %vm198_vm1, %v2608_v8  ;;  %2202 = vmatmul.mubr.msk.bf16.gmra.mxu1 %vm198_vm1, %v2608_v8 }
  0x1f   :  { %2103 = vmatprep.mubr.msk.bf16.mxu0 %vm2525_vm0, %v2524_v0  ;;  %2205 = vmatprep.mubr.msk.bf16.mxu1 %vm2525_vm0, %v2524_v0 }
  0x26   :  { %2104 = vmatmul.mubr.msk.bf16.gmra.mxu0 %vm198_vm1, %v2621_v9  ;;  %2206 = vmatmul.mubr.msk.bf16.gmra.mxu1 %vm198_vm1, %v2621_v9 }
  0x27   :  { %2107 = vmatprep.mubr.msk.bf16.mxu0 %vm2525_vm0, %v2524_v0  ;;  %2209 = vmatprep.mubr.msk.bf16.mxu1 %vm2525_vm0, %v2524_v0 }
  0x2e   :  { %2108 = vmatmul.mubr.msk.bf16.gmra.mxu0 %vm198_vm1, %v2634_v10  ;;  %2210 = vmatmul.mubr.msk.bf16.gmra.mxu1 %vm198_vm1, %v2634_v10 }
  0x2f   :  { %2111 = vmatprep.mubr.msk.bf16.mxu0 %vm2525_vm0, %v2524_v0  ;;  %2213 = vmatprep.mubr.msk.bf16.mxu1 %vm2525_vm0, %v2524_v0 }
  0x36   :  { %2112 = vmatmul.mubr.msk.bf16.gmra.mxu0 %vm198_vm1, %v2647_v11  ;;  %2214 = vmatmul.mubr.msk.bf16.gmra.mxu1 %vm198_vm1, %v2647_v11 }
  0x37   :  { %2115 = vmatprep.mubr.msk.bf16.mxu0 %vm2525_vm0, %v2524_v0  ;;  %2217 = vmatprep.mubr.msk.bf16.mxu1 %vm2525_vm0, %v2524_v0 }
  0x3e   :  { %2116 = vmatmul.mubr.msk.bf16.gmra.mxu0 %vm198_vm1, %v2660_v12  ;;  %2218 = vmatmul.mubr.msk.bf16.gmra.mxu1 %vm198_vm1, %v2660_v12 }
  0x3f   :  { %2119 = vmatprep.mubr.msk.bf16.mxu0 %vm2525_vm0, %v2524_v0  ;;  %2221 = vmatprep.mubr.msk.bf16.mxu1 %vm2525_vm0, %v2524_v0 }
  0x46   :  { %2120 = vmatmul.mubr.msk.bf16.gmra.mxu0 %vm198_vm1, %v2673_v13  ;;  %2222 = vmatmul.mubr.msk.bf16.gmra.mxu1 %vm198_vm1, %v2673_v13 }
  0x47   :  { %2123 = vmatprep.mubr.msk.bf16.mxu0 %vm2525_vm0, %v2524_v0  ;;  %2225 = vmatprep.mubr.msk.bf16.mxu1 %vm2525_vm0, %v2524_v0 }
  0x4e   :  { %2124 = vmatmul.mubr.msk.bf16.gmra.mxu0 %vm198_vm1, %v2686_v14  ;;  %2226 = vmatmul.mubr.msk.bf16.gmra.mxu1 %vm198_vm1, %v2686_v14 }
  0x4f   :  { %2127 = vmatprep.mubr.msk.bf16.mxu0 %vm2525_vm0, %v2524_v0  ;;  %2229 = vmatprep.mubr.msk.bf16.mxu1 %vm2525_vm0, %v2524_v0 }
  0x56   :  { %2128 = vmatmul.mubr.msk.bf16.gmra.mxu0 %vm198_vm1, %v2699_v15  ;;  %2230 = vmatmul.mubr.msk.bf16.gmra.mxu1 %vm198_vm1, %v2699_v15 }
  0x57   :  { %2131 = vmatprep.mubr.msk.bf16.mxu0 %vm2525_vm0, %v2524_v0  ;;  %2233 = vmatprep.mubr.msk.bf16.mxu1 %vm2525_vm0, %v2524_v0 }
  0x5e   :  { %2132 = vmatmul.mubr.msk.bf16.gmra.mxu0 %vm198_vm1, %v2712_v16  ;;  %2234 = vmatmul.mubr.msk.bf16.gmra.mxu1 %vm198_vm1, %v2712_v16 }
  0x5f   :  { %2135 = vmatprep.mubr.msk.bf16.mxu0 %vm2525_vm0, %v2524_v0  ;;  %2237 = vmatprep.mubr.msk.bf16.mxu1 %vm2525_vm0, %v2524_v0 }
  0x66   :  { %2136 = vmatmul.mubr.msk.bf16.gmra.mxu0 %vm198_vm1, %v2725_v17  ;;  %2238 = vmatmul.mubr.msk.bf16.gmra.mxu1 %vm198_vm1, %v2725_v17 }
  0x67   :  { %2139 = vmatprep.mubr.msk.bf16.mxu0 %vm2525_vm0, %v2524_v0  ;;  %2241 = vmatprep.mubr.msk.bf16.mxu1 %vm2525_vm0, %v2524_v0 }
  0x6e   :  { %2140 = vmatmul.mubr.msk.bf16.gmra.mxu0 %vm198_vm1, %v2738_v18  ;;  %2242 = vmatmul.mubr.msk.bf16.gmra.mxu1 %vm198_vm1, %v2738_v18 }
  0x6f   :  { %2143 = vmatprep.mubr.msk.bf16.mxu0 %vm2525_vm0, %v2524_v0  ;;  %2245 = vmatprep.mubr.msk.bf16.mxu1 %vm2525_vm0, %v2524_v0 }
  0x76   :  { %2144 = vmatmul.mubr.msk.bf16.gmra.mxu0 %vm198_vm1, %v2751_v19  ;;  %2246 = vmatmul.mubr.msk.bf16.gmra.mxu1 %vm198_vm1, %v2751_v19 }
  0x77   :  { %2147 = vmatprep.mubr.msk.bf16.mxu0 %vm2525_vm0, %v2524_v0  ;;  %2249 = vmatprep.mubr.msk.bf16.mxu1 %vm2525_vm0, %v2524_v0 }
  0x7e   :  { %2148 = vmatmul.mubr.msk.bf16.gmra.mxu0 %vm198_vm1, %v2764_v20  ;;  %2250 = vmatmul.mubr.msk.bf16.gmra.mxu1 %vm198_vm1, %v2764_v20 }
  0x7f   :  { %2151 = vmatprep.mubr.msk.bf16.mxu0 %vm2525_vm0, %v2524_v0  ;;  %2253 = vmatprep.mubr.msk.bf16.mxu1 %vm2525_vm0, %v2524_v0 }
  0x86   :  { %2152 = vmatmul.mubr.msk.bf16.gmra.mxu0 %vm198_vm1, %v2777_v21  ;;  %2254 = vmatmul.mubr.msk.bf16.gmra.mxu1 %vm198_vm1, %v2777_v21 }
  0x87   :  { %2155 = vmatprep.mubr.msk.bf16.mxu0 %vm2525_vm0, %v2524_v0  ;;  %2257 = vmatprep.mubr.msk.bf16.mxu1 %vm2525_vm0, %v2524_v0 }
  0x8e   :  { %2156 = vmatmul.mubr.msk.bf16.gmra.mxu0 %vm198_vm1, %v2790_v22  ;;  %2258 = vmatmul.mubr.msk.bf16.gmra.mxu1 %vm198_vm1, %v2790_v22 }
  0x8f   :  { %2159 = vmatprep.mubr.msk.bf16.mxu0 %vm2525_vm0, %v2524_v0  ;;  %2261 = vmatprep.mubr.msk.bf16.mxu1 %vm2525_vm0, %v2524_v0 }
  0x96   :  { %2160 = vmatmul.mubr.msk.bf16.gmra.mxu0 %vm198_vm1, %v2803_v23  ;;  %2262 = vmatmul.mubr.msk.bf16.gmra.mxu1 %vm198_vm1, %v2803_v23 }
  0x97   :  { %2163 = vmatprep.mubr.msk.bf16.mxu0 %vm2525_vm0, %v2524_v0  ;;  %2265 = vmatprep.mubr.msk.bf16.mxu1 %vm2525_vm0, %v2524_v0 }
  0x9e   :  { %2164 = vmatmul.mubr.msk.bf16.gmra.mxu0 %vm198_vm1, %v2816_v24  ;;  %2266 = vmatmul.mubr.msk.bf16.gmra.mxu1 %vm198_vm1, %v2816_v24 }
  0x9f   :  { %2167 = vmatprep.mubr.msk.bf16.mxu0 %vm2525_vm0, %v2524_v0  ;;  %2269 = vmatprep.mubr.msk.bf16.mxu1 %vm2525_vm0, %v2524_v0 }
  0xa6   :  { %2168 = vmatmul.mubr.msk.bf16.gmra.mxu0 %vm198_vm1, %v2829_v25  ;;  %2270 = vmatmul.mubr.msk.bf16.gmra.mxu1 %vm198_vm1, %v2829_v25 }
  0xa7   :  { %2171 = vmatprep.mubr.msk.bf16.mxu0 %vm2525_vm0, %v2524_v0  ;;  %2273 = vmatprep.mubr.msk.bf16.mxu1 %vm2525_vm0, %v2524_v0 }
  0xae   :  { %2172 = vmatmul.mubr.msk.bf16.gmra.mxu0 %vm198_vm1, %v2842_v26  ;;  %2274 = vmatmul.mubr.msk.bf16.gmra.mxu1 %vm198_vm1, %v2842_v26 }
  0xaf   :  { %2175 = vmatprep.mubr.msk.bf16.mxu0 %vm2525_vm0, %v2524_v0  ;;  %2277 = vmatprep.mubr.msk.bf16.mxu1 %vm2525_vm0, %v2524_v0 }
  0xb6   :  { %2176 = vmatmul.mubr.msk.bf16.gmra.mxu0 %vm198_vm1, %v2855_v27  ;;  %2278 = vmatmul.mubr.msk.bf16.gmra.mxu1 %vm198_vm1, %v2855_v27 }
  0xb7   :  { %2179 = vmatprep.mubr.msk.bf16.mxu0 %vm2525_vm0, %v2524_v0  ;;  %2281 = vmatprep.mubr.msk.bf16.mxu1 %vm2525_vm0, %v2524_v0 }
  0xbe   :  { %2180 = vmatmul.mubr.msk.bf16.gmra.mxu0 %vm198_vm1, %v2868_v28  ;;  %2282 = vmatmul.mubr.msk.bf16.gmra.mxu1 %vm198_vm1, %v2868_v28 }
  0xbf   :  { %2183 = vmatprep.mubr.msk.bf16.mxu0 %vm2525_vm0, %v2524_v0  ;;  %2285 = vmatprep.mubr.msk.bf16.mxu1 %vm2525_vm0, %v2524_v0 }
  0xc6   :  { %v2883_v30 = vpop.f32.mrf.mxu0  ;;  %2184 = vmatmul.mubr.msk.bf16.gmra.mxu0 %vm198_vm1, %v2881_v29  ;;  %v2887_v31 = vpop.f32.mrf.mxu1  ;;  %2286 = vmatmul.mubr.msk.bf16.gmra.mxu1 %vm198_vm1, %v2881_v29 }
  0xc7   :  { %2291 = vmatprep.mubr.msk.bf16.mxu0 %vm2525_vm0, %v2524_v0  ;;  %2393 = vmatprep.mubr.msk.bf16.mxu1 %vm2525_vm0, %v2524_v0 }
  0xc8   :  { %v2089_v33 = vpop.f32.mrf.mxu0  ;;  %v2191_v34 = vpop.f32.mrf.mxu1 }
  0xca   :  { %v2897_v35 = vpop.f32.mrf.mxu0  ;;  %v2899_v36 = vpop.f32.mrf.mxu1 }
  0xcc   :  { %v2090_v38 = vpop.f32.mrf.mxu0  ;;  %v2192_v39 = vpop.f32.mrf.mxu1 }
  0xce   :  { %v2903_v40 = vpop.f32.mrf.mxu0  ;;  %2292 = vmatmul.mubr.msk.bf16.vlgmr.msra.gmra.mxu0 %vm198_vm1, %v2561_v3  ;;  %v2907_v41 = vpop.f32.mrf.mxu1  ;;  %2394 = vmatmul.mubr.msk.bf16.vlgmr.msra.gmra.mxu1 %vm198_vm1, %v2561_v3 }
  0xcf   :  { %2295 = vmatprep.mubr.msk.bf16.mxu0 %vm2525_vm0, %v2524_v0  ;;  %2397 = vmatprep.mubr.msk.bf16.mxu1 %vm2525_vm0, %v2524_v0 }
  0xd0   :  { %v2093_v43 = vpop.f32.mrf.mxu0  ;;  %v2195_v44 = vpop.f32.mrf.mxu1 }
  0xd2   :  { %v2917_v45 = vpop.f32.mrf.mxu0  ;;  %v2919_v46 = vpop.f32.mrf.mxu1 }
  0xd4   :  { %v2094_v48 = vpop.f32.mrf.mxu0  ;;  %v2196_v49 = vpop.f32.mrf.mxu1 }
  0xd6   :  { %v2923_v50 = vpop.f32.mrf.mxu0  ;;  %2296 = vmatmul.mubr.msk.bf16.gmra.mxu0 %vm198_vm1, %v2582_v6  ;;  %v2927_v51 = vpop.f32.mrf.mxu1  ;;  %2398 = vmatmul.mubr.msk.bf16.gmra.mxu1 %vm198_vm1, %v2582_v6 }
  0xd7   :  { %2299 = vmatprep.mubr.msk.bf16.mxu0 %vm2525_vm0, %v2524_v0  ;;  %2401 = vmatprep.mubr.msk.bf16.mxu1 %vm2525_vm0, %v2524_v0 }
  0xd8   :  { %v2097_v53 = vpop.f32.mrf.mxu0  ;;  %v2199_v54 = vpop.f32.mrf.mxu1 }
  0xda   :  { %v2937_v55 = vpop.f32.mrf.mxu0  ;;  %v2939_v56 = vpop.f32.mrf.mxu1 }
  0xdc   :  { %v2098_v58 = vpop.f32.mrf.mxu0  ;;  %v2200_v59 = vpop.f32.mrf.mxu1 }
  0xde   :  { %v2943_v60 = vpop.f32.mrf.mxu0  ;;  %2300 = vmatmul.mubr.msk.bf16.gmra.mxu0 %vm198_vm1, %v2595_v7  ;;  %v2947_v61 = vpop.f32.mrf.mxu1  ;;  %2402 = vmatmul.mubr.msk.bf16.gmra.mxu1 %vm198_vm1, %v2595_v7 }
  0xdf   :  { %2303 = vmatprep.mubr.msk.bf16.mxu0 %vm2525_vm0, %v2524_v0  ;;  %2405 = vmatprep.mubr.msk.bf16.mxu1 %vm2525_vm0, %v2524_v0 }
  0xe0   :  { %v2101_v63 = vpop.f32.mrf.mxu0  ;;  %v2203_v1 = vpop.f32.mrf.mxu1 }
  0xe2   :  { %v2957_v2 = vpop.f32.mrf.mxu0  ;;  %v2959_v3 = vpop.f32.mrf.mxu1 }
  0xe4   :  { %v2102_v5 = vpop.f32.mrf.mxu0  ;;  %v2204_v6 = vpop.f32.mrf.mxu1 }
  0xe6   :  { %v2963_v7 = vpop.f32.mrf.mxu0  ;;  %2304 = vmatmul.mubr.msk.bf16.gmra.mxu0 %vm198_vm1, %v2608_v8  ;;  %v2967_v33 = vpop.f32.mrf.mxu1  ;;  %2406 = vmatmul.mubr.msk.bf16.gmra.mxu1 %vm198_vm1, %v2608_v8 }
  0xe7   :  { %2307 = vmatprep.mubr.msk.bf16.mxu0 %vm2525_vm0, %v2524_v0  ;;  %2409 = vmatprep.mubr.msk.bf16.mxu1 %vm2525_vm0, %v2524_v0 }
  0xe8   :  { %v2105_v38 = vpop.f32.mrf.mxu0  ;;  %v2207_v39 = vpop.f32.mrf.mxu1 }
  0xea   :  { %v2977_v43 = vpop.f32.mrf.mxu0  ;;  %v2979_v44 = vpop.f32.mrf.mxu1 }
  0xec   :  { %v2106_v49 = vpop.f32.mrf.mxu0  ;;  %v2208_v8 = vpop.f32.mrf.mxu1 }
  0xee   :  { %v2983_v53 = vpop.f32.mrf.mxu0  ;;  %2308 = vmatmul.mubr.msk.bf16.gmra.mxu0 %vm198_vm1, %v2621_v9  ;;  %v2987_v54 = vpop.f32.mrf.mxu1  ;;  %2410 = vmatmul.mubr.msk.bf16.gmra.mxu1 %vm198_vm1, %v2621_v9 }
  0xef   :  { %2311 = vmatprep.mubr.msk.bf16.mxu0 %vm2525_vm0, %v2524_v0  ;;  %2413 = vmatprep.mubr.msk.bf16.mxu1 %vm2525_vm0, %v2524_v0 }
  0xf0   :  { %v2109_v59 = vpop.f32.mrf.mxu0  ;;  %v2211_v63 = vpop.f32.mrf.mxu1 }
  0xf2   :  { %v2997_v1 = vpop.f32.mrf.mxu0  ;;  %v2999_v5 = vpop.f32.mrf.mxu1 }
  0xf4   :  { %v2110_v38 = vpop.f32.mrf.mxu0  ;;  %v2212_v9 = vpop.f32.mrf.mxu1 }
  0xf6   :  { %v3003_v39 = vpop.f32.mrf.mxu0  ;;  %2312 = vmatmul.mubr.msk.bf16.gmra.mxu0 %vm198_vm1, %v2634_v10  ;;  %v3007_v49 = vpop.f32.mrf.mxu1  ;;  %2414 = vmatmul.mubr.msk.bf16.gmra.mxu1 %vm198_vm1, %v2634_v10 }
  0xf7   :  { %2315 = vmatprep.mubr.msk.bf16.mxu0 %vm2525_vm0, %v2524_v0  ;;  %2417 = vmatprep.mubr.msk.bf16.mxu1 %vm2525_vm0, %v2524_v0 }
  0xf8   :  { %v2113_v59 = vpop.f32.mrf.mxu0  ;;  %v2215_v63 = vpop.f32.mrf.mxu1 }
  0xfa   :  { %v3017_v38 = vpop.f32.mrf.mxu0  ;;  %v3019_v9 = vpop.f32.mrf.mxu1 }
  0xfc   :  { %v2114_v58 = vpop.f32.mrf.mxu0  ;;  %v2216_v10 = vpop.f32.mrf.mxu1 }
  0xfe   :  { %v3023_v48 = vpop.f32.mrf.mxu0  ;;  %2316 = vmatmul.mubr.msk.bf16.gmra.mxu0 %vm198_vm1, %v2647_v11  ;;  %v3027_v8 = vpop.f32.mrf.mxu1  ;;  %2418 = vmatmul.mubr.msk.bf16.gmra.mxu1 %vm198_vm1, %v2647_v11 }
  0xff   :  { %2319 = vmatprep.mubr.msk.bf16.mxu0 %vm2525_vm0, %v2524_v0  ;;  %2421 = vmatprep.mubr.msk.bf16.mxu1 %vm2525_vm0, %v2524_v0 }
 0x100   :  { %v2117_v63 = vpop.f32.mrf.mxu0  ;;  %v2219_v58 = vpop.f32.mrf.mxu1 }
 0x102   :  { %v3037_v10 = vpop.f32.mrf.mxu0  ;;  %v3039_v6 = vpop.f32.mrf.mxu1 }
 0x104   :  { %v2118_v4 = vpop.f32.mrf.mxu0  ;;  %v2220_v11 = vpop.f32.mrf.mxu1 }
 0x106   :  { %v3043_v62 = vpop.f32.mrf.mxu0  ;;  %2320 = vmatmul.mubr.msk.bf16.gmra.mxu0 %vm198_vm1, %v2660_v12  ;;  %v3047_v59 = vpop.f32.mrf.mxu1  ;;  %2422 = vmatmul.mubr.msk.bf16.gmra.mxu1 %vm198_vm1, %v2660_v12 }
 0x107   :  { %2323 = vmatprep.mubr.msk.bf16.mxu0 %vm2525_vm0, %v2524_v0  ;;  %2425 = vmatprep.mubr.msk.bf16.mxu1 %vm2525_vm0, %v2524_v0 }
 0x108   :  { %v2121_v58 = vpop.f32.mrf.mxu0  ;;  %v2223_v4 = vpop.f32.mrf.mxu1 }
 0x10a   :  { %v3057_v11 = vpop.f32.mrf.mxu0  ;;  %v3059_v34 = vpop.f32.mrf.mxu1 }
 0x10c   :  { %v2122_v52 = vpop.f32.mrf.mxu0  ;;  %v2224_v12 = vpop.f32.mrf.mxu1 }
 0x10e   :  { %v3063_v47 = vpop.f32.mrf.mxu0  ;;  %2324 = vmatmul.mubr.msk.bf16.gmra.mxu0 %vm198_vm1, %v2673_v13  ;;  %v3067_v63 = vpop.f32.mrf.mxu1  ;;  %2426 = vmatmul.mubr.msk.bf16.gmra.mxu1 %vm198_vm1, %v2673_v13 }
 0x10f   :  { %3848 = vst [vmem:[#allocation2_spill] sm:$0xff] %v3067_v63  ;;  %2327 = vmatprep.mubr.msk.bf16.mxu0 %vm2525_vm0, %v2524_v0  ;;  %2429 = vmatprep.mubr.msk.bf16.mxu1 %vm2525_vm0, %v2524_v0 }
 0x110   :  { %v2125_v4 = vpop.f32.mrf.mxu0  ;;  %v2227_v52 = vpop.f32.mrf.mxu1 }
 0x112   :  { %v3077_v12 = vpop.f32.mrf.mxu0  ;;  %v3079_v57 = vpop.f32.mrf.mxu1 }
 0x113   :  { %3849 = vst [vmem:[#allocation3_spill] sm:$0xff] %v3077_v12  ;;  %3850 = vst [vmem:[#allocation4_spill] sm:$0xff] %v3079_v57 }
 0x114   :  { %v2126_v37 = vpop.f32.mrf.mxu0  ;;  %v2228_v13 = vpop.f32.mrf.mxu1 }
 0x116   :  { %v3083_v32 = vpop.f32.mrf.mxu0  ;;  %2328 = vmatmul.mubr.msk.bf16.gmra.mxu0 %vm198_vm1, %v2686_v14  ;;  %v3087_v58 = vpop.f32.mrf.mxu1  ;;  %2430 = vmatmul.mubr.msk.bf16.gmra.mxu1 %vm198_vm1, %v2686_v14 }
 0x117   :  { %3851 = vst [vmem:[#allocation5_spill] sm:$0xff] %v3087_v58  ;;  %2331 = vmatprep.mubr.msk.bf16.mxu0 %vm2525_vm0, %v2524_v0  ;;  %2433 = vmatprep.mubr.msk.bf16.mxu1 %vm2525_vm0, %v2524_v0 }
 0x118   :  { %v2129_v52 = vpop.f32.mrf.mxu0  ;;  %v2231_v37 = vpop.f32.mrf.mxu1 }
 0x11a   :  { %v3097_v13 = vpop.f32.mrf.mxu0  ;;  %v3099_v42 = vpop.f32.mrf.mxu1 }
 0x11b   :  { %3852 = vst [vmem:[#allocation6_spill] sm:$0xff] %v3097_v13  ;;  %3853 = vst [vmem:[#allocation7_spill] sm:$0xff] %v3099_v42 }
 0x11c   :  { %v2130_v12 = vpop.f32.mrf.mxu0  ;;  %v2232_v14 = vpop.f32.mrf.mxu1 }
 0x11e   :  { %v3103_v63 = vpop.f32.mrf.mxu0  ;;  %2332 = vmatmul.mubr.msk.bf16.gmra.mxu0 %vm198_vm1, %v2699_v15  ;;  %v3107_v4 = vpop.f32.mrf.mxu1  ;;  %2434 = vmatmul.mubr.msk.bf16.gmra.mxu1 %vm198_vm1, %v2699_v15 }
 0x11f   :  { %3854 = vst [vmem:[#allocation8_spill] sm:$0xff] %v3107_v4  ;;  %2335 = vmatprep.mubr.msk.bf16.mxu0 %vm2525_vm0, %v2524_v0  ;;  %2437 = vmatprep.mubr.msk.bf16.mxu1 %vm2525_vm0, %v2524_v0 }
 0x120   :  { %v2133_v37 = vpop.f32.mrf.mxu0  ;;  %v2235_v12 = vpop.f32.mrf.mxu1 }
 0x122   :  { %v3117_v14 = vpop.f32.mrf.mxu0  ;;  %v3119_v57 = vpop.f32.mrf.mxu1 }
 0x123   :  { %3855 = vst [vmem:[#allocation9_spill] sm:$0xff] %v3117_v14  ;;  %3856 = vst [vmem:[#allocation10_spill] sm:$0xff] %v3119_v57 }
 0x124   :  { %v2134_v13 = vpop.f32.mrf.mxu0  ;;  %v2236_v15 = vpop.f32.mrf.mxu1 }
 0x126   :  { %v3123_v58 = vpop.f32.mrf.mxu0  ;;  %2336 = vmatmul.mubr.msk.bf16.gmra.mxu0 %vm198_vm1, %v2712_v16  ;;  %v3127_v52 = vpop.f32.mrf.mxu1  ;;  %2438 = vmatmul.mubr.msk.bf16.gmra.mxu1 %vm198_vm1, %v2712_v16 }
 0x127   :  { %3857 = vst [vmem:[#allocation11_spill] sm:$0xff] %v3127_v52  ;;  %2339 = vmatprep.mubr.msk.bf16.mxu0 %vm2525_vm0, %v2524_v0  ;;  %2441 = vmatprep.mubr.msk.bf16.mxu1 %vm2525_vm0, %v2524_v0 }
 0x128   :  { %v2137_v12 = vpop.f32.mrf.mxu0  ;;  %v2239_v13 = vpop.f32.mrf.mxu1 }
 0x12a   :  { %v3137_v15 = vpop.f32.mrf.mxu0  ;;  %v3139_v42 = vpop.f32.mrf.mxu1 }
 0x12b   :  { %3858 = vst [vmem:[#allocation12_spill] sm:$0xff] %v3137_v15  ;;  %3859 = vst [vmem:[#allocation13_spill] sm:$0xff] %v3139_v42 }
 0x12c   :  { %v2138_v14 = vpop.f32.mrf.mxu0  ;;  %v2240_v16 = vpop.f32.mrf.mxu1 }
 0x12e   :  { %v3143_v4 = vpop.f32.mrf.mxu0  ;;  %2340 = vmatmul.mubr.msk.bf16.gmra.mxu0 %vm198_vm1, %v2725_v17  ;;  %v3147_v37 = vpop.f32.mrf.mxu1  ;;  %2442 = vmatmul.mubr.msk.bf16.gmra.mxu1 %vm198_vm1, %v2725_v17 }
 0x12f   :  { %3860 = vst [vmem:[#allocation14_spill] sm:$0xff] %v3147_v37  ;;  %2343 = vmatprep.mubr.msk.bf16.mxu0 %vm2525_vm0, %v2524_v0  ;;  %2445 = vmatprep.mubr.msk.bf16.mxu1 %vm2525_vm0, %v2524_v0 }
 0x130   :  { %v2141_v13 = vpop.f32.mrf.mxu0  ;;  %v2243_v14 = vpop.f32.mrf.mxu1 }
 0x132   :  { %v3157_v16 = vpop.f32.mrf.mxu0  ;;  %v3159_v57 = vpop.f32.mrf.mxu1 }
 0x133   :  { %3861 = vst [vmem:[#allocation15_spill] sm:$0xff] %v3157_v16  ;;  %3862 = vst [vmem:[#allocation16_spill] sm:$0xff] %v3159_v57 }
 0x134   :  { %v2142_v15 = vpop.f32.mrf.mxu0  ;;  %v2244_v17 = vpop.f32.mrf.mxu1 }
 0x136   :  { %v3163_v52 = vpop.f32.mrf.mxu0  ;;  %2344 = vmatmul.mubr.msk.bf16.gmra.mxu0 %vm198_vm1, %v2738_v18  ;;  %v3167_v12 = vpop.f32.mrf.mxu1  ;;  %2446 = vmatmul.mubr.msk.bf16.gmra.mxu1 %vm198_vm1, %v2738_v18 }
 0x137   :  { %3863 = vst [vmem:[#allocation17_spill] sm:$0xff] %v3167_v12  ;;  %2347 = vmatprep.mubr.msk.bf16.mxu0 %vm2525_vm0, %v2524_v0  ;;  %2449 = vmatprep.mubr.msk.bf16.mxu1 %vm2525_vm0, %v2524_v0 }
 0x138   :  { %v2145_v14 = vpop.f32.mrf.mxu0  ;;  %v2247_v15 = vpop.f32.mrf.mxu1 }
 0x13a   :  { %v3177_v17 = vpop.f32.mrf.mxu0  ;;  %v3179_v42 = vpop.f32.mrf.mxu1 }
 0x13b   :  { %3864 = vst [vmem:[#allocation18_spill] sm:$0xff] %v3177_v17  ;;  %3865 = vst [vmem:[#allocation19_spill] sm:$0xff] %v3179_v42 }
 0x13c   :  { %v2146_v16 = vpop.f32.mrf.mxu0  ;;  %v2248_v18 = vpop.f32.mrf.mxu1 }
 0x13e   :  { %v3183_v37 = vpop.f32.mrf.mxu0  ;;  %2348 = vmatmul.mubr.msk.bf16.gmra.mxu0 %vm198_vm1, %v2751_v19  ;;  %v3187_v13 = vpop.f32.mrf.mxu1  ;;  %2450 = vmatmul.mubr.msk.bf16.gmra.mxu1 %vm198_vm1, %v2751_v19 }
 0x13f   :  { %3866 = vst [vmem:[#allocation20_spill] sm:$0xff] %v3187_v13  ;;  %2351 = vmatprep.mubr.msk.bf16.mxu0 %vm2525_vm0, %v2524_v0  ;;  %2453 = vmatprep.mubr.msk.bf16.mxu1 %vm2525_vm0, %v2524_v0 }
 0x140   :  { %v2149_v15 = vpop.f32.mrf.mxu0  ;;  %v2251_v16 = vpop.f32.mrf.mxu1 }
 0x142   :  { %v3197_v18 = vpop.f32.mrf.mxu0  ;;  %v3199_v57 = vpop.f32.mrf.mxu1 }
 0x143   :  { %3867 = vst [vmem:[#allocation21_spill] sm:$0xff] %v3197_v18  ;;  %3868 = vst [vmem:[#allocation22_spill] sm:$0xff] %v3199_v57 }
 0x144   :  { %v2150_v17 = vpop.f32.mrf.mxu0  ;;  %v2252_v19 = vpop.f32.mrf.mxu1 }
 0x146   :  { %v3203_v12 = vpop.f32.mrf.mxu0  ;;  %2352 = vmatmul.mubr.msk.bf16.gmra.mxu0 %vm198_vm1, %v2764_v20  ;;  %v3207_v14 = vpop.f32.mrf.mxu1  ;;  %2454 = vmatmul.mubr.msk.bf16.gmra.mxu1 %vm198_vm1, %v2764_v20 }
 0x147   :  { %3869 = vst [vmem:[#allocation23_spill] sm:$0xff] %v3207_v14  ;;  %2355 = vmatprep.mubr.msk.bf16.mxu0 %vm2525_vm0, %v2524_v0  ;;  %2457 = vmatprep.mubr.msk.bf16.mxu1 %vm2525_vm0, %v2524_v0 }
 0x148   :  { %v2153_v16 = vpop.f32.mrf.mxu0  ;;  %v2255_v17 = vpop.f32.mrf.mxu1 }
 0x14a   :  { %v3217_v19 = vpop.f32.mrf.mxu0  ;;  %v3219_v42 = vpop.f32.mrf.mxu1 }
 0x14b   :  { %3870 = vst [vmem:[#allocation24_spill] sm:$0xff] %v3217_v19  ;;  %3871 = vst [vmem:[#allocation25_spill] sm:$0xff] %v3219_v42 }
 0x14c   :  { %v2154_v18 = vpop.f32.mrf.mxu0  ;;  %v2256_v20 = vpop.f32.mrf.mxu1 }
 0x14e   :  { %v3223_v13 = vpop.f32.mrf.mxu0  ;;  %2356 = vmatmul.mubr.msk.bf16.gmra.mxu0 %vm198_vm1, %v2777_v21  ;;  %v3227_v15 = vpop.f32.mrf.mxu1  ;;  %2458 = vmatmul.mubr.msk.bf16.gmra.mxu1 %vm198_vm1, %v2777_v21 }
 0x14f   :  { %3872 = vst [vmem:[#allocation26_spill] sm:$0xff] %v3227_v15  ;;  %2359 = vmatprep.mubr.msk.bf16.mxu0 %vm2525_vm0, %v2524_v0  ;;  %2461 = vmatprep.mubr.msk.bf16.mxu1 %vm2525_vm0, %v2524_v0 }
 0x150   :  { %v2157_v17 = vpop.f32.mrf.mxu0  ;;  %v2259_v18 = vpop.f32.mrf.mxu1 }
 0x152   :  { %v3237_v20 = vpop.f32.mrf.mxu0  ;;  %v3239_v57 = vpop.f32.mrf.mxu1 }
 0x153   :  { %3873 = vst [vmem:[#allocation27_spill] sm:$0xff] %v3237_v20  ;;  %3874 = vst [vmem:[#allocation28_spill] sm:$0xff] %v3239_v57 }
 0x154   :  { %v2158_v19 = vpop.f32.mrf.mxu0  ;;  %v2260_v21 = vpop.f32.mrf.mxu1 }
 0x156   :  { %v3243_v14 = vpop.f32.mrf.mxu0  ;;  %2360 = vmatmul.mubr.msk.bf16.gmra.mxu0 %vm198_vm1, %v2790_v22  ;;  %v3247_v16 = vpop.f32.mrf.mxu1  ;;  %2462 = vmatmul.mubr.msk.bf16.gmra.mxu1 %vm198_vm1, %v2790_v22 }
 0x157   :  { %3875 = vst [vmem:[#allocation29_spill] sm:$0xff] %v3247_v16  ;;  %2363 = vmatprep.mubr.msk.bf16.mxu0 %vm2525_vm0, %v2524_v0  ;;  %2465 = vmatprep.mubr.msk.bf16.mxu1 %vm2525_vm0, %v2524_v0 }
 0x158   :  { %v2161_v18 = vpop.f32.mrf.mxu0  ;;  %v2263_v19 = vpop.f32.mrf.mxu1 }
 0x15a   :  { %v3257_v21 = vpop.f32.mrf.mxu0  ;;  %v3259_v42 = vpop.f32.mrf.mxu1 }
 0x15b   :  { %3876 = vst [vmem:[#allocation30_spill] sm:$0xff] %v3257_v21  ;;  %3877 = vst [vmem:[#allocation31_spill] sm:$0xff] %v3259_v42 }
 0x15c   :  { %v2162_v20 = vpop.f32.mrf.mxu0  ;;  %v2264_v22 = vpop.f32.mrf.mxu1 }
 0x15e   :  { %v3263_v15 = vpop.f32.mrf.mxu0  ;;  %2364 = vmatmul.mubr.msk.bf16.gmra.mxu0 %vm198_vm1, %v2803_v23  ;;  %v3267_v17 = vpop.f32.mrf.mxu1  ;;  %2466 = vmatmul.mubr.msk.bf16.gmra.mxu1 %vm198_vm1, %v2803_v23 }
 0x15f   :  { %3878 = vst [vmem:[#allocation32_spill] sm:$0xff] %v3267_v17  ;;  %2367 = vmatprep.mubr.msk.bf16.mxu0 %vm2525_vm0, %v2524_v0  ;;  %2469 = vmatprep.mubr.msk.bf16.mxu1 %vm2525_vm0, %v2524_v0 }
 0x160   :  { %v2165_v19 = vpop.f32.mrf.mxu0  ;;  %v2267_v20 = vpop.f32.mrf.mxu1 }
 0x162   :  { %v3277_v22 = vpop.f32.mrf.mxu0  ;;  %v3279_v57 = vpop.f32.mrf.mxu1 }
 0x163   :  { %3879 = vst [vmem:[#allocation33_spill] sm:$0xff] %v3277_v22  ;;  %3880 = vst [vmem:[#allocation34_spill] sm:$0xff] %v3279_v57 }
 0x164   :  { %v2166_v21 = vpop.f32.mrf.mxu0  ;;  %v2268_v23 = vpop.f32.mrf.mxu1 }
 0x166   :  { %v3283_v16 = vpop.f32.mrf.mxu0  ;;  %2368 = vmatmul.mubr.msk.bf16.gmra.mxu0 %vm198_vm1, %v2816_v24  ;;  %v3287_v18 = vpop.f32.mrf.mxu1  ;;  %2470 = vmatmul.mubr.msk.bf16.gmra.mxu1 %vm198_vm1, %v2816_v24 }
 0x167   :  { %3881 = vst [vmem:[#allocation35_spill] sm:$0xff] %v3287_v18  ;;  %2371 = vmatprep.mubr.msk.bf16.mxu0 %vm2525_vm0, %v2524_v0  ;;  %2473 = vmatprep.mubr.msk.bf16.mxu1 %vm2525_vm0, %v2524_v0 }
 0x168   :  { %v2169_v20 = vpop.f32.mrf.mxu0  ;;  %v2271_v21 = vpop.f32.mrf.mxu1 }
 0x16a   :  { %v3297_v23 = vpop.f32.mrf.mxu0  ;;  %v3299_v42 = vpop.f32.mrf.mxu1 }
 0x16b   :  { %3882 = vst [vmem:[#allocation36_spill] sm:$0xff] %v3297_v23  ;;  %3883 = vst [vmem:[#allocation37_spill] sm:$0xff] %v3299_v42 }
 0x16c   :  { %v2170_v22 = vpop.f32.mrf.mxu0  ;;  %v2272_v24 = vpop.f32.mrf.mxu1 }
 0x16e   :  { %v3303_v17 = vpop.f32.mrf.mxu0  ;;  %2372 = vmatmul.mubr.msk.bf16.gmra.mxu0 %vm198_vm1, %v2829_v25  ;;  %v3307_v19 = vpop.f32.mrf.mxu1  ;;  %2474 = vmatmul.mubr.msk.bf16.gmra.mxu1 %vm198_vm1, %v2829_v25 }
 0x16f   :  { %3884 = vst [vmem:[#allocation38_spill] sm:$0xff] %v3303_v17  ;;  %3885 = vst [vmem:[#allocation39_spill] sm:$0xff] %v3307_v19  ;;  %2375 = vmatprep.mubr.msk.bf16.mxu0 %vm2525_vm0, %v2524_v0  ;;  %2477 = vmatprep.mubr.msk.bf16.mxu1 %vm2525_vm0, %v2524_v0 }
 0x170   :  { %v2173_v21 = vpop.f32.mrf.mxu0  ;;  %v2275_v22 = vpop.f32.mrf.mxu1 }
 0x172   :  { %v3317_v24 = vpop.f32.mrf.mxu0  ;;  %v3319_v57 = vpop.f32.mrf.mxu1 }
 0x173   :  { %3886 = vst [vmem:[#allocation40_spill] sm:$0xff] %v3317_v24  ;;  %3887 = vst [vmem:[#allocation41_spill] sm:$0xff] %v3319_v57 }
 0x174   :  { %v2174_v23 = vpop.f32.mrf.mxu0  ;;  %v2276_v25 = vpop.f32.mrf.mxu1 }
 0x176   :  { %v3323_v18 = vpop.f32.mrf.mxu0  ;;  %2376 = vmatmul.mubr.msk.bf16.gmra.mxu0 %vm198_vm1, %v2842_v26  ;;  %v3327_v20 = vpop.f32.mrf.mxu1  ;;  %2478 = vmatmul.mubr.msk.bf16.gmra.mxu1 %vm198_vm1, %v2842_v26 }
 0x177   :  { %3888 = vst [vmem:[#allocation42_spill] sm:$0xff] %v3323_v18  ;;  %3889 = vst [vmem:[#allocation43_spill] sm:$0xff] %v3327_v20  ;;  %2379 = vmatprep.mubr.msk.bf16.mxu0 %vm2525_vm0, %v2524_v0  ;;  %2481 = vmatprep.mubr.msk.bf16.mxu1 %vm2525_vm0, %v2524_v0 }
 0x178   :  { %v2177_v22 = vpop.f32.mrf.mxu0  ;;  %v2279_v23 = vpop.f32.mrf.mxu1 }
 0x17a   :  { %v3337_v25 = vpop.f32.mrf.mxu0  ;;  %v3339_v42 = vpop.f32.mrf.mxu1 }
 0x17b   :  { %3890 = vst [vmem:[#allocation44_spill] sm:$0xff] %v3337_v25  ;;  %3891 = vst [vmem:[#allocation45_spill] sm:$0xff] %v3339_v42 }
 0x17c   :  { %v2178_v24 = vpop.f32.mrf.mxu0  ;;  %v2280_v26 = vpop.f32.mrf.mxu1 }
 0x17e   :  { %v3343_v19 = vpop.f32.mrf.mxu0  ;;  %2380 = vmatmul.mubr.msk.bf16.gmra.mxu0 %vm198_vm1, %v2855_v27  ;;  %v3347_v21 = vpop.f32.mrf.mxu1  ;;  %2482 = vmatmul.mubr.msk.bf16.gmra.mxu1 %vm198_vm1, %v2855_v27 }
 0x17f   :  { %3892 = vst [vmem:[#allocation46_spill] sm:$0xff] %v3343_v19  ;;  %3893 = vst [vmem:[#allocation47_spill] sm:$0xff] %v3347_v21  ;;  %2383 = vmatprep.mubr.msk.bf16.mxu0 %vm2525_vm0, %v2524_v0  ;;  %2485 = vmatprep.mubr.msk.bf16.mxu1 %vm2525_vm0, %v2524_v0 }
 0x180   :  { %v2181_v23 = vpop.f32.mrf.mxu0  ;;  %v2283_v24 = vpop.f32.mrf.mxu1 }
 0x182   :  { %v3357_v26 = vpop.f32.mrf.mxu0  ;;  %v3359_v57 = vpop.f32.mrf.mxu1 }
 0x183   :  { %3894 = vst [vmem:[#allocation48_spill] sm:$0xff] %v3357_v26  ;;  %3895 = vst [vmem:[#allocation49_spill] sm:$0xff] %v3359_v57 }
 0x184   :  { %v2182_v25 = vpop.f32.mrf.mxu0  ;;  %v2284_v27 = vpop.f32.mrf.mxu1 }
 0x186   :  { %v3363_v20 = vpop.f32.mrf.mxu0  ;;  %2384 = vmatmul.mubr.msk.bf16.gmra.mxu0 %vm198_vm1, %v2868_v28  ;;  %v3367_v22 = vpop.f32.mrf.mxu1  ;;  %2486 = vmatmul.mubr.msk.bf16.gmra.mxu1 %vm198_vm1, %v2868_v28 }
 0x187   :  { %3896 = vst [vmem:[#allocation50_spill] sm:$0xff] %v3363_v20  ;;  %3897 = vst [vmem:[#allocation51_spill] sm:$0xff] %v3367_v22  ;;  %2387 = vmatprep.mubr.msk.bf16.mxu0 %vm2525_vm0, %v2524_v0  ;;  %2489 = vmatprep.mubr.msk.bf16.mxu1 %vm2525_vm0, %v2524_v0  ;;  %v3393_v0 = vld [vmem:[%s3794_s2] ss:$0 sm:$0xff] }
 0x188   :  { %v2185_v24 = vpop.f32.mrf.mxu0  ;;  %v2287_v25 = vpop.f32.mrf.mxu1 }
 0x189   :  { %v3900_v24 = vmax.f32 %v2883_v30, %v2887_v31 }
 0x18a   :  { %v3377_v27 = vpop.f32.mrf.mxu0  ;;  %v3379_v42 = vpop.f32.mrf.mxu1 }
 0x18b   :  { %3898 = vst [vmem:[#allocation52_spill] sm:$0xff] %v3377_v27  ;;  %3899 = vst [vmem:[#allocation53_spill] sm:$0xff] %v3379_v42  ;;  %v3901_v27 = vmax.f32 %v2897_v35, %v2899_v36 }
 0x18c   :  { %v2186_v26 = vpop.f32.mrf.mxu0  ;;  %v2288_v28 = vpop.f32.mrf.mxu1 }
 0x18e   :  { %v842_v21 = vpop.f32.mrf.mxu0  ;;  %2388 = vmatmul.mubr.msk.bf16.gmra.mxu0 %vm198_vm1, %v2881_v29  ;;  %v1134_v22 = vpop.f32.mrf.mxu1  ;;  %2490 = vmatmul.mubr.msk.bf16.gmra.mxu1 %vm198_vm1, %v2881_v29 }
 0x18f   :  { %v1041_v23 = vmax.f32 %v3900_v24, %v842_v21 }
 0x190   :  { %v2293_v25 = vpop.f32.mrf.mxu0  ;;  %v2395_v28 = vpop.f32.mrf.mxu1 }
 0x191   :  { %v1333_v26 = vmax.f32 %v1041_v23, %v1134_v22  ;;  %v3902_v22 = vmax.f32 %v2903_v40, %v2907_v41 }
 0x192   :  { %v845_v57 = vpop.f32.mrf.mxu0  ;;  %v1137_v31 = vpop.f32.mrf.mxu1 }
 0x193   :  { %v1390_v42 = vadd.f32 %v3393_v0, %v1333_v26  ;;  %v1042_v30 = vmax.f32 %v3901_v27, %v845_v57 }
 0x194   :  { %v2294_v21 = vpop.f32.mrf.mxu0  ;;  %v2396_v29 = vpop.f32.mrf.mxu1 }
 0x195   :  { %v1440_v24 = vmax.f32 %v1390_v42, 0.0  ;;  %v1334_v20 = vmax.f32 %v1042_v30, %v1137_v31  ;;  %v3904_v29 = vmax.f32 %v2923_v50, %v2927_v51 }
 0x196   :  { %v850_v19 = vpop.f32.mrf.mxu0  ;;  %v1142_v25 = vpop.f32.mrf.mxu1 }
 0x197   :  { %v1931_v18 = vpack.c.bf16 %v1440_v24, %v1440_v24  ;;  %v1391_v17 = vadd.f32 %v3393_v0, %v1334_v20  ;;  %v1043_v23 = vmax.f32 %v3902_v22, %v850_v19  ;;  %v3903_v20 = vmax.f32 %v2917_v45, %v2919_v46 }
 0x198   :  { %v2297_v26 = vpop.f32.mrf.mxu0  ;;  %v2399_v42 = vpop.f32.mrf.mxu1 }
 0x199   :  { %1691 = vst.msk [vmem:[%s3795_s3] sm:$0xf] %vm1690_vm2, %v1931_v18  ;;  %v1441_v35 = vmax.f32 %v1391_v17, 0.0  ;;  %v1335_v36 = vmax.f32 %v1043_v23, %v1142_v25 }
 0x19a   :  { %v853_v57 = vpop.f32.mrf.mxu0  ;;  %v1145_v40 = vpop.f32.mrf.mxu1 }
 0x19b   :  { %v1932_v27 = vpack.c.bf16 %v1441_v35, %v1441_v35  ;;  %v1392_v28 = vadd.f32 %v3393_v0, %v1335_v36  ;;  %v1044_v30 = vmax.f32 %v3903_v20, %v853_v57  ;;  %v3905_v57 = vmax.f32 %v2937_v55, %v2939_v56 }
 0x19c   :  { %v2298_v41 = vpop.f32.mrf.mxu0  ;;  %v2400_v17 = vpop.f32.mrf.mxu1 }
 0x19d   :  { %1692 = vst.msk [vmem:[%s3795_s3 + $0x4] sm:$0xf] %vm1690_vm2, %v1932_v27  ;;  %v1442_v19 = vmax.f32 %v1392_v28, 0.0  ;;  %v1336_v18 = vmax.f32 %v1044_v30, %v1145_v40 }
 0x19e   :  { %v858_v31 = vpop.f32.mrf.mxu0  ;;  %v1150_v45 = vpop.f32.mrf.mxu1 }
 0x19f   :  { %v1933_v21 = vpack.c.bf16 %v1442_v19, %v1442_v19  ;;  %v1393_v24 = vadd.f32 %v3393_v0, %v1336_v18  ;;  %v1045_v22 = vmax.f32 %v3904_v29, %v858_v31  ;;  %v3906_v18 = vmax.f32 %v2943_v60, %v2947_v61 }
 0x1a0   :  { %v2301_v46 = vpop.f32.mrf.mxu0  ;;  %v2403_v26 = vpop.f32.mrf.mxu1 }
 0x1a1   :  { %1693 = vst.msk [vmem:[%s3795_s3 + $0x8] sm:$0xf] %vm1690_vm2, %v1933_v21  ;;  %v1443_v23 = vmax.f32 %v1393_v24, 0.0  ;;  %v1337_v25 = vmax.f32 %v1045_v22, %v1150_v45  ;;  %v3907_v46 = vmax.f32 %v2957_v2, %v2959_v3 }
 0x1a2   :  { %v861_v35 = vpop.f32.mrf.mxu0  ;;  %v1153_v50 = vpop.f32.mrf.mxu1 }
 0x1a3   :  { %v1934_v36 = vpack.c.bf16 %v1443_v23, %v1443_v23  ;;  %v1394_v42 = vadd.f32 %v3393_v0, %v1337_v25  ;;  %v1046_v27 = vmax.f32 %v3905_v57, %v861_v35 }
 0x1a4   :  { %v2302_v51 = vpop.f32.mrf.mxu0  ;;  %v2404_v30 = vpop.f32.mrf.mxu1 }
 0x1a5   :  { %1694 = vst.msk [vmem:[%s3795_s3 + $0xc] sm:$0xf] %vm1690_vm2, %v1934_v36  ;;  %v1444_v28 = vmax.f32 %v1394_v42, 0.0  ;;  %v1338_v20 = vmax.f32 %v1046_v27, %v1153_v50  ;;  %v3908_v27 = vmax.f32 %v2963_v7, %v2967_v33 }
 0x1a6   :  { %v866_v40 = vpop.f32.mrf.mxu0  ;;  %v1158_v55 = vpop.f32.mrf.mxu1 }
 0x1a7   :  { %v1935_v41 = vpack.c.bf16 %v1444_v28, %v1444_v28  ;;  %v1395_v19 = vadd.f32 %v3393_v0, %v1338_v20  ;;  %v1047_v17 = vmax.f32 %v3906_v18, %v866_v40 }
 0x1a8   :  { %v2305_v56 = vpop.f32.mrf.mxu0  ;;  %v2407_v24 = vpop.f32.mrf.mxu1 }
 0x1a9   :  { %1695 = vst.msk [vmem:[%s3795_s3 + $0x10] sm:$0xf] %vm1690_vm2, %v1935_v41  ;;  %v1445_v31 = vmax.f32 %v1395_v19, 0.0  ;;  %v1339_v21 = vmax.f32 %v1047_v17, %v1158_v55  ;;  %v3909_v19 = vmax.f32 %v2977_v43, %v2979_v44 }
 0x1aa   :  { %v869_v29 = vpop.f32.mrf.mxu0  ;;  %v1161_v60 = vpop.f32.mrf.mxu1 }
 0x1ab   :  { %v1936_v22 = vpack.c.bf16 %v1445_v31, %v1445_v31  ;;  %v1396_v45 = vadd.f32 %v3393_v0, %v1339_v21  ;;  %v1048_v23 = vmax.f32 %v3907_v46, %v869_v29  ;;  %v3910_v29 = vmax.f32 %v2983_v53, %v2987_v54 }
 0x1ac   :  { %v2306_v61 = vpop.f32.mrf.mxu0  ;;  %v2408_v35 = vpop.f32.mrf.mxu1 }
 0x1ad   :  { %1696 = vst.msk [vmem:[%s3795_s3 + $0x14] sm:$0xf] %vm1690_vm2, %v1936_v22  ;;  %v1446_v25 = vmax.f32 %v1396_v45, 0.0  ;;  %v1340_v26 = vmax.f32 %v1048_v23, %v1161_v60 }
 0x1ae   :  { %v874_v36 = vpop.f32.mrf.mxu0  ;;  %v1166_v2 = vpop.f32.mrf.mxu1 }
 0x1af   :  { %v1937_v42 = vpack.c.bf16 %v1446_v25, %v1446_v25  ;;  %v1397_v57 = vadd.f32 %v3393_v0, %v1340_v26  ;;  %v1049_v50 = vmax.f32 %v3908_v27, %v874_v36  ;;  %v3911_v26 = vmax.f32 %v2997_v1, %v2999_v5 }
 0x1b0   :  { %v2309_v3 = vpop.f32.mrf.mxu0  ;;  %v2411_v20 = vpop.f32.mrf.mxu1 }
 0x1b1   :  { %1697 = vst.msk [vmem:[%s3795_s3 + $0x18] sm:$0xf] %vm1690_vm2, %v1937_v42  ;;  %v1447_v51 = vmax.f32 %v1397_v57, 0.0  ;;  %v1341_v28 = vmax.f32 %v1049_v50, %v1166_v2  ;;  %v3912_v3 = vmax.f32 %v3003_v39, %v3007_v49 }
 0x1b2   :  { %v877_v30 = vpop.f32.mrf.mxu0  ;;  %v1169_v7 = vpop.f32.mrf.mxu1 }
 0x1b3   :  { %v1938_v40 = vpack.c.bf16 %v1447_v51, %v1447_v51  ;;  %v1398_v41 = vadd.f32 %v3393_v0, %v1341_v28  ;;  %v1050_v18 = vmax.f32 %v3909_v19, %v877_v30 }
 0x1b4   :  { %v2310_v33 = vpop.f32.mrf.mxu0  ;;  %v2412_v56 = vpop.f32.mrf.mxu1 }
 0x1b5   :  { %1698 = vst.msk [vmem:[%s3795_s3 + $0x1c] sm:$0xf] %vm1690_vm2, %v1938_v40  ;;  %v1448_v17 = vmax.f32 %v1398_v41, 0.0  ;;  %v1342_v55 = vmax.f32 %v1050_v18, %v1169_v7  ;;  %v3913_v18 = vmax.f32 %v3017_v38, %v3019_v9 }
 0x1b6   :  { %v882_v31 = vpop.f32.mrf.mxu0  ;;  %v1174_v43 = vpop.f32.mrf.mxu1 }
 0x1b7   :  { %v1939_v21 = vpack.c.bf16 %v1448_v17, %v1448_v17  ;;  %v1399_v24 = vadd.f32 %v3393_v0, %v1342_v55  ;;  %v1051_v22 = vmax.f32 %v3910_v29, %v882_v31 }
 0x1b8   :  { %v2313_v44 = vpop.f32.mrf.mxu0  ;;  %v2415_v23 = vpop.f32.mrf.mxu1 }
 0x1b9   :  { %1699 = vst.msk [vmem:[%s3795_s3 + $0x20] sm:$0xf] %vm1690_vm2, %v1939_v21  ;;  %v1449_v45 = vmax.f32 %v1399_v24, 0.0  ;;  %v1343_v46 = vmax.f32 %v1051_v22, %v1174_v43  ;;  %v3914_v24 = vmax.f32 %v3023_v48, %v3027_v8 }
 0x1ba   :  { %v885_v60 = vpop.f32.mrf.mxu0  ;;  %v1177_v53 = vpop.f32.mrf.mxu1 }
 0x1bb   :  { %v1940_v61 = vpack.c.bf16 %v1449_v45, %v1449_v45  ;;  %v1400_v25 = vadd.f32 %v3393_v0, %v1343_v46  ;;  %v1052_v35 = vmax.f32 %v3911_v26, %v885_v60  ;;  %v3915_v60 = vmax.f32 %v3037_v10, %v3039_v6 }
 0x1bc   :  { %v2314_v54 = vpop.f32.mrf.mxu0  ;;  %v2416_v57 = vpop.f32.mrf.mxu1 }
 0x1bd   :  { %1700 = vst.msk [vmem:[%s3795_s3 + $0x24] sm:$0xf] %vm1690_vm2, %v1940_v61  ;;  %v1450_v36 = vmax.f32 %v1400_v25, 0.0  ;;  %v1344_v42 = vmax.f32 %v1052_v35, %v1177_v53 }
 0x1be   :  { %v890_v27 = vpop.f32.mrf.mxu0  ;;  %v1182_v1 = vpop.f32.mrf.mxu1 }
 0x1bf   :  { %v1941_v50 = vpack.c.bf16 %v1450_v36, %v1450_v36  ;;  %v1401_v2 = vadd.f32 %v3393_v0, %v1344_v42  ;;  %v1053_v51 = vmax.f32 %v3912_v3, %v890_v27  ;;  %v3916_v42 = vmax.f32 %v3043_v62, %v3047_v59 }
 0x1c0   :  { %v2317_v5 = vpop.f32.mrf.mxu0  ;;  %v2419_v30 = vpop.f32.mrf.mxu1 }
 0x1c1   :  { %1701 = vst.msk [vmem:[%s3795_s3 + $0x28] sm:$0xf] %vm1690_vm2, %v1941_v50  ;;  %v1451_v28 = vmax.f32 %v1401_v2, 0.0  ;;  %v1345_v20 = vmax.f32 %v1053_v51, %v1182_v1  ;;  %v3917_v5 = vmax.f32 %v3057_v11, %v3059_v34 }
 0x1c2   :  { %v893_v40 = vpop.f32.mrf.mxu0  ;;  %v1185_v39 = vpop.f32.mrf.mxu1 }
 0x1c3   :  { %v1942_v41 = vpack.c.bf16 %v1451_v28, %v1451_v28  ;;  %v1402_v19 = vadd.f32 %v3393_v0, %v1345_v20  ;;  %v1054_v7 = vmax.f32 %v3913_v18, %v893_v40 }
 0x1c4   :  { %v2318_v49 = vpop.f32.mrf.mxu0  ;;  %v2420_v55 = vpop.f32.mrf.mxu1 }
 0x1c5   :  { %1702 = vst.msk [vmem:[%s3795_s3 + $0x2c] sm:$0xf] %vm1690_vm2, %v1942_v41  ;;  %v1452_v33 = vmax.f32 %v1402_v19, 0.0  ;;  %v1346_v17 = vmax.f32 %v1054_v7, %v1185_v39  ;;  %v3918_v7 = vld [vmem:[#allocation2_spill] sm:$0xff] }
 0x1c6   :  { %v898_v56 = vpop.f32.mrf.mxu0  ;;  %v1190_v38 = vpop.f32.mrf.mxu1  ;;  %v3919_v39 = vmax.f32 %v3063_v47, %v3918_v7 }
 0x1c7   :  { %v1943_v31 = vpack.c.bf16 %v1452_v33, %v1452_v33  ;;  %v1403_v21 = vadd.f32 %v3393_v0, %v1346_v17  ;;  %v1055_v29 = vmax.f32 %v3914_v24, %v898_v56  ;;  %v3920_v24 = vld [vmem:[#allocation3_spill] sm:$0xff] }
 0x1c8   :  { %v2321_v9 = vpop.f32.mrf.mxu0  ;;  %v2423_v44 = vpop.f32.mrf.mxu1 }
 0x1c9   :  { %1703 = vst.msk [vmem:[%s3795_s3 + $0x30] sm:$0xf] %vm1690_vm2, %v1943_v31  ;;  %v1453_v22 = vmax.f32 %v1403_v21, 0.0  ;;  %v1347_v43 = vmax.f32 %v1055_v29, %v1190_v38  ;;  %v3921_v29 = vld [vmem:[#allocation4_spill] sm:$0xff] }
 0x1ca   :  { %v901_v45 = vpop.f32.mrf.mxu0  ;;  %v1193_v48 = vpop.f32.mrf.mxu1  ;;  %v3922_v38 = vmax.f32 %v3920_v24, %v3921_v29 }
 0x1cb   :  { %v1944_v46 = vpack.c.bf16 %v1453_v22, %v1453_v22  ;;  %v1404_v23 = vadd.f32 %v3393_v0, %v1347_v43  ;;  %v1056_v61 = vmax.f32 %v3915_v60, %v901_v45 }
 0x1cc   :  { %v2322_v8 = vpop.f32.mrf.mxu0  ;;  %v2424_v35 = vpop.f32.mrf.mxu1 }
 0x1cd   :  { %1704 = vst.msk [vmem:[%s3795_s3 + $0x34] sm:$0xf] %vm1690_vm2, %v1944_v46  ;;  %v1454_v25 = vmax.f32 %v1404_v23, 0.0  ;;  %v1348_v26 = vmax.f32 %v1056_v61, %v1193_v48  ;;  %v3923_v61 = vld [vmem:[#allocation5_spill] sm:$0xff] }
 0x1ce   :  { %v906_v53 = vpop.f32.mrf.mxu0  ;;  %v1198_v6 = vpop.f32.mrf.mxu1  ;;  %v3924_v48 = vmax.f32 %v3083_v32, %v3923_v61 }
 0x1cf   :  { %v1945_v54 = vpack.c.bf16 %v1454_v25, %v1454_v25  ;;  %v1405_v36 = vadd.f32 %v3393_v0, %v1348_v26  ;;  %v1057_v57 = vmax.f32 %v3916_v42, %v906_v53 }
 0x1d0   :  { %v2325_v10 = vpop.f32.mrf.mxu0  ;;  %v2427_v2 = vpop.f32.mrf.mxu1 }
 0x1d1   :  { %1705 = vst.msk [vmem:[%s3795_s3 + $0x38] sm:$0xf] %vm1690_vm2, %v1945_v54  ;;  %v1455_v27 = vmax.f32 %v1405_v36, 0.0  ;;  %v1349_v50 = vmax.f32 %v1057_v57, %v1198_v6  ;;  %v3925_v6 = vld [vmem:[#allocation6_spill] sm:$0xff]  ;;  %v3926_v10 = vld [vmem:[#allocation7_spill] sm:$0xff] }
 0x1d2   :  { %v909_v3 = vpop.f32.mrf.mxu0  ;;  %v1201_v62 = vpop.f32.mrf.mxu1 }
 0x1d3   :  { %v1946_v51 = vpack.c.bf16 %v1455_v27, %v1455_v27  ;;  %v1406_v1 = vadd.f32 %v3393_v0, %v1349_v50  ;;  %v1058_v28 = vmax.f32 %v3917_v5, %v909_v3  ;;  %v3927_v27 = vmax.f32 %v3925_v6, %v3926_v10 }
 0x1d4   :  { %v2326_v59 = vpop.f32.mrf.mxu0  ;;  %v2428_v40 = vpop.f32.mrf.mxu1 }
 0x1d5   :  { %1706 = vst.msk [vmem:[%s3795_s3 + $0x3c] sm:$0xf] %vm1690_vm2, %v1946_v51  ;;  %v1456_v20 = vmax.f32 %v1406_v1, 0.0  ;;  %v1350_v30 = vmax.f32 %v1058_v28, %v1201_v62  ;;  %v3928_v59 = vld [vmem:[#allocation8_spill] sm:$0xff] }
 0x1d6   :  { %v914_v41 = vpop.f32.mrf.mxu0  ;;  %v1206_v34 = vpop.f32.mrf.mxu1 }
 0x1d7   :  { %v1947_v19 = vpack.c.bf16 %v1456_v20, %v1456_v20  ;;  %v1407_v18 = vadd.f32 %v3393_v0, %v1350_v30  ;;  %v1059_v49 = vmax.f32 %v3919_v39, %v914_v41  ;;  %v3929_v20 = vmax.f32 %v3103_v63, %v3928_v59 }
 0x1d8   :  { %v2329_v11 = vpop.f32.mrf.mxu0  ;;  %v2431_v55 = vpop.f32.mrf.mxu1 }
 0x1d9   :  { %1707 = vst.msk [vmem:[%s3795_s3 + $0x40] sm:$0xf] %vm1690_vm2, %v1947_v19  ;;  %v1457_v33 = vmax.f32 %v1407_v18, 0.0  ;;  %v1351_v17 = vmax.f32 %v1059_v49, %v1206_v34  ;;  %v3930_v11 = vld [vmem:[#allocation9_spill] sm:$0xff] }
 0x1da   :  { %v917_v56 = vpop.f32.mrf.mxu0  ;;  %v1209_v47 = vpop.f32.mrf.mxu1 }
 0x1db   :  { %v1948_v31 = vpack.c.bf16 %v1457_v33, %v1457_v33  ;;  %v1408_v21 = vadd.f32 %v3393_v0, %v1351_v17  ;;  %v1060_v9 = vmax.f32 %v3922_v38, %v917_v56  ;;  %v3931_v33 = vld [vmem:[#allocation10_spill] sm:$0xff] }
 0x1dc   :  { %v2330_v22 = vpop.f32.mrf.mxu0  ;;  %v2432_v45 = vpop.f32.mrf.mxu1  ;;  %v3932_v17 = vmax.f32 %v3930_v11, %v3931_v33 }
 0x1dd   :  { %1708 = vst.msk [vmem:[%s3795_s3 + $0x44] sm:$0xf] %vm1690_vm2, %v1948_v31  ;;  %v1458_v43 = vmax.f32 %v1408_v21, 0.0  ;;  %v1352_v44 = vmax.f32 %v1060_v9, %v1209_v47  ;;  %v3933_v47 = vld [vmem:[#allocation11_spill] sm:$0xff] }
 0x1de   :  { %v922_v46 = vpop.f32.mrf.mxu0  ;;  %v1214_v25 = vpop.f32.mrf.mxu1  ;;  %v3934_v22 = vmax.f32 %v3123_v58, %v3933_v47 }
 0x1df   :  { %v1949_v23 = vpack.c.bf16 %v1458_v43, %v1458_v43  ;;  %v1409_v60 = vadd.f32 %v3393_v0, %v1352_v44  ;;  %v1061_v8 = vmax.f32 %v3924_v48, %v922_v46 }
 0x1e0   :  { %v2333_v26 = vpop.f32.mrf.mxu0  ;;  %v2435_v54 = vpop.f32.mrf.mxu1 }
 0x1e1   :  { %1709 = vst.msk [vmem:[%s3795_s3 + $0x48] sm:$0xf] %vm1690_vm2, %v1949_v23  ;;  %v1459_v35 = vmax.f32 %v1409_v60, 0.0  ;;  %v1353_v53 = vmax.f32 %v1061_v8, %v1214_v25  ;;  %v3935_v25 = vld [vmem:[#allocation12_spill] sm:$0xff]  ;;  %v3936_v26 = vld [vmem:[#allocation13_spill] sm:$0xff] }
 0x1e2   :  { %v925_v36 = vpop.f32.mrf.mxu0  ;;  %v1217_v32 = vpop.f32.mrf.mxu1 }
 0x1e3   :  { %v1950_v42 = vpack.c.bf16 %v1459_v35, %v1459_v35  ;;  %v1410_v57 = vadd.f32 %v3393_v0, %v1353_v53  ;;  %v1062_v50 = vmax.f32 %v3927_v27, %v925_v36  ;;  %v3937_v35 = vmax.f32 %v3935_v25, %v3936_v26  ;;  %v3948_v26 = vld [vmem:[#allocation20_spill] sm:$0xff] }
 0x1e4   :  { %v2334_v2 = vpop.f32.mrf.mxu0  ;;  %v2436_v1 = vpop.f32.mrf.mxu1 }
 0x1e5   :  { %1710 = vst.msk [vmem:[%s3795_s3 + $0x4c] sm:$0xf] %vm1690_vm2, %v1950_v42  ;;  %v1460_v3 = vmax.f32 %v1410_v57, 0.0  ;;  %v1354_v51 = vmax.f32 %v1062_v50, %v1217_v32  ;;  %v3938_v50 = vld [vmem:[#allocation14_spill] sm:$0xff] }
 0x1e6   :  { %v930_v5 = vpop.f32.mrf.mxu0  ;;  %v1222_v40 = vpop.f32.mrf.mxu1  ;;  %v3939_v32 = vmax.f32 %v3143_v4, %v3938_v50  ;;  %v3950_v50 = vld [vmem:[#allocation21_spill] sm:$0xff] }
 0x1e7   :  { %v1951_v28 = vpack.c.bf16 %v1460_v3, %v1460_v3  ;;  %v1411_v62 = vadd.f32 %v3393_v0, %v1354_v51  ;;  %v1063_v30 = vmax.f32 %v3929_v20, %v930_v5 }
 0x1e8   :  { %v2337_v41 = vpop.f32.mrf.mxu0  ;;  %v2439_v7 = vpop.f32.mrf.mxu1 }
 0x1e9   :  { %1711 = vst.msk [vmem:[%s3795_s3 + $0x50] sm:$0xf] %vm1690_vm2, %v1951_v28  ;;  %v1461_v19 = vmax.f32 %v1411_v62, 0.0  ;;  %v1355_v18 = vmax.f32 %v1063_v30, %v1222_v40  ;;  %v3940_v30 = vld [vmem:[#allocation15_spill] sm:$0xff]  ;;  %v3941_v40 = vld [vmem:[#allocation16_spill] sm:$0xff] }
 0x1ea   :  { %v933_v39 = vpop.f32.mrf.mxu0  ;;  %v1225_v63 = vpop.f32.mrf.mxu1  ;;  %v3942_v41 = vmax.f32 %v3940_v30, %v3941_v40  ;;  %v3953_v30 = vld [vmem:[#allocation23_spill] sm:$0xff] }
 0x1eb   :  { %v1952_v49 = vpack.c.bf16 %v1461_v19, %v1461_v19  ;;  %v1412_v34 = vadd.f32 %v3393_v0, %v1355_v18  ;;  %v1064_v55 = vmax.f32 %v3932_v17, %v933_v39  ;;  %v3943_v17 = vld [vmem:[#allocation17_spill] sm:$0xff]  ;;  %v3954_v40 = vmax.f32 %v3203_v12, %v3953_v30 }
 0x1ec   :  { %v2338_v56 = vpop.f32.mrf.mxu0  ;;  %v2440_v24 = vpop.f32.mrf.mxu1 }
 0x1ed   :  { %1712 = vst.msk [vmem:[%s3795_s3 + $0x54] sm:$0xf] %vm1690_vm2, %v1952_v49  ;;  %v1462_v31 = vmax.f32 %v1412_v34, 0.0  ;;  %v1356_v21 = vmax.f32 %v1064_v55, %v1225_v63  ;;  %v3944_v55 = vmax.f32 %v3163_v52, %v3943_v17  ;;  %v3956_v17 = vld [vmem:[#allocation25_spill] sm:$0xff] }
 0x1ee   :  { %v938_v29 = vpop.f32.mrf.mxu0  ;;  %v1230_v44 = vpop.f32.mrf.mxu1 }
 0x1ef   :  { %v1953_v38 = vpack.c.bf16 %v1462_v31, %v1462_v31  ;;  %v1413_v9 = vadd.f32 %v3393_v0, %v1356_v21  ;;  %v1065_v43 = vmax.f32 %v3934_v22, %v938_v29  ;;  %v3945_v22 = vld [vmem:[#allocation18_spill] sm:$0xff] }
 0x1f0   :  { %v2341_v45 = vpop.f32.mrf.mxu0  ;;  %v2443_v60 = vpop.f32.mrf.mxu1 }
 0x1f1   :  { %1713 = vst.msk [vmem:[%s3795_s3 + $0x58] sm:$0xf] %vm1690_vm2, %v1953_v38  ;;  %v1463_v46 = vmax.f32 %v1413_v9, 0.0  ;;  %v1357_v23 = vmax.f32 %v1065_v43, %v1230_v44  ;;  %v3946_v43 = vld [vmem:[#allocation19_spill] sm:$0xff] }
 0x1f2   :  { %v941_v61 = vpop.f32.mrf.mxu0  ;;  %v1233_v58 = vpop.f32.mrf.mxu1  ;;  %v3947_v44 = vmax.f32 %v3945_v22, %v3946_v43 }
 0x1f3   :  { %v1954_v48 = vpack.c.bf16 %v1463_v46, %v1463_v46  ;;  %v1414_v8 = vadd.f32 %v3393_v0, %v1357_v23  ;;  %v1066_v53 = vmax.f32 %v3937_v35, %v941_v61  ;;  %v3949_v35 = vmax.f32 %v3183_v37, %v3948_v26 }
 0x1f4   :  { %v2342_v54 = vpop.f32.mrf.mxu0  ;;  %v2444_v57 = vpop.f32.mrf.mxu1 }
 0x1f5   :  { %1714 = vst.msk [vmem:[%s3795_s3 + $0x5c] sm:$0xf] %vm1690_vm2, %v1954_v48  ;;  %v1464_v36 = vmax.f32 %v1414_v8, 0.0  ;;  %v1358_v42 = vmax.f32 %v1066_v53, %v1233_v58 }
 0x1f6   :  { %v946_v6 = vpop.f32.mrf.mxu0  ;;  %v1238_v3 = vpop.f32.mrf.mxu1 }
 0x1f7   :  { %v1955_v10 = vpack.c.bf16 %v1464_v36, %v1464_v36  ;;  %v1415_v27 = vadd.f32 %v3393_v0, %v1358_v42  ;;  %v1067_v2 = vmax.f32 %v3939_v32, %v946_v6  ;;  %v3951_v32 = vld [vmem:[#allocation22_spill] sm:$0xff] }
 0x1f8   :  { %v2345_v51 = vpop.f32.mrf.mxu0  ;;  %v2447_v28 = vpop.f32.mrf.mxu1 }
 0x1f9   :  { %1715 = vst.msk [vmem:[%s3795_s3 + $0x60] sm:$0xf] %vm1690_vm2, %v1955_v10  ;;  %v1465_v1 = vmax.f32 %v1415_v27, 0.0  ;;  %v1359_v5 = vmax.f32 %v1067_v2, %v1238_v3  ;;  %v3952_v2 = vmax.f32 %v3950_v50, %v3951_v32 }
 0x1fa   :  { %v949_v62 = vpop.f32.mrf.mxu0  ;;  %v1241_v4 = vpop.f32.mrf.mxu1 }
 0x1fb   :  { %v1956_v59 = vpack.c.bf16 %v1465_v1, %v1465_v1  ;;  %v1416_v20 = vadd.f32 %v3393_v0, %v1359_v5  ;;  %v1068_v19 = vmax.f32 %v3942_v41, %v949_v62 }
 0x1fc   :  { %v2346_v18 = vpop.f32.mrf.mxu0  ;;  %v2448_v49 = vpop.f32.mrf.mxu1 }
 0x1fd   :  { %1716 = vst.msk [vmem:[%s3795_s3 + $0x64] sm:$0xf] %vm1690_vm2, %v1956_v59  ;;  %v1466_v7 = vmax.f32 %v1416_v20, 0.0  ;;  %v1360_v39 = vmax.f32 %v1068_v19, %v1241_v4 }
 0x1fe   :  { %v954_v34 = vpop.f32.mrf.mxu0  ;;  %v1246_v56 = vpop.f32.mrf.mxu1 }
 0x1ff   :  { %v1957_v11 = vpack.c.bf16 %v1466_v7, %v1466_v7  ;;  %v1417_v33 = vadd.f32 %v3393_v0, %v1360_v39  ;;  %v1069_v63 = vmax.f32 %v3944_v55, %v954_v34 }
 0x200   :  { %v2349_v31 = vpop.f32.mrf.mxu0  ;;  %v2451_v29 = vpop.f32.mrf.mxu1 }
 0x201   :  { %1717 = vst.msk [vmem:[%s3795_s3 + $0x68] sm:$0xf] %vm1690_vm2, %v1957_v11  ;;  %v1467_v21 = vmax.f32 %v1417_v33, 0.0  ;;  %v1361_v24 = vmax.f32 %v1069_v63, %v1246_v56  ;;  %v3955_v33 = vld [vmem:[#allocation24_spill] sm:$0xff] }
 0x202   :  { %v957_v38 = vpop.f32.mrf.mxu0  ;;  %v1249_v52 = vpop.f32.mrf.mxu1  ;;  %v3957_v55 = vmax.f32 %v3955_v33, %v3956_v17 }
 0x203   :  { %v1958_v9 = vpack.c.bf16 %v1467_v21, %v1467_v21  ;;  %v1418_v47 = vadd.f32 %v3393_v0, %v1361_v24  ;;  %v1070_v45 = vmax.f32 %v3947_v44, %v957_v38 }
 0x204   :  { %v2350_v46 = vpop.f32.mrf.mxu0  ;;  %v2452_v61 = vpop.f32.mrf.mxu1 }
 0x205   :  { %1718 = vst.msk [vmem:[%s3795_s3 + $0x6c] sm:$0xf] %vm1690_vm2, %v1958_v9  ;;  %v1468_v23 = vmax.f32 %v1418_v47, 0.0  ;;  %v1362_v60 = vmax.f32 %v1070_v45, %v1249_v52  ;;  %v3958_v47 = vld [vmem:[#allocation26_spill] sm:$0xff] }
 0x206   :  { %v962_v48 = vpop.f32.mrf.mxu0  ;;  %v1254_v58 = vpop.f32.mrf.mxu1  ;;  %v3959_v22 = vmax.f32 %v3223_v13, %v3958_v47 }
 0x207   :  { %v1959_v8 = vpack.c.bf16 %v1468_v23, %v1468_v23  ;;  %v1419_v25 = vadd.f32 %v3393_v0, %v1362_v60  ;;  %v1071_v53 = vmax.f32 %v3949_v35, %v962_v48 }
 0x208   :  { %v2353_v54 = vpop.f32.mrf.mxu0  ;;  %v2455_v57 = vpop.f32.mrf.mxu1 }
 0x209   :  { %1719 = vst.msk [vmem:[%s3795_s3 + $0x70] sm:$0xf] %vm1690_vm2, %v1959_v8  ;;  %v1469_v36 = vmax.f32 %v1419_v25, 0.0  ;;  %v1363_v42 = vmax.f32 %v1071_v53, %v1254_v58  ;;  %v3960_v8 = vld [vmem:[#allocation27_spill] sm:$0xff]  ;;  %v3961_v25 = vld [vmem:[#allocation28_spill] sm:$0xff] }
 0x20a   :  { %v965_v6 = vpop.f32.mrf.mxu0  ;;  %v1257_v37 = vpop.f32.mrf.mxu1  ;;  %v3962_v26 = vmax.f32 %v3960_v8, %v3961_v25 }
 0x20b   :  { %v1960_v10 = vpack.c.bf16 %v1469_v36, %v1469_v36  ;;  %v1420_v27 = vadd.f32 %v3393_v0, %v1363_v42  ;;  %v1072_v3 = vmax.f32 %v3952_v2, %v965_v6 }
 0x20c   :  { %v2354_v51 = vpop.f32.mrf.mxu0  ;;  %v2456_v28 = vpop.f32.mrf.mxu1 }
 0x20d   :  { %1720 = vst.msk [vmem:[%s3795_s3 + $0x74] sm:$0xf] %vm1690_vm2, %v1960_v10  ;;  %v1470_v1 = vmax.f32 %v1420_v27, 0.0  ;;  %v1364_v5 = vmax.f32 %v1072_v3, %v1257_v37  ;;  %v3963_v10 = vld [vmem:[#allocation29_spill] sm:$0xff] }
 0x20e   :  { %v970_v62 = vpop.f32.mrf.mxu0  ;;  %v1262_v19 = vpop.f32.mrf.mxu1  ;;  %v3964_v27 = vmax.f32 %v3243_v14, %v3963_v10 }
 0x20f   :  { %v1961_v59 = vpack.c.bf16 %v1470_v1, %v1470_v1  ;;  %v1421_v20 = vadd.f32 %v3393_v0, %v1364_v5  ;;  %v1073_v41 = vmax.f32 %v3954_v40, %v970_v62  ;;  %v3965_v62 = vld [vmem:[#allocation30_spill] sm:$0xff] }
 0x210   :  { %v2357_v4 = vpop.f32.mrf.mxu0  ;;  %v2459_v39 = vpop.f32.mrf.mxu1 }
 0x211   :  { %1721 = vst.msk [vmem:[%s3795_s3 + $0x78] sm:$0xf] %vm1690_vm2, %v1961_v59  ;;  %v1471_v18 = vmax.f32 %v1421_v20, 0.0  ;;  %v1365_v7 = vmax.f32 %v1073_v41, %v1262_v19  ;;  %v3966_v59 = vld [vmem:[#allocation31_spill] sm:$0xff] }
 0x212   :  { %v973_v49 = vpop.f32.mrf.mxu0  ;;  %v1265_v12 = vpop.f32.mrf.mxu1  ;;  %v3967_v20 = vmax.f32 %v3965_v62, %v3966_v59 }
 0x213   :  { %v1962_v34 = vpack.c.bf16 %v1471_v18, %v1471_v18  ;;  %v1422_v11 = vadd.f32 %v3393_v0, %v1365_v7  ;;  %v1074_v63 = vmax.f32 %v3957_v55, %v973_v49  ;;  %v3968_v49 = vld [vmem:[#allocation32_spill] sm:$0xff] }
 0x214   :  { %v2358_v56 = vpop.f32.mrf.mxu0  ;;  %v2460_v24 = vpop.f32.mrf.mxu1 }
 0x215   :  { %1722 = vst.msk [vmem:[%s3795_s3 + $0x7c] sm:$0xf] %vm1690_vm2, %v1962_v34  ;;  %v1472_v31 = vmax.f32 %v1422_v11, 0.0  ;;  %v1366_v21 = vmax.f32 %v1074_v63, %v1265_v12  ;;  %v3969_v34 = vmax.f32 %v3263_v15, %v3968_v49  ;;  %v3970_v24 = vld [vmem:[#allocation33_spill] sm:$0xff] }
 0x216   :  { %v978_v29 = vpop.f32.mrf.mxu0  ;;  %v1270_v44 = vpop.f32.mrf.mxu1 }
 0x217   :  { %v1963_v38 = vpack.c.bf16 %v1472_v31, %v1472_v31  ;;  %v1423_v9 = vadd.f32 %v3393_v0, %v1366_v21  ;;  %v1075_v43 = vmax.f32 %v3959_v22, %v978_v29  ;;  %v3971_v29 = vld [vmem:[#allocation34_spill] sm:$0xff] }
 0x218   :  { %v2361_v45 = vpop.f32.mrf.mxu0  ;;  %v2463_v23 = vpop.f32.mrf.mxu1 }
 0x219   :  { %1723 = vst.msk [vmem:[%s3795_s3 + $0x80] sm:$0xf] %vm1690_vm2, %v1963_v38  ;;  %v1473_v52 = vmax.f32 %v1423_v9, 0.0  ;;  %v1367_v46 = vmax.f32 %v1075_v43, %v1270_v44  ;;  %v3972_v38 = vmax.f32 %v3970_v24, %v3971_v29  ;;  %v3973_v23 = vld [vmem:[#allocation35_spill] sm:$0xff] }
 0x21a   :  { %v981_v60 = vpop.f32.mrf.mxu0  ;;  %v1273_v13 = vpop.f32.mrf.mxu1 }
 0x21b   :  { %v1964_v61 = vpack.c.bf16 %v1473_v52, %v1473_v52  ;;  %v1424_v48 = vadd.f32 %v3393_v0, %v1367_v46  ;;  %v1076_v35 = vmax.f32 %v3962_v26, %v981_v60  ;;  %v3974_v60 = vmax.f32 %v3283_v16, %v3973_v23 }
 0x21c   :  { %v2362_v53 = vpop.f32.mrf.mxu0  ;;  %v2464_v36 = vpop.f32.mrf.mxu1 }
 0x21d   :  { %1724 = vst.msk [vmem:[%s3795_s3 + $0x84] sm:$0xf] %vm1690_vm2, %v1964_v61  ;;  %v1474_v58 = vmax.f32 %v1424_v48, 0.0  ;;  %v1368_v54 = vmax.f32 %v1076_v35, %v1273_v13  ;;  %v3976_v36 = vld [vmem:[#allocation37_spill] sm:$0xff] }
 0x21e   :  { %v986_v42 = vpop.f32.mrf.mxu0  ;;  %v1278_v32 = vpop.f32.mrf.mxu1 }
 0x21f   :  { %v1965_v57 = vpack.c.bf16 %v1474_v58, %v1474_v58  ;;  %v1425_v6 = vadd.f32 %v3393_v0, %v1368_v54  ;;  %v1077_v50 = vmax.f32 %v3964_v27, %v986_v42  ;;  %v3975_v54 = vld [vmem:[#allocation36_spill] sm:$0xff] }
 0x220   :  { %v2365_v2 = vpop.f32.mrf.mxu0  ;;  %v2467_v51 = vpop.f32.mrf.mxu1  ;;  %v3977_v42 = vmax.f32 %v3975_v54, %v3976_v36 }
 0x221   :  { %1725 = vst.msk [vmem:[%s3795_s3 + $0x88] sm:$0xf] %vm1690_vm2, %v1965_v57  ;;  %v1475_v3 = vmax.f32 %v1425_v6, 0.0  ;;  %v1369_v37 = vmax.f32 %v1077_v50, %v1278_v32  ;;  %v3979_v51 = vld [vmem:[#allocation39_spill] sm:$0xff] }
 0x222   :  { %v989_v1 = vpop.f32.mrf.mxu0  ;;  %v1281_v14 = vpop.f32.mrf.mxu1 }
 0x223   :  { %v1966_v5 = vpack.c.bf16 %v1475_v3, %v1475_v3  ;;  %v1426_v28 = vadd.f32 %v3393_v0, %v1369_v37  ;;  %v1078_v30 = vmax.f32 %v3967_v20, %v989_v1  ;;  %v3978_v37 = vld [vmem:[#allocation38_spill] sm:$0xff] }
 0x224   :  { %v2366_v40 = vpop.f32.mrf.mxu0  ;;  %v2468_v4 = vpop.f32.mrf.mxu1  ;;  %v3980_v1 = vmax.f32 %v3978_v37, %v3979_v51 }
 0x225   :  { %1726 = vst.msk [vmem:[%s3795_s3 + $0x8c] sm:$0xf] %vm1690_vm2, %v1966_v5  ;;  %v1476_v41 = vmax.f32 %v1426_v28, 0.0  ;;  %v1370_v19 = vmax.f32 %v1078_v30, %v1281_v14  ;;  %v3982_v4 = vld [vmem:[#allocation41_spill] sm:$0xff] }
 0x226   :  { %v994_v18 = vpop.f32.mrf.mxu0  ;;  %v1286_v33 = vpop.f32.mrf.mxu1 }
 0x227   :  { %v1967_v7 = vpack.c.bf16 %v1476_v41, %v1476_v41  ;;  %v1427_v39 = vadd.f32 %v3393_v0, %v1370_v19  ;;  %v1079_v11 = vmax.f32 %v3969_v34, %v994_v18  ;;  %v3981_v19 = vld [vmem:[#allocation40_spill] sm:$0xff] }
 0x228   :  { %v2369_v17 = vpop.f32.mrf.mxu0  ;;  %v2471_v12 = vpop.f32.mrf.mxu1  ;;  %v3983_v18 = vmax.f32 %v3981_v19, %v3982_v4 }
 0x229   :  { %1727 = vst.msk [vmem:[%s3795_s3 + $0x90] sm:$0xf] %vm1690_vm2, %v1967_v7  ;;  %v1477_v55 = vmax.f32 %v1427_v39, 0.0  ;;  %v1371_v63 = vmax.f32 %v1079_v11, %v1286_v33  ;;  %v3984_v12 = vld [vmem:[#allocation42_spill] sm:$0xff] }
 0x22a   :  { %v997_v56 = vpop.f32.mrf.mxu0  ;;  %v1289_v15 = vpop.f32.mrf.mxu1 }
 0x22b   :  { %v1968_v31 = vpack.c.bf16 %v1477_v55, %v1477_v55  ;;  %v1428_v21 = vadd.f32 %v3393_v0, %v1371_v63  ;;  %v1080_v9 = vmax.f32 %v3972_v38, %v997_v56  ;;  %v3985_v56 = vld [vmem:[#allocation43_spill] sm:$0xff] }
 0x22c   :  { %v2370_v47 = vpop.f32.mrf.mxu0  ;;  %v2472_v44 = vpop.f32.mrf.mxu1 }
 0x22d   :  { %1728 = vst.msk [vmem:[%s3795_s3 + $0x94] sm:$0xf] %vm1690_vm2, %v1968_v31  ;;  %v1478_v22 = vmax.f32 %v1428_v21, 0.0  ;;  %v1372_v43 = vmax.f32 %v1080_v9, %v1289_v15  ;;  %v3986_v31 = vmax.f32 %v3984_v12, %v3985_v56  ;;  %v3987_v44 = vld [vmem:[#allocation44_spill] sm:$0xff] }
 0x22e   :  { %v1002_v45 = vpop.f32.mrf.mxu0  ;;  %v1294_v48 = vpop.f32.mrf.mxu1 }
 0x22f   :  { %v1969_v52 = vpack.c.bf16 %v1478_v22, %v1478_v22  ;;  %v1429_v46 = vadd.f32 %v3393_v0, %v1372_v43  ;;  %v1081_v61 = vmax.f32 %v3974_v60, %v1002_v45  ;;  %v3988_v45 = vld [vmem:[#allocation45_spill] sm:$0xff] }
 0x230   :  { %v2373_v8 = vpop.f32.mrf.mxu0  ;;  %v2475_v35 = vpop.f32.mrf.mxu1 }
 0x231   :  { %1729 = vst.msk [vmem:[%s3795_s3 + $0x98] sm:$0xf] %vm1690_vm2, %v1969_v52  ;;  %v1479_v25 = vmax.f32 %v1429_v46, 0.0  ;;  %v1373_v26 = vmax.f32 %v1081_v61, %v1294_v48  ;;  %v3989_v52 = vmax.f32 %v3987_v44, %v3988_v45 }
 0x232   :  { %v1005_v13 = vpop.f32.mrf.mxu0  ;;  %v1297_v16 = vpop.f32.mrf.mxu1 }
 0x233   :  { %v1970_v53 = vpack.c.bf16 %v1479_v25, %v1479_v25  ;;  %v1430_v58 = vadd.f32 %v3393_v0, %v1373_v26  ;;  %v1082_v57 = vmax.f32 %v3977_v42, %v1005_v13  ;;  %v3990_v13 = vld [vmem:[#allocation46_spill] sm:$0xff] }
 0x234   :  { %v2374_v6 = vpop.f32.mrf.mxu0  ;;  %v2476_v50 = vpop.f32.mrf.mxu1 }
 0x235   :  { %1730 = vst.msk [vmem:[%s3795_s3 + $0x9c] sm:$0xf] %vm1690_vm2, %v1970_v53  ;;  %v1480_v10 = vmax.f32 %v1430_v58, 0.0  ;;  %v1374_v27 = vmax.f32 %v1082_v57, %v1297_v16  ;;  %v3991_v53 = vld [vmem:[#allocation47_spill] sm:$0xff] }
 0x236   :  { %v1010_v32 = vpop.f32.mrf.mxu0  ;;  %v1302_v28 = vpop.f32.mrf.mxu1  ;;  %v3992_v58 = vmax.f32 %v3990_v13, %v3991_v53 }
 0x237   :  { %v1971_v2 = vpack.c.bf16 %v1480_v10, %v1480_v10  ;;  %v1431_v3 = vadd.f32 %v3393_v0, %v1374_v27  ;;  %v1083_v5 = vmax.f32 %v3980_v1, %v1010_v32  ;;  %v3993_v32 = vld [vmem:[#allocation48_spill] sm:$0xff] }
 0x238   :  { %v2377_v62 = vpop.f32.mrf.mxu0  ;;  %v2479_v30 = vpop.f32.mrf.mxu1 }
 0x239   :  { %1731 = vst.msk [vmem:[%s3795_s3 + $0xa0] sm:$0xf] %vm1690_vm2, %v1971_v2  ;;  %v1481_v59 = vmax.f32 %v1431_v3, 0.0  ;;  %v1375_v20 = vmax.f32 %v1083_v5, %v1302_v28  ;;  %v3994_v2 = vld [vmem:[#allocation49_spill] sm:$0xff] }
 0x23a   :  { %v1013_v14 = vpop.f32.mrf.mxu0  ;;  %v1305_v39 = vpop.f32.mrf.mxu1  ;;  %v3995_v3 = vmax.f32 %v3993_v32, %v3994_v2 }
 0x23b   :  { %v1972_v40 = vpack.c.bf16 %v1481_v59, %v1481_v59  ;;  %v1432_v41 = vadd.f32 %v3393_v0, %v1375_v20  ;;  %v1084_v7 = vmax.f32 %v3983_v18, %v1013_v14  ;;  %v3996_v14 = vld [vmem:[#allocation50_spill] sm:$0xff] }
 0x23c   :  { %v2378_v49 = vpop.f32.mrf.mxu0  ;;  %v2480_v33 = vpop.f32.mrf.mxu1 }
 0x23d   :  { %1732 = vst.msk [vmem:[%s3795_s3 + $0xa4] sm:$0xf] %vm1690_vm2, %v1972_v40  ;;  %v1482_v34 = vmax.f32 %v1432_v41, 0.0  ;;  %v1376_v11 = vmax.f32 %v1084_v7, %v1305_v39  ;;  %v3997_v40 = vld [vmem:[#allocation51_spill] sm:$0xff] }
 0x23e   :  { %v1018_v17 = vpop.f32.mrf.mxu0  ;;  %v1310_v24 = vpop.f32.mrf.mxu1  ;;  %v3998_v41 = vmax.f32 %v3996_v14, %v3997_v40 }
 0x23f   :  { %v1973_v55 = vpack.c.bf16 %v1482_v34, %v1482_v34  ;;  %v1433_v63 = vadd.f32 %v3393_v0, %v1376_v11  ;;  %v1085_v21 = vmax.f32 %v3986_v31, %v1018_v17  ;;  %v3999_v17 = vld [vmem:[#allocation52_spill] sm:$0xff] }
 0x240   :  { %v2381_v29 = vpop.f32.mrf.mxu0  ;;  %v2483_v15 = vpop.f32.mrf.mxu1 }
 0x241   :  { %1733 = vst.msk [vmem:[%s3795_s3 + $0xa8] sm:$0xf] %vm1690_vm2, %v1973_v55  ;;  %v1483_v38 = vmax.f32 %v1433_v63, 0.0  ;;  %v1377_v9 = vmax.f32 %v1085_v21, %v1310_v24  ;;  %v4000_v55 = vld [vmem:[#allocation53_spill] sm:$0xff] }
 0x242   :  { %v1021_v47 = vpop.f32.mrf.mxu0  ;;  %v1313_v23 = vpop.f32.mrf.mxu1  ;;  %v4001_v63 = vmax.f32 %v3999_v17, %v4000_v55 }
 0x243   :  { %v1974_v22 = vpack.c.bf16 %v1483_v38, %v1483_v38  ;;  %v1434_v43 = vadd.f32 %v3393_v0, %v1377_v9  ;;  %v1086_v46 = vmax.f32 %v3989_v52, %v1021_v47 }
 0x244   :  { %v2382_v60 = vpop.f32.mrf.mxu0  ;;  %v2484_v8 = vpop.f32.mrf.mxu1 }
 0x245   :  { %1734 = vst.msk [vmem:[%s3795_s3 + $0xac] sm:$0xf] %vm1690_vm2, %v1974_v22  ;;  %v1484_v61 = vmax.f32 %v1434_v43, 0.0  ;;  %v1378_v48 = vmax.f32 %v1086_v46, %v1313_v23 }
 0x246   :  { %v1026_v25 = vpop.f32.mrf.mxu0  ;;  %v1318_v36 = vpop.f32.mrf.mxu1 }
 0x247   :  { %v1975_v26 = vpack.c.bf16 %v1484_v61, %v1484_v61  ;;  %v1435_v35 = vadd.f32 %v3393_v0, %v1378_v48  ;;  %v1087_v54 = vmax.f32 %v3992_v58, %v1026_v25 }
 0x248   :  { %v2385_v42 = vpop.f32.mrf.mxu0  ;;  %v2487_v6 = vpop.f32.mrf.mxu1 }
 0x249   :  { %1735 = vst.msk [vmem:[%s3795_s3 + $0xb0] sm:$0xf] %vm1690_vm2, %v1975_v26  ;;  %v1485_v57 = vmax.f32 %v1435_v35, 0.0  ;;  %v1379_v16 = vmax.f32 %v1087_v54, %v1318_v36 }
 0x24a   :  { %v1029_v10 = vpop.f32.mrf.mxu0  ;;  %v1321_v51 = vpop.f32.mrf.mxu1 }
 0x24b   :  { %v1976_v27 = vpack.c.bf16 %v1485_v57, %v1485_v57  ;;  %v1436_v50 = vadd.f32 %v3393_v0, %v1379_v16  ;;  %v1088_v37 = vmax.f32 %v3995_v3, %v1029_v10 }
 0x24c   :  { %v2386_v1 = vpop.f32.mrf.mxu0  ;;  %v2488_v62 = vpop.f32.mrf.mxu1 }
 0x24d   :  { %1736 = vst.msk [vmem:[%s3795_s3 + $0xb4] sm:$0xf] %vm1690_vm2, %v1976_v27  ;;  %v1486_v5 = vmax.f32 %v1436_v50, 0.0  ;;  %v1380_v28 = vmax.f32 %v1088_v37, %v1321_v51 }
 0x24e   :  { %v1034_v59 = vpop.f32.mrf.mxu0  ;;  %v1326_v4 = vpop.f32.mrf.mxu1 }
 0x24f   :  { %v1977_v20 = vpack.c.bf16 %v1486_v5, %v1486_v5  ;;  %v1437_v30 = vadd.f32 %v3393_v0, %v1380_v28  ;;  %v1089_v19 = vmax.f32 %v3998_v41, %v1034_v59 }
 0x250   :  { %v2389_v18 = vpop.f32.mrf.mxu0  ;;  %v2491_v49 = vpop.f32.mrf.mxu1 }
 0x251   :  { %1737 = vst.msk [vmem:[%s3795_s3 + $0xb8] sm:$0xf] %vm1690_vm2, %v1977_v20  ;;  %v1487_v7 = vmax.f32 %v1437_v30, 0.0  ;;  %v1381_v39 = vmax.f32 %v1089_v19, %v1326_v4 }
 0x252   :  { %v1037_v34 = vpop.f32.mrf.mxu0  ;;  %v1329_v56 = vpop.f32.mrf.mxu1 }
 0x253   :  { %v1978_v11 = vpack.c.bf16 %v1487_v7, %v1487_v7  ;;  %v1438_v33 = vadd.f32 %v3393_v0, %v1381_v39  ;;  %v1090_v12 = vmax.f32 %v4001_v63, %v1037_v34 }
 0x254   :  { %v2390_v31 = vpop.f32.mrf.mxu0  ;;  %v2492_v29 = vpop.f32.mrf.mxu1 }
 0x255   :  { %1738 = vst.msk [vmem:[%s3795_s3 + $0xbc] sm:$0xf] %vm1690_vm2, %v1978_v11  ;;  %v1488_v21 = vmax.f32 %v1438_v33, 0.0  ;;  %v1382_v24 = vmax.f32 %v1090_v12, %v1329_v56 }
 0x257   :  { %v1979_v38 = vpack.c.bf16 %v1488_v21, %v1488_v21  ;;  %v1439_v9 = vadd.f32 %v3393_v0, %v1382_v24 }
 0x259   :  { %1739 = vst.msk [vmem:[%s3795_s3 + $0xc0] sm:$0xf] %vm1690_vm2, %v1979_v38  ;;  %v1489_v15 = vmax.f32 %v1439_v9, 0.0 }
 0x25b   :  { %v1980_v47 = vpack.c.bf16 %v1489_v15, %v1489_v15 }
 0x25d   :  { %1740 = vst.msk [vmem:[%s3795_s3 + $0xc4] sm:$0xf] %vm1690_vm2, %v1980_v47 }

// kernel: simple_char_cnn_forward.4
= control target key start
LH: loop header
LB: loop body
LE: loop exit
PB: predicated region body
PF: predicated region fallthrough
CT: control target
= control target key end

     0   :  { %vm1103_vm0 = vcmask 257024   ;;  %s2163_s1 = inlined_call_operand.vmem [shape: bf16[4,256,32], index: 1, kind: input, shape index: {}]   ;;  %s2164_s0 = inlined_call_operand.vmem [shape: bf16[112,256], index: 0, kind: input, shape index: {}]   ;;  %s2165_s2 = inlined_call_operand.vmem [shape: f32[1,32], index: 2, kind: input, shape index: {}]   ;;  %s2166_s3 = inlined_call_operand.vmem [shape: bf16[112,32], index: 3, kind: output, shape index: {}]  }
   0x1   :  { %v1557_v0 = vld [vmem:[%s2163_s1 + $0x78] sm:$0xff]   ;;  %v1561_v4 = vld [vmem:[%s2163_s1 + $0x70] sm:$0xff]   ;;  %v1565_v8 = vld [vmem:[%s2163_s1 + $0x68] sm:$0xff]  }
   0x2   :  { %v1558_v1 = vld [vmem:[%s2163_s1 + $0xf8] sm:$0xff]   ;;  %1325 = vmatprep.subr.bf16.mxu0 %v1557_v0  ;;  %v1562_v5 = vld [vmem:[%s2163_s1 + $0xf0] sm:$0xff]   ;;  %v1566_v9 = vld [vmem:[%s2163_s1 + $0xe8] sm:$0xff]  }
   0x3   :  { %v1559_v2 = vld [vmem:[%s2163_s1 + $0x38] sm:$0xff]   ;;  %1383 = vmatprep.subr.bf16.mxu1 %v1558_v1  ;;  %v1563_v6 = vld [vmem:[%s2163_s1 + $0x30] sm:$0xff]   ;;  %v1567_v10 = vld [vmem:[%s2163_s1 + $0x28] sm:$0xff]  }
   0x4   :  { %v1560_v3 = vld [vmem:[%s2163_s1 + $0xb8] sm:$0xff]   ;;  %1326 = vmatpush3.bf16.msra.mxu0 %v1559_v2  ;;  %v1564_v7 = vld [vmem:[%s2163_s1 + $0xb0] sm:$0xff]   ;;  %v1568_v11 = vld [vmem:[%s2163_s1 + $0xa8] sm:$0xff]  }
   0x5   :  { %1384 = vmatpush3.bf16.msra.mxu1 %v1560_v3  ;;  %1327 = vmatprep.subr.bf16.mxu0 %v1561_v4  ;;  %v1569_v12 = vld [vmem:[%s2163_s1 + $0x60] sm:$0xff]   ;;  %v1573_v16 = vld [vmem:[%s2163_s1 + $0x58] sm:$0xff]   ;;  %v1577_v20 = vld [vmem:[%s2163_s1 + $0x50] sm:$0xff]  }
   0x6   :  { %1385 = vmatprep.subr.bf16.mxu1 %v1562_v5  ;;  %v1570_v13 = vld [vmem:[%s2163_s1 + $0xe0] sm:$0xff]   ;;  %v1574_v17 = vld [vmem:[%s2163_s1 + $0xd8] sm:$0xff]   ;;  %v1578_v21 = vld [vmem:[%s2163_s1 + $0xd0] sm:$0xff]  }
   0x7   :  { %v1571_v14 = vld [vmem:[%s2163_s1 + $0x20] sm:$0xff]   ;;  %v1575_v18 = vld [vmem:[%s2163_s1 + $0x18] sm:$0xff]   ;;  %v1579_v22 = vld [vmem:[%s2163_s1 + $0x10] sm:$0xff]  }
   0x8   :  { %1328 = vmatpush3.bf16.msra.mxu0 %v1563_v6  ;;  %v1572_v15 = vld [vmem:[%s2163_s1 + $0xa0] sm:$0xff]   ;;  %v1576_v19 = vld [vmem:[%s2163_s1 + $0x98] sm:$0xff]   ;;  %v1580_v23 = vld [vmem:[%s2163_s1 + $0x90] sm:$0xff]  }
   0x9   :  { %1386 = vmatpush3.bf16.msra.mxu1 %v1564_v7  ;;  %1329 = vmatprep.subr.bf16.mxu0 %v1565_v8  ;;  %v1581_v24 = vld [vmem:[%s2163_s1 + $0x48] sm:$0xff]   ;;  %v1585_v28 = vld [vmem:[%s2163_s1 + $0x40] sm:$0xff]   ;;  %v1592_v34 = vld [vmem:[%s2163_s1 + $0x178] sm:$0xff]  }
   0xa   :  { %1387 = vmatprep.subr.bf16.mxu1 %v1566_v9  ;;  %v1582_v25 = vld [vmem:[%s2163_s1 + $0xc8] sm:$0xff]   ;;  %v1586_v29 = vld [vmem:[%s2163_s1 + $0xc0] sm:$0xff]   ;;  %v1593_v35 = vld [vmem:[%s2163_s1 + $0x138] sm:$0xff]  }
   0xb   :  { %v1583_v26 = vld [vmem:[%s2163_s1 + $0x8] sm:$0xff]   ;;  %v1587_v30 = vld [vmem:[%s2163_s1] sm:$0xff]   ;;  %v1594_v36 = vld [vmem:[%s2163_s1 + $0x1f8] sm:$0xff]  }
   0xc   :  { %1330 = vmatpush3.bf16.msra.mxu0 %v1567_v10  ;;  %v1584_v27 = vld [vmem:[%s2163_s1 + $0x88] sm:$0xff]   ;;  %v1588_v31 = vld [vmem:[%s2163_s1 + $0x80] sm:$0xff]   ;;  %v1595_v37 = vld [vmem:[%s2163_s1 + $0x1b8] sm:$0xff]  }
   0xd   :  { %1388 = vmatpush3.bf16.msra.mxu1 %v1568_v11  ;;  %1331 = vmatprep.subr.bf16.mxu0 %v1569_v12  ;;  %v1761_v32 = vld [vmem:[%s2164_s0 + $0x4] ss:$8 sps:$4 sm:$0xff]   ;;  %v1766_v33 = vld [vmem:[%s2164_s0] ss:$8 sps:$4 sm:$0xff]   ;;  %v1787_v38 = vld [vmem:[%s2164_s0 + $0x14] ss:$8 sps:$4 sm:$0xff]  }
   0xe   :  { %1389 = vmatprep.subr.bf16.mxu1 %v1570_v13  ;;  %259 = vmatprep.mubr.bf16.mxu0 %v1761_v32  ;;  %v1598_v39 = vld [vmem:[%s2163_s1 + $0x170] sm:$0xff]   ;;  %v1603_v44 = vld [vmem:[%s2163_s1 + $0x168] sm:$0xff]   ;;  %v1610_v50 = vld [vmem:[%s2163_s1 + $0x160] sm:$0xff]  }
   0xf   :  { %477 = vmatprep.mubr.bf16.mxu1 %v1761_v32  ;;  %v1795_v40 = vld [vmem:[%s2164_s0 + $0x10] ss:$8 sps:$4 sm:$0xff]   ;;  %v1816_v45 = vld [vmem:[%s2164_s0 + $0x24] ss:$8 sps:$4 sm:$0xff]   ;;  %v1824_v47 = vld [vmem:[%s2164_s0 + $0x20] ss:$8 sps:$4 sm:$0xff]  }
  0x10   :  { %1332 = vmatpush3.bf16.msra.mxu0 %v1571_v14  ;;  %v1600_v41 = vld [vmem:[%s2163_s1 + $0x130] sm:$0xff]   ;;  %v1606_v46 = vld [vmem:[%s2163_s1 + $0x128] sm:$0xff]   ;;  %v1611_v51 = vld [vmem:[%s2163_s1 + $0x120] sm:$0xff]  }
  0x11   :  { %1390 = vmatpush3.bf16.msra.mxu1 %v1572_v15  ;;  %1333 = vmatprep.subr.bf16.mxu0 %v1573_v16  ;;  %v1601_v42 = vld [vmem:[%s2163_s1 + $0x1f0] sm:$0xff]   ;;  %v1608_v48 = vld [vmem:[%s2163_s1 + $0x1e8] sm:$0xff]   ;;  %v1614_v53 = vld [vmem:[%s2163_s1 + $0x1e0] sm:$0xff]  }
  0x12   :  { %1391 = vmatprep.subr.bf16.mxu1 %v1574_v17  ;;  %v1602_v43 = vld [vmem:[%s2163_s1 + $0x1b0] sm:$0xff]   ;;  %v1609_v49 = vld [vmem:[%s2163_s1 + $0x1a8] sm:$0xff]   ;;  %v1616_v55 = vld [vmem:[%s2163_s1 + $0x1a0] sm:$0xff]  }
  0x13   :  { %v1843_v52 = vld [vmem:[%s2164_s0 + $0x34] ss:$8 sps:$4 sm:$0xff]   ;;  %v1855_v54 = vld [vmem:[%s2164_s0 + $0x30] ss:$8 sps:$4 sm:$0xff]   ;;  %v1872_v59 = vld [vmem:[%s2164_s0 + $0x44] ss:$8 sps:$4 sm:$0xff]  }
  0x14   :  { %1334 = vmatpush3.bf16.msra.mxu0 %v1575_v18  ;;  %v1617_v56 = vld [vmem:[%s2163_s1 + $0x158] sm:$0xff]   ;;  %v1624_v61 = vld [vmem:[%s2163_s1 + $0x150] sm:$0xff]   ;;  %v1623_v1 = vld [vmem:[%s2164_s0 + $0x40] ss:$8 sps:$4 sm:$0xff]  }
  0x15   :  { %1392 = vmatpush3.bf16.msra.mxu1 %v1576_v19  ;;  %1335 = vmatprep.subr.bf16.mxu0 %v1577_v20  ;;  %v1618_v57 = vld [vmem:[%s2163_s1 + $0x118] sm:$0xff]   ;;  %v1625_v62 = vld [vmem:[%s2163_s1 + $0x110] sm:$0xff]   ;;  %v1631_v3 = vld [vmem:[%s2163_s1 + $0x148] sm:$0xff]  }
  0x16   :  { %1393 = vmatprep.subr.bf16.mxu1 %v1578_v21  ;;  %v1619_v58 = vld [vmem:[%s2163_s1 + $0x1d8] sm:$0xff]   ;;  %v1626_v63 = vld [vmem:[%s2163_s1 + $0x1d0] sm:$0xff]   ;;  %v1632_v4 = vld [vmem:[%s2163_s1 + $0x108] sm:$0xff]  }
  0x17   :  { %v1622_v60 = vld [vmem:[%s2163_s1 + $0x198] sm:$0xff]   ;;  %v1627_v0 = vld [vmem:[%s2163_s1 + $0x190] sm:$0xff]   ;;  %v1633_v5 = vld [vmem:[%s2163_s1 + $0x1c8] sm:$0xff]  }
  0x18   :  { %1336 = vmatpush3.bf16.msra.mxu0 %v1579_v22  ;;  %v1628_v2 = vld [vmem:[%s2164_s0 + $0x54] ss:$8 sps:$4 sm:$0xff]   ;;  %v1634_v6 = vld [vmem:[%s2163_s1 + $0x188] sm:$0xff]   ;;  %v1630_v7 = vld [vmem:[%s2164_s0 + $0x50] ss:$8 sps:$4 sm:$0xff]  }
  0x19   :  { %1394 = vmatpush3.bf16.msra.mxu1 %v1580_v23  ;;  %1337 = vmatprep.subr.bf16.mxu0 %v1581_v24  ;;  %v1635_v8 = vld [vmem:[%s2164_s0 + $0x64] ss:$8 sps:$4 sm:$0xff]   ;;  %v1637_v13 = vld [vmem:[%s2164_s0 + $0x60] ss:$8 sps:$4 sm:$0xff]  }
  0x1a   :  { %1395 = vmatprep.subr.bf16.mxu1 %v1582_v25  ;;  %v1638_v9 = vld [vmem:[%s2163_s1 + $0x140] sm:$0xff]  }
  0x1b   :  { %v1639_v10 = vld [vmem:[%s2163_s1 + $0x100] sm:$0xff]  }
  0x1c   :  { %1338 = vmatpush3.bf16.msra.mxu0 %v1583_v26  ;;  %v1640_v11 = vld [vmem:[%s2163_s1 + $0x1c0] sm:$0xff]  }
  0x1d   :  { %1396 = vmatpush3.bf16.msra.mxu1 %v1584_v27  ;;  %1339 = vmatprep.subr.bf16.mxu0 %v1585_v28  ;;  %v1641_v12 = vld [vmem:[%s2163_s1 + $0x180] sm:$0xff]  }
  0x1e   :  { %1397 = vmatprep.subr.bf16.mxu1 %v1586_v29 }
  0x20   :  { %1340 = vmatpush3.bf16.msra.mxu0 %v1587_v30 }
  0x21   :  { %1398 = vmatpush3.bf16.msra.mxu1 %v1588_v31  ;;  %1441 = vmatprep.subr.bf16.mxu0 %v1592_v34 }
  0x22   :  { %1499 = vmatprep.subr.bf16.mxu1 %v1594_v36 }
  0x23   :  { %260 = vmatmul.mubr.bf16.vlgmr.msra.gmra.mxu0 %v1766_v33 }
  0x24   :  { %478 = vmatmul.mubr.bf16.vlgmr.msra.gmra.mxu1 %v1766_v33  ;;  %1442 = vmatpush3.bf16.msra.mxu0 %v1593_v35 }
  0x25   :  { %1500 = vmatpush3.bf16.msra.mxu1 %v1595_v37  ;;  %267 = vmatprep.mubr.bf16.mxu0 %v1787_v38 }
  0x26   :  { %485 = vmatprep.mubr.bf16.mxu1 %v1787_v38  ;;  %1443 = vmatprep.subr.bf16.mxu0 %v1598_v39 }
  0x27   :  { %1501 = vmatprep.subr.bf16.mxu1 %v1601_v42 }
  0x28   :  { %1444 = vmatpush3.bf16.msra.mxu0 %v1600_v41 }
  0x29   :  { %1502 = vmatpush3.bf16.msra.mxu1 %v1602_v43  ;;  %1445 = vmatprep.subr.bf16.mxu0 %v1603_v44 }
  0x2a   :  { %1503 = vmatprep.subr.bf16.mxu1 %v1608_v48 }
  0x2b   :  { %268 = vmatmul.mubr.bf16.gmra.mxu0 %v1795_v40 }
  0x2c   :  { %486 = vmatmul.mubr.bf16.gmra.mxu1 %v1795_v40  ;;  %275 = vmatprep.mubr.bf16.mxu0 %v1816_v45 }
  0x2d   :  { %493 = vmatprep.mubr.bf16.mxu1 %v1816_v45  ;;  %1446 = vmatpush3.bf16.msra.mxu0 %v1606_v46 }
  0x2e   :  { %1504 = vmatpush3.bf16.msra.mxu1 %v1609_v49  ;;  %1447 = vmatprep.subr.bf16.mxu0 %v1610_v50 }
  0x2f   :  { %1505 = vmatprep.subr.bf16.mxu1 %v1614_v53 }
  0x31   :  { %1448 = vmatpush3.bf16.msra.mxu0 %v1611_v51 }
  0x32   :  { %1506 = vmatpush3.bf16.msra.mxu1 %v1616_v55  ;;  %1449 = vmatprep.subr.bf16.mxu0 %v1617_v56 }
  0x33   :  { %276 = vmatmul.mubr.bf16.gmra.mxu0 %v1824_v47  ;;  %1507 = vmatprep.subr.bf16.mxu1 %v1619_v58 }
  0x34   :  { %494 = vmatmul.mubr.bf16.gmra.mxu1 %v1824_v47  ;;  %283 = vmatprep.mubr.bf16.mxu0 %v1843_v52 }
  0x35   :  { %501 = vmatprep.mubr.bf16.mxu1 %v1843_v52  ;;  %1450 = vmatpush3.bf16.msra.mxu0 %v1618_v57 }
  0x36   :  { %1508 = vmatpush3.bf16.msra.mxu1 %v1622_v60  ;;  %1451 = vmatprep.subr.bf16.mxu0 %v1624_v61 }
  0x37   :  { %1509 = vmatprep.subr.bf16.mxu1 %v1626_v63 }
  0x39   :  { %1452 = vmatpush3.bf16.msra.mxu0 %v1625_v62 }
  0x3a   :  { %1510 = vmatpush3.bf16.msra.mxu1 %v1627_v0  ;;  %1453 = vmatprep.subr.bf16.mxu0 %v1631_v3 }
  0x3b   :  { %284 = vmatmul.mubr.bf16.gmra.mxu0 %v1855_v54  ;;  %1511 = vmatprep.subr.bf16.mxu1 %v1633_v5 }
  0x3c   :  { %502 = vmatmul.mubr.bf16.gmra.mxu1 %v1855_v54  ;;  %291 = vmatprep.mubr.bf16.mxu0 %v1872_v59 }
  0x3d   :  { %509 = vmatprep.mubr.bf16.mxu1 %v1872_v59  ;;  %1454 = vmatpush3.bf16.msra.mxu0 %v1632_v4 }
  0x3e   :  { %1512 = vmatpush3.bf16.msra.mxu1 %v1634_v6  ;;  %1455 = vmatprep.subr.bf16.mxu0 %v1638_v9 }
  0x3f   :  { %1513 = vmatprep.subr.bf16.mxu1 %v1640_v11 }
  0x41   :  { %1456 = vmatpush3.bf16.msra.mxu0 %v1639_v10 }
  0x42   :  { %1514 = vmatpush3.bf16.msra.mxu1 %v1641_v12 }
  0x43   :  { %292 = vmatmul.mubr.bf16.gmra.mxu0 %v1623_v1 }
  0x44   :  { %510 = vmatmul.mubr.bf16.gmra.mxu1 %v1623_v1  ;;  %299 = vmatprep.mubr.bf16.mxu0 %v1628_v2 }
  0x45   :  { %517 = vmatprep.mubr.bf16.mxu1 %v1628_v2 }
  0x4b   :  { %300 = vmatmul.mubr.bf16.gmra.mxu0 %v1630_v7 }
  0x4c   :  { %518 = vmatmul.mubr.bf16.gmra.mxu1 %v1630_v7  ;;  %307 = vmatprep.mubr.bf16.mxu0 %v1635_v8 }
  0x4d   :  { %525 = vmatprep.mubr.bf16.mxu1 %v1635_v8 }
  0x53   :  { %308 = vmatmul.mubr.bf16.gmra.mxu0 %v1637_v13 }
  0x54   :  { %526 = vmatmul.mubr.bf16.gmra.mxu1 %v1637_v13  ;;  %709 = vmatprep.mubr.bf16.mxu0 %v1761_v32 }
  0x55   :  { %941 = vmatprep.mubr.bf16.mxu1 %v1761_v32 }
  0x5b   :  { %710 = vmatmul.mubr.bf16.vlgmr.msra.gmra.mxu0 %v1766_v33 }
  0x5c   :  { %942 = vmatmul.mubr.bf16.vlgmr.msra.gmra.mxu1 %v1766_v33  ;;  %717 = vmatprep.mubr.bf16.mxu0 %v1787_v38 }
  0x5d   :  { %949 = vmatprep.mubr.bf16.mxu1 %v1787_v38 }
  0x63   :  { %718 = vmatmul.mubr.bf16.gmra.mxu0 %v1795_v40 }
  0x64   :  { %950 = vmatmul.mubr.bf16.gmra.mxu1 %v1795_v40  ;;  %725 = vmatprep.mubr.bf16.mxu0 %v1816_v45 }
  0x65   :  { %957 = vmatprep.mubr.bf16.mxu1 %v1816_v45 }
  0x6b   :  { %726 = vmatmul.mubr.bf16.gmra.mxu0 %v1824_v47 }
  0x6c   :  { %958 = vmatmul.mubr.bf16.gmra.mxu1 %v1824_v47  ;;  %733 = vmatprep.mubr.bf16.mxu0 %v1843_v52 }
  0x6d   :  { %965 = vmatprep.mubr.bf16.mxu1 %v1843_v52 }
  0x73   :  { %734 = vmatmul.mubr.bf16.gmra.mxu0 %v1855_v54 }
  0x74   :  { %966 = vmatmul.mubr.bf16.gmra.mxu1 %v1855_v54  ;;  %741 = vmatprep.mubr.bf16.mxu0 %v1872_v59 }
  0x75   :  { %973 = vmatprep.mubr.bf16.mxu1 %v1872_v59 }
  0x7b   :  { %742 = vmatmul.mubr.bf16.gmra.mxu0 %v1623_v1 }
  0x7c   :  { %974 = vmatmul.mubr.bf16.gmra.mxu1 %v1623_v1  ;;  %749 = vmatprep.mubr.bf16.mxu0 %v1628_v2 }
  0x7d   :  { %981 = vmatprep.mubr.bf16.mxu1 %v1628_v2 }
  0x83   :  { %750 = vmatmul.mubr.bf16.gmra.mxu0 %v1630_v7 }
  0x84   :  { %982 = vmatmul.mubr.bf16.gmra.mxu1 %v1630_v7  ;;  %757 = vmatprep.mubr.bf16.mxu0 %v1635_v8 }
  0x85   :  { %989 = vmatprep.mubr.bf16.mxu1 %v1635_v8 }
  0x8b   :  { %758 = vmatmul.mubr.bf16.gmra.mxu0 %v1637_v13 }
  0x8c   :  { %990 = vmatmul.mubr.bf16.gmra.mxu1 %v1637_v13 }
  0xe3   :  { %v1341_v14 = vpop.f32.mrf.mxu0 }
  0xe4   :  { %v1399_v15 = vpop.f32.mrf.mxu1 }
  0xe5   :  { %v1342_v16 = vpop.f32.mrf.mxu0 }
  0xe6   :  { %v1400_v17 = vpop.f32.mrf.mxu1  ;;  %v1343_v5 = vadd.f32 %v1342_v16, %v1341_v14  ;;  %v2047_v14 = vld [vmem:[%s2165_s2] ss:$0 sm:$0xff] }
  0xe7   :  { %v1344_v18 = vpop.f32.mrf.mxu0  ;;  %v1401_v6 = vadd.f32 %v1400_v17, %v1399_v15 }
  0xe8   :  { %v1402_v19 = vpop.f32.mrf.mxu1 }
  0xe9   :  { %v1345_v20 = vpop.f32.mrf.mxu0  ;;  %v534_v11 = vmax.f32 %v1343_v5, %v1401_v6 }
  0xea   :  { %v1403_v21 = vpop.f32.mrf.mxu1  ;;  %v1346_v12 = vadd.f32 %v1345_v20, %v1344_v18 }
  0xeb   :  { %v1950_v22 = vpop.f32.mrf.mxu0  ;;  %v1404_v13 = vadd.f32 %v1403_v21, %v1402_v19 }
  0xec   :  { %v1952_v23 = vpop.f32.mrf.mxu1 }
  0xed   :  { %v1348_v24 = vpop.f32.mrf.mxu0  ;;  %v535_v16 = vmax.f32 %v1346_v12, %v1404_v13 }
  0xee   :  { %v1406_v25 = vpop.f32.mrf.mxu1 }
  0xef   :  { %v1954_v26 = vpop.f32.mrf.mxu0 }
  0xf0   :  { %v1956_v27 = vpop.f32.mrf.mxu1 }
  0xf1   :  { %v1958_v28 = vpop.f32.mrf.mxu0 }
  0xf2   :  { %v1960_v29 = vpop.f32.mrf.mxu1 }
  0xf3   :  { %v1962_v30 = vpop.f32.mrf.mxu0 }
  0xf4   :  { %v1964_v31 = vpop.f32.mrf.mxu1 }
  0xf5   :  { %v1966_v32 = vpop.f32.mrf.mxu0 }
  0xf6   :  { %v1968_v33 = vpop.f32.mrf.mxu1 }
  0xf7   :  { %v1970_v34 = vpop.f32.mrf.mxu0 }
  0xf8   :  { %v1972_v35 = vpop.f32.mrf.mxu1 }
  0xf9   :  { %v1974_v36 = vpop.f32.mrf.mxu0 }
  0xfa   :  { %v1976_v37 = vpop.f32.mrf.mxu1 }
  0xfb   :  { %v1978_v38 = vpop.f32.mrf.mxu0 }
  0xfc   :  { %v1980_v39 = vpop.f32.mrf.mxu1 }
  0xfd   :  { %v1982_v40 = vpop.f32.mrf.mxu0 }
  0xfe   :  { %v1984_v41 = vpop.f32.mrf.mxu1 }
  0xff   :  { %v1986_v42 = vpop.f32.mrf.mxu0 }
 0x100   :  { %v1988_v43 = vpop.f32.mrf.mxu1 }
 0x101   :  { %v1990_v44 = vpop.f32.mrf.mxu0 }
 0x102   :  { %v1992_v45 = vpop.f32.mrf.mxu1 }
 0x103   :  { %v1994_v46 = vpop.f32.mrf.mxu0 }
 0x104   :  { %v1996_v47 = vpop.f32.mrf.mxu1 }
 0x105   :  { %v1998_v48 = vpop.f32.mrf.mxu0 }
 0x106   :  { %v2000_v49 = vpop.f32.mrf.mxu1 }
 0x107   :  { %v2002_v50 = vpop.f32.mrf.mxu0 }
 0x108   :  { %v2004_v51 = vpop.f32.mrf.mxu1 }
 0x109   :  { %v2006_v52 = vpop.f32.mrf.mxu0 }
 0x10a   :  { %v2008_v53 = vpop.f32.mrf.mxu1 }
 0x10b   :  { %v2010_v54 = vpop.f32.mrf.mxu0 }
 0x10c   :  { %v2012_v55 = vpop.f32.mrf.mxu1 }
 0x10d   :  { %v2014_v56 = vpop.f32.mrf.mxu0 }
 0x10e   :  { %v2016_v57 = vpop.f32.mrf.mxu1 }
 0x10f   :  { %v2018_v58 = vpop.f32.mrf.mxu0 }
 0x110   :  { %v2020_v59 = vpop.f32.mrf.mxu1 }
 0x111   :  { %v2022_v60 = vpop.f32.mrf.mxu0 }
 0x112   :  { %v2024_v61 = vpop.f32.mrf.mxu1 }
 0x113   :  { %2167 = vst [vmem:[#allocation2_spill] sm:$0xff] %v2024_v61  ;;  %v2026_v62 = vpop.f32.mrf.mxu0 }
 0x114   :  { %2168 = vst [vmem:[#allocation3_spill] sm:$0xff] %v2026_v62  ;;  %v2028_v63 = vpop.f32.mrf.mxu1 }
 0x115   :  { %2169 = vst [vmem:[#allocation4_spill] sm:$0xff] %v2028_v63  ;;  %v2030_v0 = vpop.f32.mrf.mxu0 }
 0x116   :  { %2170 = vst [vmem:[#allocation5_spill] sm:$0xff] %v2030_v0  ;;  %v2032_v1 = vpop.f32.mrf.mxu1 }
 0x117   :  { %2171 = vst [vmem:[#allocation6_spill] sm:$0xff] %v2032_v1  ;;  %v2034_v2 = vpop.f32.mrf.mxu0 }
 0x118   :  { %2172 = vst [vmem:[#allocation7_spill] sm:$0xff] %v2034_v2  ;;  %v2036_v3 = vpop.f32.mrf.mxu1 }
 0x119   :  { %2173 = vst [vmem:[#allocation8_spill] sm:$0xff] %v2036_v3  ;;  %v2038_v4 = vpop.f32.mrf.mxu0  ;;  %v1349_v3 = vadd.f32 %v1348_v24, %v1950_v22  ;;  %v1352_v22 = vadd.f32 %v1958_v28, %v1954_v26  ;;  %v1410_v24 = vadd.f32 %v1960_v29, %v1956_v27  ;;  %v1413_v26 = vadd.f32 %v1968_v33, %v1964_v31 }
 0x11a   :  { %2174 = vst [vmem:[#allocation9_spill] sm:$0xff] %v2038_v4  ;;  %v2040_v7 = vpop.f32.mrf.mxu1  ;;  %v1407_v4 = vadd.f32 %v1406_v25, %v1952_v23  ;;  %v1358_v31 = vadd.f32 %v1974_v36, %v1970_v34  ;;  %v1361_v36 = vadd.f32 %v1982_v40, %v1978_v38 }
 0x11b   :  { %v1457_v8 = vpop.f32.mrf.mxu0  ;;  %v537_v27 = vmax.f32 %v1352_v22, %v1410_v24 }
 0x11c   :  { %v1515_v9 = vpop.f32.mrf.mxu1  ;;  %v536_v6 = vmax.f32 %v1349_v3, %v1407_v4  ;;  %v1355_v3 = vadd.f32 %v1966_v32, %v1962_v30 }
 0x11d   :  { %v1458_v10 = vpop.f32.mrf.mxu0 }
 0x11e   :  { %v1459_v63 = vadd.f32 %v1458_v10, %v1457_v8  ;;  %v1516_v0 = vpop.f32.mrf.mxu1 }
 0x11f   :  { %v1460_v62 = vpop.f32.mrf.mxu0  ;;  %v1517_v61 = vadd.f32 %v1516_v0, %v1515_v9 }
 0x120   :  { %v766_v1 = vmax.f32 %v534_v11, %v1459_v63  ;;  %v1518_v2 = vpop.f32.mrf.mxu1 }
 0x121   :  { %v1461_v15 = vpop.f32.mrf.mxu0 }
 0x122   :  { %v998_v17 = vmax.f32 %v766_v1, %v1517_v61  ;;  %v1462_v18 = vadd.f32 %v1461_v15, %v1460_v62  ;;  %v1519_v19 = vpop.f32.mrf.mxu1 }
 0x123   :  { %v1463_v20 = vpop.f32.mrf.mxu0  ;;  %v1520_v0 = vadd.f32 %v1519_v19, %v1518_v2 }
 0x124   :  { %v1019_v21 = vadd.f32 %v2047_v14, %v998_v17  ;;  %v767_v63 = vmax.f32 %v535_v16, %v1462_v18  ;;  %v1521_v5 = vpop.f32.mrf.mxu1 }
 0x125   :  { %v1464_v23 = vpop.f32.mrf.mxu0 }
 0x126   :  { %v1033_v25 = vmax.f32 %v1019_v21, 0.0  ;;  %v999_v8 = vmax.f32 %v767_v63, %v1520_v0  ;;  %v1465_v9 = vadd.f32 %v1464_v23, %v1463_v20  ;;  %v1522_v61 = vpop.f32.mrf.mxu1  ;;  %v538_v20 = vmax.f32 %v1355_v3, %v1413_v26 }
 0x127   :  { %v1466_v62 = vpop.f32.mrf.mxu0  ;;  %v1523_v2 = vadd.f32 %v1522_v61, %v1521_v5  ;;  %v1416_v21 = vadd.f32 %v1976_v37, %v1972_v35  ;;  %v1419_v35 = vadd.f32 %v1984_v41, %v1980_v39  ;;  %v1364_v39 = vadd.f32 %v1990_v44, %v1986_v42 }
 0x128   :  { %v1311_v1 = vpack.c.bf16 %v1033_v25, %v1033_v25  ;;  %v1020_v10 = vadd.f32 %v2047_v14, %v999_v8  ;;  %v768_v11 = vmax.f32 %v536_v6, %v1465_v9  ;;  %v1524_v12 = vpop.f32.mrf.mxu1  ;;  %v1367_v44 = vadd.f32 %v1998_v48, %v1994_v46 }
 0x129   :  { %v1467_v28 = vpop.f32.mrf.mxu0  ;;  %v539_v9 = vmax.f32 %v1358_v31, %v1416_v21  ;;  %v540_v26 = vmax.f32 %v1361_v36, %v1419_v35 }
 0x12a   :  { %1104 = vst.msk [vmem:[%s2166_s3] sm:$0xf] %vm1103_vm0, %v1311_v1  ;;  %v1034_v29 = vmax.f32 %v1020_v10, 0.0  ;;  %v1000_v4 = vmax.f32 %v768_v11, %v1523_v2  ;;  %v1468_v13 = vadd.f32 %v1467_v28, %v1466_v62  ;;  %v1525_v15 = vpop.f32.mrf.mxu1  ;;  %v1422_v28 = vadd.f32 %v1992_v45, %v1988_v43 }
 0x12b   :  { %v1469_v16 = vpop.f32.mrf.mxu0  ;;  %v1526_v30 = vadd.f32 %v1525_v15, %v1524_v12  ;;  %v1425_v43 = vadd.f32 %v2000_v49, %v1996_v47  ;;  %v1370_v47 = vadd.f32 %v2006_v52, %v2002_v50  ;;  %v1373_v52 = vadd.f32 %v2014_v56, %v2010_v54 }
 0x12c   :  { %v1312_v17 = vpack.c.bf16 %v1034_v29, %v1034_v29  ;;  %v1021_v18 = vadd.f32 %v2047_v14, %v1000_v4  ;;  %v769_v19 = vmax.f32 %v537_v27, %v1468_v13  ;;  %v1527_v32 = vpop.f32.mrf.mxu1 }
 0x12d   :  { %v1470_v33 = vpop.f32.mrf.mxu0 }
 0x12e   :  { %1105 = vst.msk [vmem:[%s2166_s3 + $0x4] sm:$0xf] %vm1103_vm0, %v1312_v17  ;;  %v1035_v63 = vmax.f32 %v1021_v18, 0.0  ;;  %v1001_v0 = vmax.f32 %v769_v19, %v1526_v30  ;;  %v1471_v5 = vadd.f32 %v1470_v33, %v1469_v16  ;;  %v1528_v6 = vpop.f32.mrf.mxu1  ;;  %v541_v30 = vmax.f32 %v1364_v39, %v1422_v28 }
 0x12f   :  { %v1472_v22 = vpop.f32.mrf.mxu0  ;;  %v1529_v8 = vadd.f32 %v1528_v6, %v1527_v32  ;;  %v542_v6 = vmax.f32 %v1367_v44, %v1425_v43 }
 0x130   :  { %v1313_v23 = vpack.c.bf16 %v1035_v63, %v1035_v63  ;;  %v1022_v24 = vadd.f32 %v2047_v14, %v1001_v0  ;;  %v770_v25 = vmax.f32 %v538_v20, %v1471_v5  ;;  %v1530_v34 = vpop.f32.mrf.mxu1 }
 0x131   :  { %v1473_v37 = vpop.f32.mrf.mxu0 }
 0x132   :  { %1106 = vst.msk [vmem:[%s2166_s3 + $0x8] sm:$0xf] %vm1103_vm0, %v1313_v23  ;;  %v1036_v61 = vmax.f32 %v1022_v24, 0.0  ;;  %v1002_v62 = vmax.f32 %v770_v25, %v1529_v8  ;;  %v1474_v1 = vadd.f32 %v1473_v37, %v1472_v22  ;;  %v1531_v10 = vpop.f32.mrf.mxu1  ;;  %v1428_v22 = vadd.f32 %v2008_v53, %v2004_v51 }
 0x133   :  { %v1475_v11 = vpop.f32.mrf.mxu0  ;;  %v1532_v38 = vadd.f32 %v1531_v10, %v1530_v34  ;;  %v1431_v51 = vadd.f32 %v2016_v57, %v2012_v55  ;;  %v1376_v55 = vadd.f32 %v2022_v60, %v2018_v58  ;;  %v2176_v60 = vld [vmem:[#allocation3_spill] sm:$0xff] }
 0x134   :  { %v1314_v2 = vpack.c.bf16 %v1036_v61, %v1036_v61  ;;  %v1023_v12 = vadd.f32 %v2047_v14, %v1002_v62  ;;  %v771_v3 = vmax.f32 %v539_v9, %v1474_v1  ;;  %v1533_v40 = vpop.f32.mrf.mxu1  ;;  %v543_v61 = vmax.f32 %v1370_v47, %v1428_v22  ;;  %v2181_v47 = vld [vmem:[#allocation9_spill] sm:$0xff] }
 0x135   :  { %v1476_v41 = vpop.f32.mrf.mxu0 }
 0x136   :  { %1107 = vst.msk [vmem:[%s2166_s3 + $0xc] sm:$0xf] %vm1103_vm0, %v1314_v2  ;;  %v1037_v27 = vmax.f32 %v1023_v12, 0.0  ;;  %v1003_v29 = vmax.f32 %v771_v3, %v1532_v38  ;;  %v1477_v4 = vadd.f32 %v1476_v41, %v1475_v11  ;;  %v1534_v13 = vpop.f32.mrf.mxu1 }
 0x137   :  { %v1478_v15 = vpop.f32.mrf.mxu0  ;;  %v1535_v19 = vadd.f32 %v1534_v13, %v1533_v40  ;;  %v544_v40 = vmax.f32 %v1373_v52, %v1431_v51 }
 0x138   :  { %v1315_v16 = vpack.c.bf16 %v1037_v27, %v1037_v27  ;;  %v1024_v17 = vadd.f32 %v2047_v14, %v1003_v29  ;;  %v772_v18 = vmax.f32 %v540_v26, %v1477_v4  ;;  %v1536_v42 = vpop.f32.mrf.mxu1  ;;  %v2175_v26 = vld [vmem:[#allocation2_spill] sm:$0xff] }
 0x139   :  { %v1479_v45 = vpop.f32.mrf.mxu0  ;;  %v1434_v39 = vadd.f32 %v2175_v26, %v2020_v59  ;;  %v2178_v59 = vld [vmem:[#allocation4_spill] sm:$0xff] }
 0x13a   :  { %1108 = vst.msk [vmem:[%s2166_s3 + $0x10] sm:$0xf] %vm1103_vm0, %v1315_v16  ;;  %v1038_v32 = vmax.f32 %v1024_v17, 0.0  ;;  %v1004_v20 = vmax.f32 %v772_v18, %v1535_v19  ;;  %v1480_v31 = vadd.f32 %v1479_v45, %v1478_v15  ;;  %v1537_v33 = vpop.f32.mrf.mxu1  ;;  %v2177_v18 = vld [vmem:[#allocation5_spill] sm:$0xff] }
 0x13b   :  { %v1481_v21 = vpop.f32.mrf.mxu0  ;;  %v1538_v46 = vadd.f32 %v1537_v33, %v1536_v42  ;;  %v1379_v19 = vadd.f32 %v2177_v18, %v2176_v60  ;;  %v2179_v42 = vld [vmem:[#allocation6_spill] sm:$0xff]  ;;  %v545_v45 = vmax.f32 %v1376_v55, %v1434_v39 }
 0x13c   :  { %v1316_v63 = vpack.c.bf16 %v1038_v32, %v1038_v32  ;;  %v1025_v0 = vadd.f32 %v2047_v14, %v1004_v20  ;;  %v773_v5 = vmax.f32 %v541_v30, %v1480_v31  ;;  %v1539_v48 = vpop.f32.mrf.mxu1  ;;  %v1437_v44 = vadd.f32 %v2179_v42, %v2178_v59 }
 0x13d   :  { %v1482_v49 = vpop.f32.mrf.mxu0 }
 0x13e   :  { %1109 = vst.msk [vmem:[%s2166_s3 + $0x14] sm:$0xf] %vm1103_vm0, %v1316_v63  ;;  %v1039_v23 = vmax.f32 %v1025_v0, 0.0  ;;  %v1005_v24 = vmax.f32 %v773_v5, %v1538_v46  ;;  %v1483_v25 = vadd.f32 %v1482_v49, %v1481_v21  ;;  %v1540_v8 = vpop.f32.mrf.mxu1 }
 0x13f   :  { %v1484_v34 = vpop.f32.mrf.mxu0  ;;  %v1541_v9 = vadd.f32 %v1540_v8, %v1539_v48  ;;  %v546_v48 = vmax.f32 %v1379_v19, %v1437_v44 }
 0x140   :  { %v1317_v36 = vpack.c.bf16 %v1039_v23, %v1039_v23  ;;  %v1026_v35 = vadd.f32 %v2047_v14, %v1005_v24  ;;  %v774_v37 = vmax.f32 %v542_v6, %v1483_v25  ;;  %v1542_v50 = vpop.f32.mrf.mxu1  ;;  %v2180_v6 = vld [vmem:[#allocation7_spill] sm:$0xff]  ;;  %v2182_v23 = vld [vmem:[#allocation8_spill] sm:$0xff] }
 0x141   :  { %v1485_v53 = vpop.f32.mrf.mxu0  ;;  %v1382_v49 = vadd.f32 %v2181_v47, %v2180_v6  ;;  %v1440_v24 = vadd.f32 %v2040_v7, %v2182_v23 }
 0x142   :  { %1110 = vst.msk [vmem:[%s2166_s3 + $0x18] sm:$0xf] %vm1103_vm0, %v1317_v36  ;;  %v1040_v62 = vmax.f32 %v1026_v35, 0.0  ;;  %v1006_v1 = vmax.f32 %v774_v37, %v1541_v9  ;;  %v1486_v10 = vadd.f32 %v1485_v53, %v1484_v34  ;;  %v1543_v11 = vpop.f32.mrf.mxu1 }
 0x143   :  { %v1487_v2 = vpop.f32.mrf.mxu0  ;;  %v1544_v54 = vadd.f32 %v1543_v11, %v1542_v50 }
 0x144   :  { %v1318_v12 = vpack.c.bf16 %v1040_v62, %v1040_v62  ;;  %v1027_v3 = vadd.f32 %v2047_v14, %v1006_v1  ;;  %v775_v38 = vmax.f32 %v543_v61, %v1486_v10  ;;  %v1545_v56 = vpop.f32.mrf.mxu1  ;;  %v547_v61 = vmax.f32 %v1382_v49, %v1440_v24 }
 0x145   :  { %v1488_v57 = vpop.f32.mrf.mxu0 }
 0x146   :  { %1111 = vst.msk [vmem:[%s2166_s3 + $0x1c] sm:$0xf] %vm1103_vm0, %v1318_v12  ;;  %v1041_v41 = vmax.f32 %v1027_v3, 0.0  ;;  %v1007_v28 = vmax.f32 %v775_v38, %v1544_v54  ;;  %v1489_v27 = vadd.f32 %v1488_v57, %v1487_v2  ;;  %v1546_v29 = vpop.f32.mrf.mxu1 }
 0x147   :  { %v1490_v4 = vpop.f32.mrf.mxu0  ;;  %v1547_v17 = vadd.f32 %v1546_v29, %v1545_v56 }
 0x148   :  { %v1319_v13 = vpack.c.bf16 %v1041_v41, %v1041_v41  ;;  %v1028_v15 = vadd.f32 %v2047_v14, %v1007_v28  ;;  %v776_v16 = vmax.f32 %v544_v40, %v1489_v27  ;;  %v1548_v58 = vpop.f32.mrf.mxu1 }
 0x149   :  { %v1491_v43 = vpop.f32.mrf.mxu0 }
 0x14a   :  { %1112 = vst.msk [vmem:[%s2166_s3 + $0x20] sm:$0xf] %vm1103_vm0, %v1319_v13  ;;  %v1042_v30 = vmax.f32 %v1028_v15, 0.0  ;;  %v1008_v32 = vmax.f32 %v776_v16, %v1547_v17  ;;  %v1492_v20 = vadd.f32 %v1491_v43, %v1490_v4  ;;  %v1549_v31 = vpop.f32.mrf.mxu1 }
 0x14b   :  { %v1493_v33 = vpop.f32.mrf.mxu0  ;;  %v1550_v5 = vadd.f32 %v1549_v31, %v1548_v58 }
 0x14c   :  { %v1320_v21 = vpack.c.bf16 %v1042_v30, %v1042_v30  ;;  %v1029_v63 = vadd.f32 %v2047_v14, %v1008_v32  ;;  %v777_v0 = vmax.f32 %v545_v45, %v1492_v20  ;;  %v1551_v46 = vpop.f32.mrf.mxu1 }
 0x14d   :  { %v1494_v22 = vpop.f32.mrf.mxu0 }
 0x14e   :  { %1113 = vst.msk [vmem:[%s2166_s3 + $0x24] sm:$0xf] %vm1103_vm0, %v1320_v21  ;;  %v1043_v25 = vmax.f32 %v1029_v63, 0.0  ;;  %v1009_v8 = vmax.f32 %v777_v0, %v1550_v5  ;;  %v1495_v34 = vadd.f32 %v1494_v22, %v1493_v33  ;;  %v1552_v36 = vpop.f32.mrf.mxu1 }
 0x14f   :  { %v1496_v35 = vpop.f32.mrf.mxu0  ;;  %v1553_v52 = vadd.f32 %v1552_v36, %v1551_v46 }
 0x150   :  { %v1321_v37 = vpack.c.bf16 %v1043_v25, %v1043_v25  ;;  %v1030_v9 = vadd.f32 %v2047_v14, %v1009_v8  ;;  %v778_v50 = vmax.f32 %v546_v48, %v1495_v34  ;;  %v1554_v51 = vpop.f32.mrf.mxu1 }
 0x151   :  { %v1497_v53 = vpop.f32.mrf.mxu0 }
 0x152   :  { %1114 = vst.msk [vmem:[%s2166_s3 + $0x28] sm:$0xf] %vm1103_vm0, %v1321_v37  ;;  %v1044_v7 = vmax.f32 %v1030_v9, 0.0  ;;  %v1010_v62 = vmax.f32 %v778_v50, %v1553_v52  ;;  %v1498_v1 = vadd.f32 %v1497_v53, %v1496_v35  ;;  %v1555_v10 = vpop.f32.mrf.mxu1 }
 0x153   :  { %v1556_v3 = vadd.f32 %v1555_v10, %v1554_v51 }
 0x154   :  { %v1322_v11 = vpack.c.bf16 %v1044_v7, %v1044_v7  ;;  %v1031_v2 = vadd.f32 %v2047_v14, %v1010_v62  ;;  %v779_v12 = vmax.f32 %v547_v61, %v1498_v1 }
 0x156   :  { %1115 = vst.msk [vmem:[%s2166_s3 + $0x2c] sm:$0xf] %vm1103_vm0, %v1322_v11  ;;  %v1045_v38 = vmax.f32 %v1031_v2, 0.0  ;;  %v1011_v54 = vmax.f32 %v779_v12, %v1556_v3 }
 0x158   :  { %v1323_v56 = vpack.c.bf16 %v1045_v38, %v1045_v38  ;;  %v1032_v40 = vadd.f32 %v2047_v14, %v1011_v54 }
 0x15a   :  { %1116 = vst.msk [vmem:[%s2166_s3 + $0x30] sm:$0xf] %vm1103_vm0, %v1323_v56  ;;  %v1046_v55 = vmax.f32 %v1032_v40, 0.0 }
 0x15c   :  { %v1324_v57 = vpack.c.bf16 %v1046_v55, %v1046_v55 }
 0x15e   :  { %1117 = vst.msk [vmem:[%s2166_s3 + $0x34] sm:$0xf] %vm1103_vm0, %v1324_v57 }

// kernel: simple_char_cnn_forward.5
= control target key start
LH: loop header
LB: loop body
LE: loop exit
PB: predicated region body
PF: predicated region fallthrough
CT: control target
= control target key end

     0   :  { %vm1725_vm0 = vmmov 0   ;;  %vm891_vm1 = vcmask 261120   ;;  %s2125_s1 = inlined_call_operand.vmem [shape: bf16[1568,128], index: 1, kind: input, shape index: {}]   ;;  %s2126_s0 = inlined_call_operand.vmem [shape: bf16[16,1568], index: 0, kind: input, shape index: {}]   ;;  %s2127_s3 = inlined_call_operand.vmem [shape: bf16[128,128], index: 3, kind: input, shape index: {}]   ;;  %s2128_s2 = inlined_call_operand.vmem [shape: f32[1,128], index: 2, kind: input, shape index: {}]   ;;  %s2129_s4 = inlined_call_operand.vmem [shape: f32[1,128], index: 4, kind: input, shape index: {}]   ;;  %s2130_s5 = inlined_call_operand.vmem [shape: f32[16,128], index: 5, kind: output, shape index: {}]  }
   0x1   :  { %v1599_v0 = vld [vmem:[%s2125_s1 + $0x78] sm:$0xff]   ;;  %v1603_v4 = vld [vmem:[%s2125_s1 + $0x70] sm:$0xff]   ;;  %v1607_v8 = vld [vmem:[%s2125_s1 + $0x68] sm:$0xff]  }
   0x2   :  { %v1600_v1 = vld [vmem:[%s2125_s1 + $0xf8] sm:$0xff]   ;;  %1425 = vmatprep.subr.bf16.mxu0 %v1599_v0  ;;  %v1604_v5 = vld [vmem:[%s2125_s1 + $0xf0] sm:$0xff]   ;;  %v1608_v9 = vld [vmem:[%s2125_s1 + $0xe8] sm:$0xff]  }
   0x3   :  { %v1601_v2 = vld [vmem:[%s2125_s1 + $0x38] sm:$0xff]   ;;  %1447 = vmatprep.subr.bf16.mxu1 %v1600_v1  ;;  %v1605_v6 = vld [vmem:[%s2125_s1 + $0x30] sm:$0xff]   ;;  %v1609_v10 = vld [vmem:[%s2125_s1 + $0x28] sm:$0xff]  }
   0x4   :  { %v1602_v3 = vld [vmem:[%s2125_s1 + $0xb8] sm:$0xff]   ;;  %1426 = vmatpush3.bf16.msra.mxu0 %v1601_v2  ;;  %v1606_v7 = vld [vmem:[%s2125_s1 + $0xb0] sm:$0xff]   ;;  %v1610_v11 = vld [vmem:[%s2125_s1 + $0xa8] sm:$0xff]  }
   0x5   :  { %1448 = vmatpush3.bf16.msra.mxu1 %v1602_v3  ;;  %1427 = vmatprep.subr.bf16.mxu0 %v1603_v4  ;;  %v1611_v12 = vld [vmem:[%s2125_s1 + $0x60] sm:$0xff]   ;;  %v1615_v16 = vld [vmem:[%s2125_s1 + $0x58] sm:$0xff]   ;;  %v1619_v20 = vld [vmem:[%s2125_s1 + $0x50] sm:$0xff]  }
   0x6   :  { %1449 = vmatprep.subr.bf16.mxu1 %v1604_v5  ;;  %v1612_v13 = vld [vmem:[%s2125_s1 + $0xe0] sm:$0xff]   ;;  %v1616_v17 = vld [vmem:[%s2125_s1 + $0xd8] sm:$0xff]   ;;  %v1620_v21 = vld [vmem:[%s2125_s1 + $0xd0] sm:$0xff]  }
   0x7   :  { %v1613_v14 = vld [vmem:[%s2125_s1 + $0x20] sm:$0xff]   ;;  %v1617_v18 = vld [vmem:[%s2125_s1 + $0x18] sm:$0xff]   ;;  %v1621_v22 = vld [vmem:[%s2125_s1 + $0x10] sm:$0xff]  }
   0x8   :  { %1428 = vmatpush3.bf16.msra.mxu0 %v1605_v6  ;;  %v1614_v15 = vld [vmem:[%s2125_s1 + $0xa0] sm:$0xff]   ;;  %v1618_v19 = vld [vmem:[%s2125_s1 + $0x98] sm:$0xff]   ;;  %v1622_v23 = vld [vmem:[%s2125_s1 + $0x90] sm:$0xff]  }
   0x9   :  { %1450 = vmatpush3.bf16.msra.mxu1 %v1606_v7  ;;  %1429 = vmatprep.subr.bf16.mxu0 %v1607_v8  ;;  %v1623_v24 = vld [vmem:[%s2125_s1 + $0x48] sm:$0xff]   ;;  %v1627_v28 = vld [vmem:[%s2125_s1 + $0x40] sm:$0xff]   ;;  %v1637_v36 = vld [vmem:[%s2125_s1 + $0x178] sm:$0xff]  }
   0xa   :  { %1451 = vmatprep.subr.bf16.mxu1 %v1608_v9  ;;  %v1624_v25 = vld [vmem:[%s2125_s1 + $0xc8] sm:$0xff]   ;;  %v1628_v29 = vld [vmem:[%s2125_s1 + $0xc0] sm:$0xff]   ;;  %v1638_v37 = vld [vmem:[%s2125_s1 + $0x1f8] sm:$0xff]  }
   0xb   :  { %v1625_v26 = vld [vmem:[%s2125_s1 + $0x8] sm:$0xff]   ;;  %v1629_v30 = vld [vmem:[%s2125_s1] sm:$0xff]   ;;  %v1639_v38 = vld [vmem:[%s2125_s1 + $0x138] sm:$0xff]  }
   0xc   :  { %1430 = vmatpush3.bf16.msra.mxu0 %v1609_v10  ;;  %v1626_v27 = vld [vmem:[%s2125_s1 + $0x88] sm:$0xff]   ;;  %v1630_v31 = vld [vmem:[%s2125_s1 + $0x80] sm:$0xff]   ;;  %v1640_v39 = vld [vmem:[%s2125_s1 + $0x1b8] sm:$0xff]  }
   0xd   :  { %1452 = vmatpush3.bf16.msra.mxu1 %v1610_v11  ;;  %1431 = vmatprep.subr.bf16.mxu0 %v1611_v12  ;;  %v1631_v32 = vld [vmem:[%s2126_s0] ss:$52 sps:$4 sm:$0xff]   ;;  %v1633_v33 = vld [vmem:[%s2126_s0 + $0x4] ss:$52 sps:$4 sm:$0xff]   ;;  %v1634_v34 = vld [vmem:[%s2126_s0 + $0x8] ss:$52 sps:$4 sm:$0xff]  }
   0xe   :  { %1453 = vmatprep.subr.bf16.mxu1 %v1612_v13  ;;  %v1636_v35 = vld [vmem:[%s2126_s0 + $0xc] ss:$52 sps:$4 sm:$0xff]   ;;  %927 = vmatprep.mubr.bf16.mxu0 %v1633_v33  ;;  %v1641_v40 = vld [vmem:[%s2125_s1 + $0x170] sm:$0xff]   ;;  %v1653_v52 = vld [vmem:[%s2125_s1 + $0x158] sm:$0xff]  }
   0xf   :  { %968 = vmatprep.mubr.bf16.mxu1 %v1636_v35  ;;  %v1642_v41 = vld [vmem:[%s2125_s1 + $0x1f0] sm:$0xff]   ;;  %v1645_v44 = vld [vmem:[%s2125_s1 + $0x168] sm:$0xff]   ;;  %v1649_v48 = vld [vmem:[%s2125_s1 + $0x160] sm:$0xff]  }
  0x10   :  { %1432 = vmatpush3.bf16.msra.mxu0 %v1613_v14  ;;  %v1643_v42 = vld [vmem:[%s2125_s1 + $0x130] sm:$0xff]   ;;  %v1646_v45 = vld [vmem:[%s2125_s1 + $0x1e8] sm:$0xff]   ;;  %v1650_v49 = vld [vmem:[%s2125_s1 + $0x1e0] sm:$0xff]  }
  0x11   :  { %1454 = vmatpush3.bf16.msra.mxu1 %v1614_v15  ;;  %1433 = vmatprep.subr.bf16.mxu0 %v1615_v16  ;;  %v1644_v43 = vld [vmem:[%s2125_s1 + $0x1b0] sm:$0xff]   ;;  %v1647_v46 = vld [vmem:[%s2125_s1 + $0x128] sm:$0xff]   ;;  %v1651_v50 = vld [vmem:[%s2125_s1 + $0x120] sm:$0xff]  }
  0x12   :  { %1455 = vmatprep.subr.bf16.mxu1 %v1616_v17  ;;  %v1648_v47 = vld [vmem:[%s2125_s1 + $0x1a8] sm:$0xff]   ;;  %v1652_v51 = vld [vmem:[%s2125_s1 + $0x1a0] sm:$0xff]   ;;  %v1654_v53 = vld [vmem:[%s2125_s1 + $0x1d8] sm:$0xff]  }
  0x13   :  { %v1655_v54 = vld [vmem:[%s2125_s1 + $0x118] sm:$0xff]   ;;  %v1657_v56 = vld [vmem:[%s2125_s1 + $0x150] sm:$0xff]   ;;  %v1661_v60 = vld [vmem:[%s2125_s1 + $0x148] sm:$0xff]  }
  0x14   :  { %1434 = vmatpush3.bf16.msra.mxu0 %v1617_v18  ;;  %v1656_v55 = vld [vmem:[%s2125_s1 + $0x198] sm:$0xff]   ;;  %v1658_v57 = vld [vmem:[%s2125_s1 + $0x1d0] sm:$0xff]   ;;  %v1662_v61 = vld [vmem:[%s2125_s1 + $0x1c8] sm:$0xff]  }
  0x15   :  { %1456 = vmatpush3.bf16.msra.mxu1 %v1618_v19  ;;  %1435 = vmatprep.subr.bf16.mxu0 %v1619_v20  ;;  %v1659_v58 = vld [vmem:[%s2125_s1 + $0x110] sm:$0xff]   ;;  %v1663_v62 = vld [vmem:[%s2125_s1 + $0x108] sm:$0xff]   ;;  %v1665_v0 = vld [vmem:[%s2125_s1 + $0x140] sm:$0xff]  }
  0x16   :  { %1457 = vmatprep.subr.bf16.mxu1 %v1620_v21  ;;  %v1660_v59 = vld [vmem:[%s2125_s1 + $0x190] sm:$0xff]   ;;  %v1664_v63 = vld [vmem:[%s2125_s1 + $0x188] sm:$0xff]   ;;  %v1666_v1 = vld [vmem:[%s2125_s1 + $0x1c0] sm:$0xff]  }
  0x17   :  { %v1667_v2 = vld [vmem:[%s2125_s1 + $0x100] sm:$0xff]   ;;  %v1671_v5 = vld [vmem:[%s2126_s0 + $0x14] ss:$52 sps:$4 sm:$0xff]   ;;  %v1672_v6 = vld [vmem:[%s2126_s0 + $0x18] ss:$52 sps:$4 sm:$0xff]  }
  0x18   :  { %1436 = vmatpush3.bf16.msra.mxu0 %v1621_v22  ;;  %v1668_v3 = vld [vmem:[%s2125_s1 + $0x180] sm:$0xff]   ;;  %v1674_v7 = vld [vmem:[%s2126_s0 + $0x1c] ss:$52 sps:$4 sm:$0xff]   ;;  %v1683_v16 = vld [vmem:[%s2125_s1 + $0x268] sm:$0xff]  }
  0x19   :  { %1458 = vmatpush3.bf16.msra.mxu1 %v1622_v23  ;;  %1437 = vmatprep.subr.bf16.mxu0 %v1623_v24  ;;  %v1669_v4 = vld [vmem:[%s2126_s0 + $0x10] ss:$52 sps:$4 sm:$0xff]   ;;  %v1675_v8 = vld [vmem:[%s2125_s1 + $0x278] sm:$0xff]   ;;  %v1684_v17 = vld [vmem:[%s2125_s1 + $0x2e8] sm:$0xff]  }
  0x1a   :  { %1459 = vmatprep.subr.bf16.mxu1 %v1624_v25  ;;  %v1676_v9 = vld [vmem:[%s2125_s1 + $0x2f8] sm:$0xff]   ;;  %v1679_v12 = vld [vmem:[%s2125_s1 + $0x270] sm:$0xff]   ;;  %v1685_v18 = vld [vmem:[%s2125_s1 + $0x228] sm:$0xff]  }
  0x1b   :  { %v1677_v10 = vld [vmem:[%s2125_s1 + $0x238] sm:$0xff]   ;;  %v1680_v13 = vld [vmem:[%s2125_s1 + $0x2f0] sm:$0xff]   ;;  %v1686_v19 = vld [vmem:[%s2125_s1 + $0x2a8] sm:$0xff]  }
  0x1c   :  { %1438 = vmatpush3.bf16.msra.mxu0 %v1625_v26  ;;  %v1678_v11 = vld [vmem:[%s2125_s1 + $0x2b8] sm:$0xff]   ;;  %v1681_v14 = vld [vmem:[%s2125_s1 + $0x230] sm:$0xff]   ;;  %v1687_v20 = vld [vmem:[%s2125_s1 + $0x260] sm:$0xff]  }
  0x1d   :  { %1460 = vmatpush3.bf16.msra.mxu1 %v1626_v27  ;;  %1439 = vmatprep.subr.bf16.mxu0 %v1627_v28  ;;  %v1682_v15 = vld [vmem:[%s2125_s1 + $0x2b0] sm:$0xff]   ;;  %v1688_v21 = vld [vmem:[%s2125_s1 + $0x2e0] sm:$0xff]   ;;  %v1691_v24 = vld [vmem:[%s2125_s1 + $0x258] sm:$0xff]  }
  0x1e   :  { %1461 = vmatprep.subr.bf16.mxu1 %v1628_v29  ;;  %v1689_v22 = vld [vmem:[%s2125_s1 + $0x220] sm:$0xff]   ;;  %v1692_v25 = vld [vmem:[%s2125_s1 + $0x2d8] sm:$0xff]   ;;  %v1695_v28 = vld [vmem:[%s2125_s1 + $0x250] sm:$0xff]  }
  0x1f   :  { %v1690_v23 = vld [vmem:[%s2125_s1 + $0x2a0] sm:$0xff]   ;;  %v1693_v26 = vld [vmem:[%s2125_s1 + $0x218] sm:$0xff]   ;;  %v1696_v29 = vld [vmem:[%s2125_s1 + $0x2d0] sm:$0xff]  }
  0x20   :  { %1440 = vmatpush3.bf16.msra.mxu0 %v1629_v30  ;;  %v1694_v27 = vld [vmem:[%s2125_s1 + $0x298] sm:$0xff]   ;;  %v1697_v30 = vld [vmem:[%s2125_s1 + $0x210] sm:$0xff]   ;;  %v1700_v33 = vld [vmem:[%s2125_s1 + $0x2c8] sm:$0xff]  }
  0x21   :  { %1462 = vmatpush3.bf16.msra.mxu1 %v1630_v31  ;;  %1469 = vmatprep.subr.bf16.mxu0 %v1637_v36  ;;  %v1698_v31 = vld [vmem:[%s2125_s1 + $0x290] sm:$0xff]   ;;  %v1702_v35 = vld [vmem:[%s2125_s1 + $0x288] sm:$0xff]   ;;  %v1703_v36 = vld [vmem:[%s2125_s1 + $0x240] sm:$0xff]  }
  0x22   :  { %1491 = vmatprep.subr.bf16.mxu1 %v1638_v37  ;;  %v1704_v37 = vld [vmem:[%s2125_s1 + $0x2c0] sm:$0xff]  }
  0x23   :  { %928 = vmatmul.mubr.bf16.vlgmr.msra.gmra.mxu0 %v1631_v32  ;;  %v1699_v32 = vld [vmem:[%s2125_s1 + $0x248] sm:$0xff]  }
  0x24   :  { %969 = vmatmul.mubr.bf16.vlgmr.msra.gmra.mxu1 %v1634_v34  ;;  %1470 = vmatpush3.bf16.msra.mxu0 %v1639_v38  ;;  %v1701_v34 = vld [vmem:[%s2125_s1 + $0x208] sm:$0xff]   ;;  %v1705_v38 = vld [vmem:[%s2125_s1 + $0x200] sm:$0xff]  }
  0x25   :  { %1492 = vmatpush3.bf16.msra.mxu1 %v1640_v39  ;;  %1471 = vmatprep.subr.bf16.mxu0 %v1641_v40  ;;  %v1706_v39 = vld [vmem:[%s2125_s1 + $0x280] sm:$0xff]  }
  0x26   :  { %1493 = vmatprep.subr.bf16.mxu1 %v1642_v41  ;;  %1009 = vmatprep.mubr.bf16.mxu0 %v1671_v5  ;;  %v1707_v40 = vld [vmem:[%s2126_s0 + $0x20] ss:$52 sps:$4 sm:$0xff]   ;;  %v1709_v41 = vld [vmem:[%s2126_s0 + $0x24] ss:$52 sps:$4 sm:$0xff]  }
  0x27   :  { %1050 = vmatprep.mubr.bf16.mxu1 %v1674_v7 }
  0x28   :  { %1472 = vmatpush3.bf16.msra.mxu0 %v1643_v42  ;;  %v1710_v42 = vld [vmem:[%s2126_s0 + $0x28] ss:$52 sps:$4 sm:$0xff]  }
  0x29   :  { %1494 = vmatpush3.bf16.msra.mxu1 %v1644_v43  ;;  %1473 = vmatprep.subr.bf16.mxu0 %v1645_v44  ;;  %v1712_v43 = vld [vmem:[%s2126_s0 + $0x2c] ss:$52 sps:$4 sm:$0xff]   ;;  %v1724_v44 = vmov 0.0  }
  0x2a   :  { %1495 = vmatprep.subr.bf16.mxu1 %v1646_v45  ;;  %v1713_v45 = vld [vmem:[%s2125_s1 + $0x308] sm:$0xff]  }
  0x2c   :  { %1474 = vmatpush3.bf16.msra.mxu0 %v1647_v46  ;;  %v1714_v46 = vld [vmem:[%s2125_s1 + $0x300] sm:$0xff]  }
  0x2d   :  { %1496 = vmatpush3.bf16.msra.mxu1 %v1648_v47  ;;  %1475 = vmatprep.subr.bf16.mxu0 %v1649_v48  ;;  %v1715_v47 = vld [vmem:[%s2126_s0 + $0x30] ss:$52 sps:$4 sm:$0xff]   ;;  %v1716_v48 = vld [vmem:[%s2127_s3 + $0x38] sm:$0xff]  }
  0x2e   :  { %1497 = vmatprep.subr.bf16.mxu1 %v1650_v49  ;;  %v1717_v49 = vld [vmem:[%s2127_s3 + $0x30] sm:$0xff]  }
  0x30   :  { %1476 = vmatpush3.bf16.msra.mxu0 %v1651_v50  ;;  %v1718_v50 = vld [vmem:[%s2127_s3 + $0x28] sm:$0xff]  }
  0x31   :  { %1498 = vmatpush3.bf16.msra.mxu1 %v1652_v51  ;;  %1477 = vmatprep.subr.bf16.mxu0 %v1653_v52  ;;  %v1719_v51 = vld [vmem:[%s2127_s3 + $0x20] sm:$0xff]   ;;  %v1720_v52 = vld [vmem:[%s2127_s3 + $0x18] sm:$0xff]  }
  0x32   :  { %1499 = vmatprep.subr.bf16.mxu1 %v1654_v53  ;;  %v1721_v53 = vld [vmem:[%s2127_s3 + $0x10] sm:$0xff]  }
  0x34   :  { %1478 = vmatpush3.bf16.msra.mxu0 %v1655_v54  ;;  %v1722_v54 = vld [vmem:[%s2127_s3 + $0x8] sm:$0xff]  }
  0x35   :  { %1500 = vmatpush3.bf16.msra.mxu1 %v1656_v55  ;;  %1479 = vmatprep.subr.bf16.mxu0 %v1657_v56  ;;  %v1723_v55 = vld [vmem:[%s2127_s3] sm:$0xff]  }
  0x36   :  { %1501 = vmatprep.subr.bf16.mxu1 %v1658_v57 }
  0x38   :  { %1480 = vmatpush3.bf16.msra.mxu0 %v1659_v58 }
  0x39   :  { %1502 = vmatpush3.bf16.msra.mxu1 %v1660_v59  ;;  %1481 = vmatprep.subr.bf16.mxu0 %v1661_v60 }
  0x3a   :  { %1503 = vmatprep.subr.bf16.mxu1 %v1662_v61 }
  0x3c   :  { %1482 = vmatpush3.bf16.msra.mxu0 %v1663_v62 }
  0x3d   :  { %1504 = vmatpush3.bf16.msra.mxu1 %v1664_v63  ;;  %1483 = vmatprep.subr.bf16.mxu0 %v1665_v0 }
  0x3e   :  { %1505 = vmatprep.subr.bf16.mxu1 %v1666_v1 }
  0x40   :  { %1484 = vmatpush3.bf16.msra.mxu0 %v1667_v2 }
  0x41   :  { %1506 = vmatpush3.bf16.msra.mxu1 %v1668_v3  ;;  %1513 = vmatprep.subr.bf16.mxu0 %v1675_v8 }
  0x42   :  { %1535 = vmatprep.subr.bf16.mxu1 %v1676_v9 }
  0x43   :  { %1010 = vmatmul.mubr.bf16.vlgmr.msra.gmra.mxu0 %v1669_v4  ;;  %v1303_v4 = vld [vmem:[%s2128_s2] ss:$0 sm:$0xff] }
  0x44   :  { %1051 = vmatmul.mubr.bf16.vlgmr.msra.gmra.mxu1 %v1672_v6  ;;  %1514 = vmatpush3.bf16.msra.mxu0 %v1677_v10 }
  0x45   :  { %1536 = vmatpush3.bf16.msra.mxu1 %v1678_v11  ;;  %1515 = vmatprep.subr.bf16.mxu0 %v1679_v12 }
  0x46   :  { %1537 = vmatprep.subr.bf16.mxu1 %v1680_v13  ;;  %1091 = vmatprep.mubr.bf16.mxu0 %v1709_v41 }
  0x47   :  { %1132 = vmatprep.mubr.bf16.mxu1 %v1712_v43 }
  0x48   :  { %1516 = vmatpush3.bf16.msra.mxu0 %v1681_v14 }
  0x49   :  { %1538 = vmatpush3.bf16.msra.mxu1 %v1682_v15  ;;  %1517 = vmatprep.subr.bf16.mxu0 %v1683_v16 }
  0x4a   :  { %1539 = vmatprep.subr.bf16.mxu1 %v1684_v17 }
  0x4c   :  { %1518 = vmatpush3.bf16.msra.mxu0 %v1685_v18 }
  0x4d   :  { %1540 = vmatpush3.bf16.msra.mxu1 %v1686_v19  ;;  %1519 = vmatprep.subr.bf16.mxu0 %v1687_v20 }
  0x4e   :  { %1541 = vmatprep.subr.bf16.mxu1 %v1688_v21 }
  0x50   :  { %1520 = vmatpush3.bf16.msra.mxu0 %v1689_v22 }
  0x51   :  { %1542 = vmatpush3.bf16.msra.mxu1 %v1690_v23  ;;  %1521 = vmatprep.subr.bf16.mxu0 %v1691_v24 }
  0x52   :  { %1543 = vmatprep.subr.bf16.mxu1 %v1692_v25 }
  0x54   :  { %1522 = vmatpush3.bf16.msra.mxu0 %v1693_v26 }
  0x55   :  { %1544 = vmatpush3.bf16.msra.mxu1 %v1694_v27  ;;  %1523 = vmatprep.subr.bf16.mxu0 %v1695_v28 }
  0x56   :  { %1545 = vmatprep.subr.bf16.mxu1 %v1696_v29 }
  0x58   :  { %1524 = vmatpush3.bf16.msra.mxu0 %v1697_v30 }
  0x59   :  { %1546 = vmatpush3.bf16.msra.mxu1 %v1698_v31  ;;  %1525 = vmatprep.subr.bf16.mxu0 %v1699_v32 }
  0x5a   :  { %1547 = vmatprep.subr.bf16.mxu1 %v1700_v33 }
  0x5c   :  { %1526 = vmatpush3.bf16.msra.mxu0 %v1701_v34 }
  0x5d   :  { %1548 = vmatpush3.bf16.msra.mxu1 %v1702_v35  ;;  %1527 = vmatprep.subr.bf16.mxu0 %v1703_v36 }
  0x5e   :  { %1549 = vmatprep.subr.bf16.mxu1 %v1704_v37 }
  0x60   :  { %1528 = vmatpush3.bf16.msra.mxu0 %v1705_v38 }
  0x61   :  { %1550 = vmatpush3.bf16.msra.mxu1 %v1706_v39  ;;  %1569 = vmatprep.subr.bf16.mxu0 %v1724_v44 }
  0x62   :  { %1577 = vmatprep.subr.bf16.mxu1 %v1724_v44 }
  0x63   :  { %1092 = vmatmul.mubr.bf16.vlgmr.msra.gmra.mxu0 %v1707_v40 }
  0x64   :  { %1133 = vmatmul.mubr.bf16.vlgmr.msra.gmra.mxu1 %v1710_v42  ;;  %1570 = vmatpush3.bf16.msra.mxu0 %v1713_v45 }
  0x65   :  { %1571 = vmatprep.subr.bf16.mxu0 %v1724_v44  ;;  %1573 = vmatprep.mubr.msk.bf16.mxu0 %vm1725_vm0, %v1724_v44 }
  0x66   :  { %1593 = vmatprep.mubr.msk.bf16.mxu1 %vm1725_vm0, %v1724_v44  ;;  %1578 = vmatpush3.bf16.msra.mxu1 %v1716_v48 }
  0x67   :  { %1579 = vmatprep.subr.bf16.mxu1 %v1724_v44 }
  0x68   :  { %1572 = vmatpush3.bf16.msra.mxu0 %v1714_v46 }
  0x6a   :  { %1580 = vmatpush3.bf16.msra.mxu1 %v1717_v49 }
  0x6b   :  { %1574 = vmatmul.mubr.msk.bf16.vlgmr.msra.gmra.mxu0 %vm891_vm1, %v1715_v47  ;;  %1581 = vmatprep.subr.bf16.mxu1 %v1724_v44 }
  0x6e   :  { %1582 = vmatpush3.bf16.msra.mxu1 %v1718_v50  ;;  %v1416_v50 = vld [vmem:[%s2129_s4] ss:$0 sm:$0xff] }
  0x6f   :  { %1583 = vmatprep.subr.bf16.mxu1 %v1724_v44 }
  0x72   :  { %1584 = vmatpush3.bf16.msra.mxu1 %v1719_v51 }
  0x73   :  { %1585 = vmatprep.subr.bf16.mxu1 %v1724_v44 }
  0x76   :  { %1586 = vmatpush3.bf16.msra.mxu1 %v1720_v52 }
  0x77   :  { %1587 = vmatprep.subr.bf16.mxu1 %v1724_v44 }
  0x7a   :  { %1588 = vmatpush3.bf16.msra.mxu1 %v1721_v53 }
  0x7b   :  { %1589 = vmatprep.subr.bf16.mxu1 %v1724_v44 }
  0x7e   :  { %1590 = vmatpush3.bf16.msra.mxu1 %v1722_v54 }
  0x7f   :  { %1591 = vmatprep.subr.bf16.mxu1 %v1724_v44 }
  0x82   :  { %1592 = vmatpush3.bf16.msra.mxu1 %v1723_v55 }
  0xe3   :  { %v1441_v56 = vpop.f32.mrf.mxu0 }
  0xe4   :  { %v1463_v57 = vpop.f32.mrf.mxu1 }
  0xe5   :  { %v1442_v58 = vpop.f32.mrf.mxu0 }
  0xe6   :  { %v1464_v59 = vpop.f32.mrf.mxu1  ;;  %v1443_v3 = vadd.f32 %v1442_v58, %v1441_v56 }
  0xe7   :  { %v1444_v60 = vpop.f32.mrf.mxu0  ;;  %v1465_v8 = vadd.f32 %v1464_v59, %v1463_v57 }
  0xe8   :  { %v1466_v61 = vpop.f32.mrf.mxu1  ;;  %v930_v7 = vadd.f32 %v1443_v3, %v1303_v4 }
  0xe9   :  { %v1445_v62 = vpop.f32.mrf.mxu0 }
  0xea   :  { %v1467_v0 = vpop.f32.mrf.mxu1  ;;  %v1446_v9 = vadd.f32 %v1445_v62, %v1444_v60  ;;  %v971_v13 = vadd.f32 %v1465_v8, %v930_v7 }
  0xeb   :  { %v1468_v15 = vadd.f32 %v1467_v0, %v1466_v61 }
  0xec   :  { %v933_v14 = vadd.f32 %v1446_v9, %v1303_v4 }
  0xee   :  { %v974_v21 = vadd.f32 %v1468_v15, %v933_v14 }
 0x103   :  { %v1485_v63 = vpop.f32.mrf.mxu0 }
 0x104   :  { %v1507_v1 = vpop.f32.mrf.mxu1 }
 0x105   :  { %v1486_v2 = vpop.f32.mrf.mxu0 }
 0x106   :  { %v1508_v5 = vpop.f32.mrf.mxu1  ;;  %v1487_v10 = vadd.f32 %v1486_v2, %v1485_v63 }
 0x107   :  { %v1488_v6 = vpop.f32.mrf.mxu0  ;;  %v1509_v17 = vadd.f32 %v1508_v5, %v1507_v1 }
 0x108   :  { %v1510_v11 = vpop.f32.mrf.mxu1  ;;  %v1012_v16 = vadd.f32 %v1487_v10, %v971_v13 }
 0x109   :  { %v1489_v12 = vpop.f32.mrf.mxu0 }
 0x10a   :  { %v1490_v18 = vadd.f32 %v1489_v12, %v1488_v6  ;;  %v1511_v19 = vpop.f32.mrf.mxu1  ;;  %v1053_v24 = vadd.f32 %v1509_v17, %v1012_v16 }
 0x10b   :  { %v1512_v29 = vadd.f32 %v1511_v19, %v1510_v11 }
 0x10c   :  { %v1015_v25 = vadd.f32 %v1490_v18, %v974_v21 }
 0x10e   :  { %v1056_v34 = vadd.f32 %v1512_v29, %v1015_v25 }
 0x123   :  { %v1529_v20 = vpop.f32.mrf.mxu0 }
 0x124   :  { %v1551_v22 = vpop.f32.mrf.mxu1 }
 0x125   :  { %v1530_v23 = vpop.f32.mrf.mxu0 }
 0x126   :  { %v1531_v26 = vadd.f32 %v1530_v23, %v1529_v20  ;;  %v1552_v27 = vpop.f32.mrf.mxu1 }
 0x127   :  { %v1532_v28 = vpop.f32.mrf.mxu0  ;;  %v1553_v31 = vadd.f32 %v1552_v27, %v1551_v22 }
 0x128   :  { %v1094_v30 = vadd.f32 %v1531_v26, %v1053_v24  ;;  %v1554_v32 = vpop.f32.mrf.mxu1 }
 0x129   :  { %v1533_v33 = vpop.f32.mrf.mxu0 }
 0x12a   :  { %v1534_v35 = vadd.f32 %v1533_v33, %v1532_v28  ;;  %v1555_v36 = vpop.f32.mrf.mxu1  ;;  %v1135_v37 = vadd.f32 %v1553_v31, %v1094_v30 }
 0x12b   :  { %v1175_v38 = vpop.f32.mrf.mxu0  ;;  %v1556_v40 = vadd.f32 %v1555_v36, %v1554_v32 }
 0x12c   :  { %v1097_v39 = vadd.f32 %v1534_v35, %v1056_v34  ;;  %v1176_v42 = vadd.f32 %v1175_v38, %v1135_v37 }
 0x12d   :  { %v1575_v41 = vpop.f32.mrf.mxu0 }
 0x12e   :  { %v1138_v43 = vadd.f32 %v1556_v40, %v1097_v39  ;;  %v1182_v47 = vmax.f32 %v1176_v42, 0.0 }
 0x12f   :  { %v1178_v44 = vpop.f32.mrf.mxu0 }
 0x130   :  { %v1179_v45 = vadd.f32 %v1178_v44, %v1138_v43 }
 0x131   :  { %v1576_v46 = vpop.f32.mrf.mxu0 }
 0x132   :  { %v1183_v48 = vmax.f32 %v1179_v45, 0.0 }
 0x134   :  { %v1184_v49 = vpack.c.bf16 %v1183_v48, %v1182_v47 }
 0x136   :  { %1594 = vmatmul.mubr.bf16.vlgmr.msra.gmra.mxu1 %v1184_v49 }
 0x1f6   :  { %v1290_v51 = vpop.f32.mrf.mxu1 }
 0x1f7   :  { %v1291_v52 = vadd.f32 %v1416_v50, %v1290_v51 }
 0x1f8   :  { %v1595_v53 = vpop.f32.mrf.mxu1 }
 0x1f9   :  { %1297 = vst [vmem:[%s2130_s5] sm:$0xff] %v1291_v52 }
 0x1fa   :  { %v1293_v54 = vpop.f32.mrf.mxu1 }
 0x1fb   :  { %v1294_v55 = vadd.f32 %v1416_v50, %v1293_v54 }
 0x1fc   :  { %v1596_v56 = vpop.f32.mrf.mxu1 }
 0x1fd   :  { %1298 = vst [vmem:[%s2130_s5 + $0x8] sm:$0xff] %v1294_v55 }

</bundles_post_ra>
